<compile_context>
chip_gen: v6e
topology: v6e:2x2x1
jax: 0.10.0
libtpu: 0.0.40
codegen_flags: <defaults>
</compile_context>

<pallas_src>
import functools

import numpy as np
import jax
import jax.numpy as jnp
from jax.experimental import pallas as pl
from jax.experimental.pallas import tpu as pltpu


PARAMS = {
    "FilterSize": 3,          # OneConv kernel, pad = FindPad(3) = 1
    "TransposeSize": 4,       # CascadeUp kernel, pad = FindPad(4) = 1
    "TransposeStride": 2,
    "ResidualConnections": True,
}
LEAKY_SLOPE = 0.01            # nn.LeakyReLU default
BN_EPS = 1e-5


# ----------------------------------------------------------------------------
# Pallas kernels
# ----------------------------------------------------------------------------
def _oneconv_kernel(residual, x_ref, w_ref, b_ref, g_ref, bt_ref, *rest):
    """Fused OneConv: im2col GEMM + bias + LeakyReLU + BatchNorm [+ residual].

    x_ref : (M, Kc)   bf16  folded im2col, Kc = K^3 * Cin (deep MXU contraction)
    w_ref : (Kc, Cout) bf16
    b/g/bt: (1, Cout)  f32
    rest  : [res (M, Cout) f32], out (M, Cout) f32
    """
    if residual:
        r_ref, o_ref = rest
    else:
        (o_ref,) = rest

    # Single deep-K GEMM on the MXU, f32 accumulation.
    y = jnp.dot(x_ref[...], w_ref[...], preferred_element_type=jnp.float32)
    y = y + b_ref[...]                                    # fused bias
    y = jnp.where(y >= 0.0, y, LEAKY_SLOPE * y)           # fused LeakyReLU

    # Fused BatchNorm3d (training-mode biased batch stats over N*D*H*W = axis 0).
    mu = jnp.mean(y, axis=0, keepdims=True)
    var = jnp.mean(jnp.square(y - mu), axis=0, keepdims=True)
    y = (y - mu) * jax.lax.rsqrt(var + BN_EPS) * g_ref[...] + bt_ref[...]

    if residual:                                          # fused residual add
        y = y + r_ref[...]
    o_ref[...] = y.astype(o_ref.dtype)


def _upconv_kernel(x_ref, w_ref, b_ref, o_ref):
    """ConvTranspose3d(k=4, s=2, p=1) as ONE GEMM via sub-pixel (parity) fold,
    with fused bias + LeakyReLU.  Output columns = (pd, ph, pw, Cout) -> the
    store is 8*Cout lanes wide (lane-dense for Cout=32)."""
    y = jnp.dot(x_ref[...], w_ref[...], preferred_element_type=jnp.float32)
    y = y + b_ref[...]
    o_ref[...] = jnp.where(y >= 0.0, y, LEAKY_SLOPE * y).astype(o_ref.dtype)


# ----------------------------------------------------------------------------
# pallas_call builders (grid=(1,), full-extent VMEM blocks)
# ----------------------------------------------------------------------------
def _full_spec(shape):
    return pl.BlockSpec(shape, lambda i: (0,) * len(shape))


_COMPILER_PARAMS = pltpu.CompilerParams(
    dimension_semantics=("arbitrary",),
    vmem_limit_bytes=48 * 1024 * 1024,
)


def _call_oneconv(x_col, w_mat, b, gamma, beta, res=None):
    M, Kc = x_col.shape
    Cout = w_mat.shape[-1]
    residual = res is not None
    args = [x_col, w_mat, b, gamma, beta]
    in_specs = [
        _full_spec((M, Kc)),
        _full_spec((Kc, Cout)),
        _full_spec((1, Cout)),
        _full_spec((1, Cout)),
        _full_spec((1, Cout)),
    ]
    if residual:
        args.append(res)
        in_specs.append(_full_spec((M, Cout)))
    return pl.pallas_call(
        functools.partial(_oneconv_kernel, residual),
        out_shape=jax.ShapeDtypeStruct((M, Cout), jnp.float32),
        grid=(1,),
        in_specs=in_specs,
        out_specs=_full_spec((M, Cout)),
        compiler_params=_COMPILER_PARAMS,
    )(*args)


def _call_upconv(x_col, w_mat, b_tiled):
    M, Kc = x_col.shape
    Cp = w_mat.shape[-1]        # 8 * Cout
    return pl.pallas_call(
        _upconv_kernel,
        out_shape=jax.ShapeDtypeStruct((M, Cp), jnp.float32),
        grid=(1,),
        in_specs=[_full_spec((M, Kc)), _full_spec((Kc, Cp)), _full_spec((1, Cp))],
        out_specs=_full_spec((M, Cp)),
        compiler_params=_COMPILER_PARAMS,
    )(x_col, w_mat, b_tiled)


# ----------------------------------------------------------------------------
# Layout glue (plain JAX)
# ----------------------------------------------------------------------------
def _im2col(xp, K, Do, Ho, Wo):
    """Padded NDHWC -> (N*Do*Ho*Wo, K^3*C); column order (kd, kh, kw, c)."""
    N = xp.shape[0]
    C = xp.shape[-1]
    taps = []
    for a in range(K):
        for b in range(K):
            for c in range(K):
                taps.append(xp[:, a:a + Do, b:b + Ho, c:c + Wo, :])
    col = jnp.concatenate(taps, axis=-1)
    return col.reshape(N * Do * Ho * Wo, K ** 3 * C)


def batchnorm(x, gamma, beta):
    # nn.BatchNorm3d training-mode forward: biased batch stats over (N, D, H, W)
    mean = x.mean(axis=(0, 1, 2, 3))
    var = x.var(axis=(0, 1, 2, 3))
    return (x - mean) * jax.lax.rsqrt(var + BN_EPS) * gamma + beta


def _fold_transpose_weight(w):
    """(4,4,4,Cin,Cout) ConvTranspose weight (scatter form: out[o]+=in[i]*w[k],
    o = 2i - 1 + k) -> (27*Cin, 8*Cout) parity-folded GEMM matrix.

    Rows    ordered (a, b, c, cin)  -- offsets into the 1-padded input.
    Columns ordered (pd, ph, pw, cout) -- output parity sub-grids.
    """
    Cin, Cout = w.shape[3], w.shape[4]
    wt = jnp.zeros((3, 3, 3, Cin, 2, 2, 2, Cout), w.dtype)
    for pd in range(2):
        for td in range(2):
            kd = 3 - pd - 2 * td
            for ph in range(2):
                for th in range(2):
                    kh = 3 - ph - 2 * th
                    for pw in range(2):
                        for tw in range(2):
                            kw = 3 - pw - 2 * tw
                            wt = wt.at[pd + td, ph + th, pw + tw, :,
                                       pd, ph, pw, :].set(w[kd, kh, kw])
    return wt.reshape(27 * Cin, 8 * Cout)


# ----------------------------------------------------------------------------
# Module forward (OneConv / CascadeUp / NoSkipCascadeConvBlock)
# ----------------------------------------------------------------------------
def one_conv_fwd(p, x, residual=None):
    """OneConv: Conv3d(k=3, pad=1) -> LeakyReLU -> BatchNorm3d, fully fused.
    Optionally fuses the block residual add (applied after BN)."""
    N, D, H, W, Cin = x.shape
    K = p["w"].shape[0]
    Cout = p["w"].shape[-1]
    pad = (K - 1) // 2                                      # FindPad(3) = 1
    xp = jnp.pad(x, ((0, 0), (pad, pad), (pad, pad), (pad, pad), (0, 0)))
    x_col = _im2col(xp, K, D, H, W).astype(jnp.bfloat16)
    w_mat = p["w"].reshape(K ** 3 * Cin, Cout).astype(jnp.bfloat16)
    res = None if residual is None else residual.reshape(N * D * H * W, Cout)
    out = _call_oneconv(
        x_col, w_mat,
        p["b"].reshape(1, Cout),
        p["gamma"].reshape(1, Cout),
        p["beta"].reshape(1, Cout),
        res,
    )
    return out.reshape(N, D, H, W, Cout)


def cascade_up_fwd(p, x):
    """CascadeUp: ConvTranspose3d(k=4, s=2, p=1) -> LeakyReLU -> BatchNorm3d.
    output_size is always exactly 2x the input spatial size in this network
    (output_padding = 0)."""
    N, D, H, W, Cin = x.shape
    Cout = p["gamma"].shape[0]
    xp = jnp.pad(x, ((0, 0), (1, 1), (1, 1), (1, 1), (0, 0)))
    x_col = _im2col(xp, 3, D, H, W).astype(jnp.bfloat16)    # union of parity taps
    y = _call_upconv(
        x_col,
        p["wmat"].astype(jnp.bfloat16),
        jnp.tile(p["b"], 8).reshape(1, 8 * Cout),
    )
    # interleave the 8 parity sub-grids -> (N, 2D, 2H, 2W, Cout)
    y = y.reshape(N, D, H, W, 2, 2, 2, Cout)
    y = jnp.transpose(y, (0, 1, 4, 2, 5, 3, 6, 7)).reshape(N, 2 * D, 2 * H, 2 * W, Cout)
    return batchnorm(y, p["gamma"], p["beta"])


@functools.partial(jax.jit, static_argnames=("upconv",))
def block_fwd(params, x, *, upconv=False):
    """NoSkipCascadeConvBlock.forward (ResidualConnections=True):
       first  = conv1(UpConv(x))
       second = conv2(first)
       return second + first        (residual add fused into conv2's kernel)
    """
    if upconv:
        x = cascade_up_fwd(params["up"], x)
    first = one_conv_fwd(params["conv1"], x)
    return one_conv_fwd(params["conv2"], first, residual=first)


# ----------------------------------------------------------------------------
# Deterministic parameter initialization
# ----------------------------------------------------------------------------
class _KeyGen:
    def __init__(self, seed):
        self._key = jax.random.PRNGKey(seed)

    def __call__(self):
        self._key, sub = jax.random.split(self._key)
        return sub


def init_one_conv(kg, cin, cout):
    k = PARAMS["FilterSize"]
    scale = 1.0 / float(np.sqrt(cin * k ** 3))
    return {
        "w": scale * jax.random.normal(kg(), (k, k, k, cin, cout), jnp.float32),
        "b": scale * jax.random.normal(kg(), (cout,), jnp.float32),
        "gamma": jnp.ones((cout,), jnp.float32),
        "beta": jnp.zeros((cout,), jnp.float32),
    }


def init_cascade_up(kg, cin, cout):
    k = PARAMS["TransposeSize"]
    scale = 1.0 / float(np.sqrt(cin * k ** 3))
    w = scale * jax.random.normal(kg(), (k, k, k, cin, cout), jnp.float32)
    return {
        "w_raw": w,                            # kept only for the reference check
        "wmat": _fold_transpose_weight(w),     # parity-folded GEMM weight
        "b": scale * jax.random.normal(kg(), (cout,), jnp.float32),
        "gamma": jnp.ones((cout,), jnp.float32),
        "beta": jnp.zeros((cout,), jnp.float32),
    }


def init_block(kg, cin, cout, upconv=False):
    p = {}
    if upconv:
        p["up"] = init_cascade_up(kg, cin, cout)
        cin = cout
    p["conv1"] = init_one_conv(kg, cin, cout)
    p["conv2"] = init_one_conv(kg, cout, cout)
    return p


# ----------------------------------------------------------------------------
# Pure-JAX reference (for a correctness sanity check only)
# ----------------------------------------------------------------------------
def _ref_conv3d(x, w, b):
    y = jax.lax.conv_general_dilated(
        x, w, window_strides=(1, 1, 1), padding=[(1, 1)] * 3,
        dimension_numbers=("NDHWC", "DHWIO", "NDHWC"))
    return y + b


def _ref_conv_transpose3d(x, w, b):
    y = jax.lax.conv_general_dilated(
        x, jnp.flip(w, axis=(0, 1, 2)), window_strides=(1, 1, 1),
        padding=[(2, 2)] * 3, lhs_dilation=(2, 2, 2),
        dimension_numbers=("NDHWC", "DHWIO", "NDHWC"))
    return y + b


def _ref_one_conv(p, x):
    y = _ref_conv3d(x, p["w"], p["b"])
    y = jnp.where(y >= 0.0, y, LEAKY_SLOPE * y)
    return batchnorm(y, p["gamma"], p["beta"])


def _ref_block(params, x, upconv=False):
    if upconv:
        y = _ref_conv_transpose3d(x, params["up"]["w_raw"], params["up"]["b"])
        y = jnp.where(y >= 0.0, y, LEAKY_SLOPE * y)
        x = batchnorm(y, params["up"]["gamma"], params["up"]["beta"])
    first = _ref_one_conv(params["conv1"], x)
    second = _ref_one_conv(params["conv2"], first)
    return second + first


# ----------------------------------------------------------------------------
# Main
# ----------------------------------------------------------------------------
if __name__ == "__main__":
    key = jax.random.PRNGKey(0)
    k1, k2 = jax.random.split(key)
    FilterNum = 32

    # --- Case 1: plain block (UpConv=False), PyTorch NCDHW input (1,4,8,8,8) --
    x1_ncdhw = jax.random.normal(k1, (1, 4, 8, 8, 8), jnp.float32)
    x1 = jnp.transpose(x1_ncdhw, (0, 2, 3, 4, 1))            # NCDHW -> NDHWC
    p1 = init_block(_KeyGen(1234), 4, FilterNum, upconv=False)
    y1 = jax.block_until_ready(block_fwd(p1, x1, upconv=False))
    assert y1.shape == (1, 8, 8, 8, FilterNum)
    err1 = float(jnp.max(jnp.abs(y1 - _ref_block(p1, x1, upconv=False))))
    assert err1 < 0.2, f"case1 mismatch vs reference: {err1}"

    # --- Case 2: UpConv=True block, NCDHW input (1,4,4,4,4) -> spatial 2x -----
    x2_ncdhw = jax.random.normal(k2, (1, 4, 4, 4, 4), jnp.float32)
    x2 = jnp.transpose(x2_ncdhw, (0, 2, 3, 4, 1))
    p2 = init_block(_KeyGen(5678), 4, FilterNum, upconv=True)
    y2 = jax.block_until_ready(block_fwd(p2, x2, upconv=True))
    assert y2.shape == (1, 8, 8, 8, FilterNum)
    err2 = float(jnp.max(jnp.abs(y2 - _ref_block(p2, x2, upconv=True))))
    assert err2 < 0.2, f"case2 mismatch vs reference: {err2}"

    # back to the PyTorch module's NCDHW return layout
    y1_ncdhw = jnp.transpose(y1, (0, 4, 1, 2, 3))
    y2_ncdhw = jnp.transpose(y2, (0, 4, 1, 2, 3))
    assert y1_ncdhw.shape == (1, FilterNum, 8, 8, 8)
    assert y2_ncdhw.shape == (1, FilterNum, 8, 8, 8)
    assert bool(jnp.all(jnp.isfinite(y1_ncdhw))) and bool(jnp.all(jnp.isfinite(y2_ncdhw)))

    print("KERNEL_OK")
</pallas_src>

<mosaic_0001>
module attributes {stable_mosaic.version = 11 : i64} {
  func.func @_oneconv_kernel(%arg0: i32, %arg1: memref<512x108xbf16, #tpu.memory_space<vmem>>, %arg2: memref<108x32xbf16, #tpu.memory_space<vmem>>, %arg3: memref<1x32xf32, #tpu.memory_space<vmem>>, %arg4: memref<1x32xf32, #tpu.memory_space<vmem>>, %arg5: memref<1x32xf32, #tpu.memory_space<vmem>>, %arg6: memref<512x32xf32, #tpu.memory_space<vmem>>) attributes {dimension_semantics = [#tpu.dimension_semantics<arbitrary>], iteration_bounds = array<i64: 1>, scalar_prefetch = 0 : i64, scratch_operands = 0 : i64, tpu.core_type = #tpu.core_type<tc>, window_params = [{pipeline_mode = #tpu.pipeline_mode<synchronous>, transform_indices = @transform_0, window_bounds = array<i64: 512, 108>}, {pipeline_mode = #tpu.pipeline_mode<synchronous>, transform_indices = @transform_1, window_bounds = array<i64: 108, 32>}, {pipeline_mode = #tpu.pipeline_mode<synchronous>, transform_indices = @transform_2, window_bounds = array<i64: 1, 32>}, {pipeline_mode = #tpu.pipeline_mode<synchronous>, transform_indices = @transform_3, window_bounds = array<i64: 1, 32>}, {pipeline_mode = #tpu.pipeline_mode<synchronous>, transform_indices = @transform_4, window_bounds = array<i64: 1, 32>}, {pipeline_mode = #tpu.pipeline_mode<synchronous>, transform_indices = @transform_5, window_bounds = array<i64: 512, 32>}]} {
    %c0 = arith.constant 0 : index
    %c0_0 = arith.constant 0 : index
    %0 = vector.load %arg1[%c0, %c0_0] : memref<512x108xbf16, #tpu.memory_space<vmem>>, vector<512x108xbf16>
    %c0_1 = arith.constant 0 : index
    %c0_2 = arith.constant 0 : index
    %1 = vector.load %arg2[%c0_1, %c0_2] : memref<108x32xbf16, #tpu.memory_space<vmem>>, vector<108x32xbf16>
    %cst = arith.constant dense<0.000000e+00> : vector<512x32xf32>
    %2 = tpu.matmul %0, %1, %cst {dimension_numbers = #tpu.dot_dimension_numbers<[1], [0], [0], [1], [0, 0, 1, 1], [], []>} : vector<512x108xbf16>, vector<108x32xbf16>, vector<512x32xf32> -> vector<512x32xf32>
    %c0_3 = arith.constant 0 : index
    %c0_4 = arith.constant 0 : index
    %3 = vector.load %arg3[%c0_3, %c0_4] : memref<1x32xf32, #tpu.memory_space<vmem>>, vector<1x32xf32>
    %4 = vector.broadcast %3 : vector<1x32xf32> to vector<512x32xf32>
    %5 = arith.addf %2, %4 : vector<512x32xf32>
    %cst_5 = arith.constant 0.000000e+00 : f32
    %6 = vector.broadcast %cst_5 : f32 to vector<512x32xf32>
    %7 = arith.cmpf oge, %5, %6 : vector<512x32xf32>
    %cst_6 = arith.constant 0.00999999977 : f32
    %8 = vector.broadcast %cst_6 : f32 to vector<512x32xf32>
    %9 = arith.mulf %8, %5 : vector<512x32xf32>
    %10 = arith.select %7, %5, %9 : vector<512x32xi1>, vector<512x32xf32>
    %cst_7 = arith.constant dense<0.000000e+00> : vector<32xf32>
    %11 = vector.multi_reduction <add>, %10, %cst_7 [0] : vector<512x32xf32> to vector<32xf32>
    %12 = vector.shape_cast %11 : vector<32xf32> to vector<1x32xf32>
    %cst_8 = arith.constant 5.120000e+02 : f32
    %13 = vector.broadcast %cst_8 : f32 to vector<1x32xf32>
    %14 = arith.divf %12, %13 : vector<1x32xf32>
    %15 = vector.broadcast %14 : vector<1x32xf32> to vector<512x32xf32>
    %16 = arith.subf %10, %15 : vector<512x32xf32>
    %17 = arith.mulf %16, %16 : vector<512x32xf32>
    %cst_9 = arith.constant dense<0.000000e+00> : vector<32xf32>
    %18 = vector.multi_reduction <add>, %17, %cst_9 [0] : vector<512x32xf32> to vector<32xf32>
    %19 = vector.shape_cast %18 : vector<32xf32> to vector<1x32xf32>
    %cst_10 = arith.constant 5.120000e+02 : f32
    %20 = vector.broadcast %cst_10 : f32 to vector<1x32xf32>
    %21 = arith.divf %19, %20 : vector<1x32xf32>
    %22 = vector.broadcast %14 : vector<1x32xf32> to vector<512x32xf32>
    %23 = arith.subf %10, %22 : vector<512x32xf32>
    %cst_11 = arith.constant 9.99999974E-6 : f32
    %24 = vector.broadcast %cst_11 : f32 to vector<1x32xf32>
    %25 = arith.addf %21, %24 : vector<1x32xf32>
    %26 = math.rsqrt %25 : vector<1x32xf32>
    %27 = vector.broadcast %26 : vector<1x32xf32> to vector<512x32xf32>
    %28 = arith.mulf %23, %27 : vector<512x32xf32>
    %c0_12 = arith.constant 0 : index
    %c0_13 = arith.constant 0 : index
    %29 = vector.load %arg4[%c0_12, %c0_13] : memref<1x32xf32, #tpu.memory_space<vmem>>, vector<1x32xf32>
    %30 = vector.broadcast %29 : vector<1x32xf32> to vector<512x32xf32>
    %31 = arith.mulf %28, %30 : vector<512x32xf32>
    %c0_14 = arith.constant 0 : index
    %c0_15 = arith.constant 0 : index
    %32 = vector.load %arg5[%c0_14, %c0_15] : memref<1x32xf32, #tpu.memory_space<vmem>>, vector<1x32xf32>
    %33 = vector.broadcast %32 : vector<1x32xf32> to vector<512x32xf32>
    %34 = arith.addf %31, %33 : vector<512x32xf32>
    %c0_16 = arith.constant 0 : index
    %c0_17 = arith.constant 0 : index
    %35 = vector.load %arg6[%c0_16, %c0_17] : memref<512x32xf32, #tpu.memory_space<vmem>>, vector<512x32xf32>
    tpu.vector_store %arg6[%c0_16, %c0_17], %34 {strides = array<i32>} : memref<512x32xf32, #tpu.memory_space<vmem>>, vector<512x32xf32>,
    return
  }
  func.func @transform_0(%arg0: i32) -> (i32, i32) {
    %c0_i32 = arith.constant 0 : i32
    %c0_i32_0 = arith.constant 0 : i32
    %c0_i32_1 = arith.constant 0 : i32
    return %c0_i32, %c0_i32_0 : i32, i32
  }
  func.func @transform_1(%arg0: i32) -> (i32, i32) {
    %c0_i32 = arith.constant 0 : i32
    %c0_i32_0 = arith.constant 0 : i32
    %c0_i32_1 = arith.constant 0 : i32
    return %c0_i32, %c0_i32_0 : i32, i32
  }
  func.func @transform_2(%arg0: i32) -> (i32, i32) {
    %c0_i32 = arith.constant 0 : i32
    %c0_i32_0 = arith.constant 0 : i32
    %c0_i32_1 = arith.constant 0 : i32
    return %c0_i32, %c0_i32_0 : i32, i32
  }
  func.func @transform_3(%arg0: i32) -> (i32, i32) {
    %c0_i32 = arith.constant 0 : i32
    %c0_i32_0 = arith.constant 0 : i32
    %c0_i32_1 = arith.constant 0 : i32
    return %c0_i32, %c0_i32_0 : i32, i32
  }
  func.func @transform_4(%arg0: i32) -> (i32, i32) {
    %c0_i32 = arith.constant 0 : i32
    %c0_i32_0 = arith.constant 0 : i32
    %c0_i32_1 = arith.constant 0 : i32
    return %c0_i32, %c0_i32_0 : i32, i32
  }
  func.func @transform_5(%arg0: i32) -> (i32, i32) {
    %c0_i32 = arith.constant 0 : i32
    %c0_i32_0 = arith.constant 0 : i32
    %c0_i32_1 = arith.constant 0 : i32
    return %c0_i32, %c0_i32_0 : i32, i32
  }
}

module attributes {stable_mosaic.version = 11 : i64} {
  func.func @_oneconv_kernel(%arg0: i32, %arg1: memref<512x864xbf16, #tpu.memory_space<vmem>>, %arg2: memref<864x32xbf16, #tpu.memory_space<vmem>>, %arg3: memref<1x32xf32, #tpu.memory_space<vmem>>, %arg4: memref<1x32xf32, #tpu.memory_space<vmem>>, %arg5: memref<1x32xf32, #tpu.memory_space<vmem>>, %arg6: memref<512x32xf32, #tpu.memory_space<vmem>>, %arg7: memref<512x32xf32, #tpu.memory_space<vmem>>) attributes {dimension_semantics = [#tpu.dimension_semantics<arbitrary>], iteration_bounds = array<i64: 1>, scalar_prefetch = 0 : i64, scratch_operands = 0 : i64, tpu.core_type = #tpu.core_type<tc>, window_params = [{pipeline_mode = #tpu.pipeline_mode<synchronous>, transform_indices = @transform_0, window_bounds = array<i64: 512, 864>}, {pipeline_mode = #tpu.pipeline_mode<synchronous>, transform_indices = @transform_1, window_bounds = array<i64: 864, 32>}, {pipeline_mode = #tpu.pipeline_mode<synchronous>, transform_indices = @transform_2, window_bounds = array<i64: 1, 32>}, {pipeline_mode = #tpu.pipeline_mode<synchronous>, transform_indices = @transform_3, window_bounds = array<i64: 1, 32>}, {pipeline_mode = #tpu.pipeline_mode<synchronous>, transform_indices = @transform_4, window_bounds = array<i64: 1, 32>}, {pipeline_mode = #tpu.pipeline_mode<synchronous>, transform_indices = @transform_5, window_bounds = array<i64: 512, 32>}, {pipeline_mode = #tpu.pipeline_mode<synchronous>, transform_indices = @transform_6, window_bounds = array<i64: 512, 32>}]} {
    %c0 = arith.constant 0 : index
    %c0_0 = arith.constant 0 : index
    %0 = vector.load %arg1[%c0, %c0_0] : memref<512x864xbf16, #tpu.memory_space<vmem>>, vector<512x864xbf16>
    %c0_1 = arith.constant 0 : index
    %c0_2 = arith.constant 0 : index
    %1 = vector.load %arg2[%c0_1, %c0_2] : memref<864x32xbf16, #tpu.memory_space<vmem>>, vector<864x32xbf16>
    %cst = arith.constant dense<0.000000e+00> : vector<512x32xf32>
    %2 = tpu.matmul %0, %1, %cst {dimension_numbers = #tpu.dot_dimension_numbers<[1], [0], [0], [1], [0, 0, 1, 1], [], []>} : vector<512x864xbf16>, vector<864x32xbf16>, vector<512x32xf32> -> vector<512x32xf32>
    %c0_3 = arith.constant 0 : index
    %c0_4 = arith.constant 0 : index
    %3 = vector.load %arg3[%c0_3, %c0_4] : memref<1x32xf32, #tpu.memory_space<vmem>>, vector<1x32xf32>
    %4 = vector.broadcast %3 : vector<1x32xf32> to vector<512x32xf32>
    %5 = arith.addf %2, %4 : vector<512x32xf32>
    %cst_5 = arith.constant 0.000000e+00 : f32
    %6 = vector.broadcast %cst_5 : f32 to vector<512x32xf32>
    %7 = arith.cmpf oge, %5, %6 : vector<512x32xf32>
    %cst_6 = arith.constant 0.00999999977 : f32
    %8 = vector.broadcast %cst_6 : f32 to vector<512x32xf32>
    %9 = arith.mulf %8, %5 : vector<512x32xf32>
    %10 = arith.select %7, %5, %9 : vector<512x32xi1>, vector<512x32xf32>
    %cst_7 = arith.constant dense<0.000000e+00> : vector<32xf32>
    %11 = vector.multi_reduction <add>, %10, %cst_7 [0] : vector<512x32xf32> to vector<32xf32>
    %12 = vector.shape_cast %11 : vector<32xf32> to vector<1x32xf32>
    %cst_8 = arith.constant 5.120000e+02 : f32
    %13 = vector.broadcast %cst_8 : f32 to vector<1x32xf32>
    %14 = arith.divf %12, %13 : vector<1x32xf32>
    %15 = vector.broadcast %14 : vector<1x32xf32> to vector<512x32xf32>
    %16 = arith.subf %10, %15 : vector<512x32xf32>
    %17 = arith.mulf %16, %16 : vector<512x32xf32>
    %cst_9 = arith.constant dense<0.000000e+00> : vector<32xf32>
    %18 = vector.multi_reduction <add>, %17, %cst_9 [0] : vector<512x32xf32> to vector<32xf32>
    %19 = vector.shape_cast %18 : vector<32xf32> to vector<1x32xf32>
    %cst_10 = arith.constant 5.120000e+02 : f32
    %20 = vector.broadcast %cst_10 : f32 to vector<1x32xf32>
    %21 = arith.divf %19, %20 : vector<1x32xf32>
    %22 = vector.broadcast %14 : vector<1x32xf32> to vector<512x32xf32>
    %23 = arith.subf %10, %22 : vector<512x32xf32>
    %cst_11 = arith.constant 9.99999974E-6 : f32
    %24 = vector.broadcast %cst_11 : f32 to vector<1x32xf32>
    %25 = arith.addf %21, %24 : vector<1x32xf32>
    %26 = math.rsqrt %25 : vector<1x32xf32>
    %27 = vector.broadcast %26 : vector<1x32xf32> to vector<512x32xf32>
    %28 = arith.mulf %23, %27 : vector<512x32xf32>
    %c0_12 = arith.constant 0 : index
    %c0_13 = arith.constant 0 : index
    %29 = vector.load %arg4[%c0_12, %c0_13] : memref<1x32xf32, #tpu.memory_space<vmem>>, vector<1x32xf32>
    %30 = vector.broadcast %29 : vector<1x32xf32> to vector<512x32xf32>
    %31 = arith.mulf %28, %30 : vector<512x32xf32>
    %c0_14 = arith.constant 0 : index
    %c0_15 = arith.constant 0 : index
    %32 = vector.load %arg5[%c0_14, %c0_15] : memref<1x32xf32, #tpu.memory_space<vmem>>, vector<1x32xf32>
    %33 = vector.broadcast %32 : vector<1x32xf32> to vector<512x32xf32>
    %34 = arith.addf %31, %33 : vector<512x32xf32>
    %c0_16 = arith.constant 0 : index
    %c0_17 = arith.constant 0 : index
    %35 = vector.load %arg6[%c0_16, %c0_17] : memref<512x32xf32, #tpu.memory_space<vmem>>, vector<512x32xf32>
    %36 = arith.addf %34, %35 : vector<512x32xf32>
    %c0_18 = arith.constant 0 : index
    %c0_19 = arith.constant 0 : index
    %37 = vector.load %arg7[%c0_18, %c0_19] : memref<512x32xf32, #tpu.memory_space<vmem>>, vector<512x32xf32>
    tpu.vector_store %arg7[%c0_18, %c0_19], %36 {strides = array<i32>} : memref<512x32xf32, #tpu.memory_space<vmem>>, vector<512x32xf32>,
    return
  }
  func.func @transform_0(%arg0: i32) -> (i32, i32) {
    %c0_i32 = arith.constant 0 : i32
    %c0_i32_0 = arith.constant 0 : i32
    %c0_i32_1 = arith.constant 0 : i32
    return %c0_i32, %c0_i32_0 : i32, i32
  }
  func.func @transform_1(%arg0: i32) -> (i32, i32) {
    %c0_i32 = arith.constant 0 : i32
    %c0_i32_0 = arith.constant 0 : i32
    %c0_i32_1 = arith.constant 0 : i32
    return %c0_i32, %c0_i32_0 : i32, i32
  }
  func.func @transform_2(%arg0: i32) -> (i32, i32) {
    %c0_i32 = arith.constant 0 : i32
    %c0_i32_0 = arith.constant 0 : i32
    %c0_i32_1 = arith.constant 0 : i32
    return %c0_i32, %c0_i32_0 : i32, i32
  }
  func.func @transform_3(%arg0: i32) -> (i32, i32) {
    %c0_i32 = arith.constant 0 : i32
    %c0_i32_0 = arith.constant 0 : i32
    %c0_i32_1 = arith.constant 0 : i32
    return %c0_i32, %c0_i32_0 : i32, i32
  }
  func.func @transform_4(%arg0: i32) -> (i32, i32) {
    %c0_i32 = arith.constant 0 : i32
    %c0_i32_0 = arith.constant 0 : i32
    %c0_i32_1 = arith.constant 0 : i32
    return %c0_i32, %c0_i32_0 : i32, i32
  }
  func.func @transform_5(%arg0: i32) -> (i32, i32) {
    %c0_i32 = arith.constant 0 : i32
    %c0_i32_0 = arith.constant 0 : i32
    %c0_i32_1 = arith.constant 0 : i32
    return %c0_i32, %c0_i32_0 : i32, i32
  }
  func.func @transform_6(%arg0: i32) -> (i32, i32) {
    %c0_i32 = arith.constant 0 : i32
    %c0_i32_0 = arith.constant 0 : i32
    %c0_i32_1 = arith.constant 0 : i32
    return %c0_i32, %c0_i32_0 : i32, i32
  }
}

</mosaic_0001>

<bundles_post_ra>
// kernel: block_fwd.2
= control target key start
LH: loop header
LB: loop body
LE: loop exit
PB: predicated region body
PF: predicated region fallthrough
CT: control target
= control target key end

     0   :  { %vm404_vm0 = vcmask 1045504   ;;  %vm307_vm1 = vcmask 883712   ;;  %vm889_vm5 = vcmask 261120   ;;  %s3745_s1 = inlined_call_operand.vmem [shape: bf16[108,32], index: 1, kind: input, shape index: {}]   ;;  %s3746_s0 = inlined_call_operand.vmem [shape: bf16[512,108], index: 0, kind: input, shape index: {}]   ;;  %s3747_s2 = inlined_call_operand.vmem [shape: f32[1,32], index: 2, kind: input, shape index: {}]   ;;  %s3748_s3 = inlined_call_operand.vmem [shape: f32[1,32], index: 3, kind: input, shape index: {}]   ;;  %s3749_s4 = inlined_call_operand.vmem [shape: f32[1,32], index: 4, kind: input, shape index: {}]   ;;  %s3750_s5 = inlined_call_operand.vmem [shape: f32[512,32], index: 5, kind: output, shape index: {}]  }
   0x1   :  { %v1770_v0 = vld [vmem:[%s3745_s1 + $0x30] sm:$0x3f]   ;;  %v1771_v1 = vld [vmem:[%s3745_s1 + $0x28] sm:$0xff]   ;;  %v1772_v3 = vld [vmem:[%s3745_s1 + $0x20] sm:$0xff]  }
   0x2   :  { %1768 = vmatprep.subr.msk.bf16.mxu0 %vm404_vm0, %v1770_v0  ;;  %v406_v2 = vsel %vm404_vm0, %v1770_v0, 0  ;;  %1769 = vmatprep.subr.msk.bf16.mxu1 %vm404_vm0, %v1770_v0  ;;  %v1777_v4 = vld [vmem:[%s3746_s0] sm:$0xff]   ;;  %v1773_v5 = vld [vmem:[%s3745_s1 + $0x18] sm:$0xff]   ;;  %v1774_v6 = vld [vmem:[%s3745_s1 + $0x10] sm:$0xff]  }
   0x3   :  { %1677 = vmatpush3.bf16.msra.mxu0 %v406_v2  ;;  %1761 = vmatpush3.bf16.msra.mxu1 %v406_v2  ;;  %v1775_v7 = vld [vmem:[%s3745_s1 + $0x8] sm:$0xff]   ;;  %v1776_v8 = vld [vmem:[%s3745_s1] sm:$0xff]   ;;  %v1779_v11 = vld [vmem:[%s3746_s0 + $0x10] sm:$0xff]  }
   0x4   :  { %1678 = vmatprep.subr.bf16.mxu0 %v1771_v1  ;;  %1755 = vmatprep.subr.bf16.mxu1 %v1771_v1  ;;  %v1792_v9 = vld [vmem:[%s3746_s0 + $0x80] sm:$0xff]   ;;  %v1778_v10 = vld [vmem:[%s3746_s0 + $0x8] sm:$0xff]   ;;  %v1795_v13 = vld [vmem:[%s3746_s0 + $0x90] sm:$0xff]  }
   0x5   :  { %1690 = vmatprep.mubr.msk.bf16.mxu0 %vm307_vm1, %v1777_v4  ;;  %1722 = vmatprep.mubr.msk.bf16.mxu1 %vm307_vm1, %v1792_v9  ;;  %v1794_v12 = vld [vmem:[%s3746_s0 + $0x88] sm:$0xff]   ;;  %v1780_v14 = vld [vmem:[%s3746_s0 + $0x18] sm:$0xff]   ;;  %v1781_v15 = vld [vmem:[%s3746_s0 + $0x20] sm:$0xff]  }
   0x6   :  { %v1796_v16 = vld [vmem:[%s3746_s0 + $0x98] sm:$0xff]   ;;  %v1797_v17 = vld [vmem:[%s3746_s0 + $0xa0] sm:$0xff]   ;;  %v1782_v18 = vld [vmem:[%s3746_s0 + $0x28] sm:$0xff]  }
   0x7   :  { %1679 = vmatpush3.bf16.msra.mxu0 %v1771_v1  ;;  %1762 = vmatpush3.bf16.msra.mxu1 %v1771_v1  ;;  %v1798_v19 = vld [vmem:[%s3746_s0 + $0xa8] sm:$0xff]   ;;  %v1783_v20 = vld [vmem:[%s3746_s0 + $0x30] sm:$0xff]   ;;  %v1784_v22 = vld [vmem:[%s3746_s0 + $0x38] sm:$0xff]  }
   0x8   :  { %1680 = vmatprep.subr.bf16.mxu0 %v1772_v3  ;;  %1756 = vmatprep.subr.bf16.mxu1 %v1772_v3  ;;  %v1799_v21 = vld [vmem:[%s3746_s0 + $0xb0] sm:$0xff]   ;;  %v1800_v23 = vld [vmem:[%s3746_s0 + $0xb8] sm:$0xff]   ;;  %v1785_v24 = vld [vmem:[%s3746_s0 + $0x40] sm:$0xff]  }
   0x9   :  { %v1801_v25 = vld [vmem:[%s3746_s0 + $0xc0] sm:$0xff]   ;;  %v1786_v26 = vld [vmem:[%s3746_s0 + $0x48] sm:$0xff]   ;;  %v1787_v28 = vld [vmem:[%s3746_s0 + $0x50] sm:$0xff]  }
   0xa   :  { %v1802_v27 = vld [vmem:[%s3746_s0 + $0xc8] sm:$0xff]   ;;  %v1803_v29 = vld [vmem:[%s3746_s0 + $0xd0] sm:$0xff]   ;;  %v1788_v30 = vld [vmem:[%s3746_s0 + $0x58] sm:$0xff]  }
   0xb   :  { %1681 = vmatpush3.bf16.msra.mxu0 %v1772_v3  ;;  %1763 = vmatpush3.bf16.msra.mxu1 %v1772_v3  ;;  %v1804_v31 = vld [vmem:[%s3746_s0 + $0xd8] sm:$0xff]   ;;  %v1789_v32 = vld [vmem:[%s3746_s0 + $0x60] sm:$0xff]   ;;  %v1790_v34 = vld [vmem:[%s3746_s0 + $0x68] sm:$0xff]  }
   0xc   :  { %1682 = vmatprep.subr.bf16.mxu0 %v1773_v5  ;;  %1757 = vmatprep.subr.bf16.mxu1 %v1773_v5  ;;  %v1805_v33 = vld [vmem:[%s3746_s0 + $0xe0] sm:$0xff]   ;;  %v1806_v35 = vld [vmem:[%s3746_s0 + $0xe8] sm:$0xff]   ;;  %v1791_v36 = vld [vmem:[%s3746_s0 + $0x70] sm:$0xff]  }
   0xd   :  { %v1807_v37 = vld [vmem:[%s3746_s0 + $0xf0] sm:$0xff]   ;;  %v1793_v38 = vld [vmem:[%s3746_s0 + $0x78] sm:$0xff]   ;;  %v1993_v41 = vld [vmem:[%s3747_s2] ss:$0 sm:$0xff] }
   0xe   :  { %v1808_v39 = vld [vmem:[%s3746_s0 + $0xf8] sm:$0xff]  }
   0xf   :  { %1683 = vmatpush3.bf16.msra.mxu0 %v1773_v5  ;;  %1764 = vmatpush3.bf16.msra.mxu1 %v1773_v5 }
  0x10   :  { %1684 = vmatprep.subr.bf16.mxu0 %v1774_v6  ;;  %1758 = vmatprep.subr.bf16.mxu1 %v1774_v6 }
  0x13   :  { %1685 = vmatpush3.bf16.msra.mxu0 %v1774_v6  ;;  %1765 = vmatpush3.bf16.msra.mxu1 %v1774_v6 }
  0x14   :  { %1686 = vmatprep.subr.bf16.mxu0 %v1775_v7  ;;  %1759 = vmatprep.subr.bf16.mxu1 %v1775_v7 }
  0x17   :  { %1687 = vmatpush3.bf16.msra.mxu0 %v1775_v7  ;;  %1766 = vmatpush3.bf16.msra.mxu1 %v1775_v7 }
  0x18   :  { %1688 = vmatprep.subr.bf16.mxu0 %v1776_v8  ;;  %1760 = vmatprep.subr.bf16.mxu1 %v1776_v8 }
  0x1b   :  { %1689 = vmatpush3.bf16.msra.mxu0 %v1776_v8  ;;  %1767 = vmatpush3.bf16.msra.mxu1 %v1776_v8 }
  0x1e   :  { %1691 = vmatmul.mubr.msk.bf16.vlgmr.msra.gmra.mxu0 %vm307_vm1, %v1778_v10  ;;  %1723 = vmatmul.mubr.msk.bf16.vlgmr.msra.gmra.mxu1 %vm307_vm1, %v1794_v12 }
  0x1f   :  { %1694 = vmatprep.mubr.msk.bf16.mxu0 %vm307_vm1, %v1779_v11  ;;  %1726 = vmatprep.mubr.msk.bf16.mxu1 %vm307_vm1, %v1795_v13 }
  0x26   :  { %1695 = vmatmul.mubr.msk.bf16.gmra.mxu0 %vm307_vm1, %v1780_v14  ;;  %1727 = vmatmul.mubr.msk.bf16.gmra.mxu1 %vm307_vm1, %v1796_v16 }
  0x27   :  { %1698 = vmatprep.mubr.msk.bf16.mxu0 %vm307_vm1, %v1781_v15  ;;  %1730 = vmatprep.mubr.msk.bf16.mxu1 %vm307_vm1, %v1797_v17 }
  0x2e   :  { %1699 = vmatmul.mubr.msk.bf16.gmra.mxu0 %vm307_vm1, %v1782_v18  ;;  %1731 = vmatmul.mubr.msk.bf16.gmra.mxu1 %vm307_vm1, %v1798_v19 }
  0x2f   :  { %1702 = vmatprep.mubr.msk.bf16.mxu0 %vm307_vm1, %v1783_v20  ;;  %1734 = vmatprep.mubr.msk.bf16.mxu1 %vm307_vm1, %v1799_v21 }
  0x36   :  { %1703 = vmatmul.mubr.msk.bf16.gmra.mxu0 %vm307_vm1, %v1784_v22  ;;  %1735 = vmatmul.mubr.msk.bf16.gmra.mxu1 %vm307_vm1, %v1800_v23 }
  0x37   :  { %1706 = vmatprep.mubr.msk.bf16.mxu0 %vm307_vm1, %v1785_v24  ;;  %1738 = vmatprep.mubr.msk.bf16.mxu1 %vm307_vm1, %v1801_v25 }
  0x3e   :  { %1707 = vmatmul.mubr.msk.bf16.gmra.mxu0 %vm307_vm1, %v1786_v26  ;;  %1739 = vmatmul.mubr.msk.bf16.gmra.mxu1 %vm307_vm1, %v1802_v27 }
  0x3f   :  { %1710 = vmatprep.mubr.msk.bf16.mxu0 %vm307_vm1, %v1787_v28  ;;  %1742 = vmatprep.mubr.msk.bf16.mxu1 %vm307_vm1, %v1803_v29 }
  0x46   :  { %1711 = vmatmul.mubr.msk.bf16.gmra.mxu0 %vm307_vm1, %v1788_v30  ;;  %1743 = vmatmul.mubr.msk.bf16.gmra.mxu1 %vm307_vm1, %v1804_v31 }
  0x47   :  { %1714 = vmatprep.mubr.msk.bf16.mxu0 %vm307_vm1, %v1789_v32  ;;  %1746 = vmatprep.mubr.msk.bf16.mxu1 %vm307_vm1, %v1805_v33 }
  0x4e   :  { %1715 = vmatmul.mubr.msk.bf16.gmra.mxu0 %vm307_vm1, %v1790_v34  ;;  %1747 = vmatmul.mubr.msk.bf16.gmra.mxu1 %vm307_vm1, %v1806_v35 }
  0x4f   :  { %1718 = vmatprep.mubr.msk.bf16.mxu0 %vm307_vm1, %v1791_v36  ;;  %1750 = vmatprep.mubr.msk.bf16.mxu1 %vm307_vm1, %v1807_v37 }
  0x56   :  { %1719 = vmatmul.mubr.msk.bf16.gmra.mxu0 %vm307_vm1, %v1793_v38  ;;  %1751 = vmatmul.mubr.msk.bf16.gmra.mxu1 %vm307_vm1, %v1808_v39 }
  0xde   :  { %v1692_v40 = vpop.f32.mrf.mxu0  ;;  %v1995_v42 = vpop.f32.mrf.mxu1 }
  0xdf   :  { %v451_v44 = vadd.f32 %v1692_v40, %v1993_v41 }
  0xe0   :  { %v442_v43 = vpop.f32.mrf.mxu0  ;;  %v1999_v46 = vpop.f32.mrf.mxu1 }
  0xe1   :  { %v443_v45 = vadd.f32 %v1993_v41, %v442_v43  ;;  %v763_v51 = vmul.f32 0.01, %v451_v44  ;;  %vm699_vm3 = vcmp.ge.f32.partialorder %v451_v44, 0.0 }
  0xe2   :  { %v1693_v47 = vpop.f32.mrf.mxu0  ;;  %v2003_v53 = vpop.f32.mrf.mxu1 }
  0xe3   :  { %v761_v48 = vmul.f32 0.01, %v443_v45  ;;  %v454_v49 = vadd.f32 %v1693_v47, %v1993_v41  ;;  %vm697_vm2 = vcmp.ge.f32.partialorder %v443_v45, 0.0  ;;  %v2007_v59 = vsel %vm699_vm3, %v451_v44, %v763_v51 }
  0xe4   :  { %v445_v50 = vpop.f32.mrf.mxu0  ;;  %v2013_v63 = vpop.f32.mrf.mxu1  ;;  %v893_v6 = vsel %vm889_vm5, %v2007_v59, 0.0 }
  0xe5   :  { %v446_v52 = vadd.f32 %v1993_v41, %v445_v50  ;;  %v2005_v55 = vsel %vm697_vm2, %v443_v45, %v761_v48  ;;  %v764_v56 = vmul.f32 0.01, %v454_v49  ;;  %vm700_vm6 = vcmp.ge.f32.partialorder %v454_v49, 0.0 }
  0xe6   :  { %v1696_v54 = vpop.f32.mrf.mxu0  ;;  %v890_v0 = vsel %vm889_vm5, %v2005_v55, 0.0  ;;  %v2027_v13 = vpop.f32.mrf.mxu1 }
  0xe7   :  { %vm698_vm4 = vcmp.ge.f32.partialorder %v446_v52, 0.0  ;;  %v762_v57 = vmul.f32 0.01, %v446_v52  ;;  %v467_v61 = vadd.f32 %v1696_v54, %v1993_v41  ;;  %v2019_v3 = vsel %vm700_vm6, %v454_v49, %v764_v56 }
  0xe8   :  { %v458_v58 = vpop.f32.mrf.mxu0  ;;  %v895_v14 = vsel %vm889_vm5, %v2019_v3, 0.0  ;;  %v2037_v24 = vpop.f32.mrf.mxu1 }
  0xe9   :  { %v2009_v60 = vsel %vm698_vm4, %v446_v52, %v762_v57  ;;  %v459_v62 = vadd.f32 %v1993_v41, %v458_v58  ;;  %v767_v10 = vmul.f32 0.01, %v467_v61  ;;  %vm703_vm8 = vcmp.ge.f32.partialorder %v467_v61, 0.0 }
  0xea   :  { %v891_v1 = vsel %vm889_vm5, %v2009_v60, 0.0  ;;  %v1697_v2 = vpop.f32.mrf.mxu0  ;;  %v2048_v36 = vpop.f32.mrf.mxu1 }
  0xeb   :  { %v892_v4 = vadd.f32 %v891_v1, %v890_v0  ;;  %vm701_vm7 = vcmp.ge.f32.partialorder %v459_v62, 0.0  ;;  %v765_v5 = vmul.f32 0.01, %v459_v62  ;;  %v470_v7 = vadd.f32 %v1697_v2, %v1993_v41 }
  0xec   :  { %v461_v8 = vpop.f32.mrf.mxu0  ;;  %v2033_v21 = vsel %vm703_vm8, %v467_v61, %v767_v10  ;;  %v2059_v54 = vpop.f32.mrf.mxu1 }
  0xed   :  { %v894_v9 = vadd.f32 %v893_v6, %v892_v4  ;;  %v2024_v11 = vsel %vm701_vm7, %v459_v62, %v765_v5  ;;  %v462_v12 = vadd.f32 %v1993_v41, %v461_v8  ;;  %v768_v17 = vmul.f32 0.01, %v470_v7 }
  0xee   :  { %v1700_v15 = vpop.f32.mrf.mxu0  ;;  %v897_v19 = vsel %vm889_vm5, %v2024_v11, 0.0  ;;  %vm704_vm10 = vcmp.ge.f32.partialorder %v470_v7, 0.0  ;;  %v901_v31 = vsel %vm889_vm5, %v2033_v21, 0.0  ;;  %v2073_v8 = vpop.f32.mrf.mxu1 }
  0xef   :  { %v896_v16 = vadd.f32 %v895_v14, %v894_v9  ;;  %vm702_vm9 = vcmp.ge.f32.partialorder %v462_v12, 0.0  ;;  %v766_v18 = vmul.f32 0.01, %v462_v12  ;;  %v483_v26 = vadd.f32 %v1700_v15, %v1993_v41 }
  0xf0   :  { %v474_v20 = vpop.f32.mrf.mxu0  ;;  %v2043_v29 = vsel %vm704_vm10, %v470_v7, %v768_v17 }
  0xf1   :  { %v898_v22 = vadd.f32 %v897_v19, %v896_v16  ;;  %v2035_v23 = vsel %vm702_vm9, %v462_v12, %v766_v18  ;;  %v475_v27 = vadd.f32 %v1993_v41, %v474_v20  ;;  %v903_v37 = vsel %vm889_vm5, %v2043_v29, 0.0 }
  0xf2   :  { %v899_v25 = vsel %vm889_vm5, %v2035_v23, 0.0  ;;  %v1701_v28 = vpop.f32.mrf.mxu0  ;;  %v771_v38 = vmul.f32 0.01, %v483_v26  ;;  %vm707_vm12 = vcmp.ge.f32.partialorder %v483_v26, 0.0 }
  0xf3   :  { %v900_v30 = vadd.f32 %v899_v25, %v898_v22  ;;  %vm705_vm11 = vcmp.ge.f32.partialorder %v475_v27, 0.0  ;;  %v769_v32 = vmul.f32 0.01, %v475_v27  ;;  %v486_v33 = vadd.f32 %v1701_v28, %v1993_v41  ;;  %v2085_v25 = vpop.f32.mrf.mxu1 }
  0xf4   :  { %v477_v34 = vpop.f32.mrf.mxu0  ;;  %v2061_v56 = vsel %vm707_vm12, %v483_v26, %v771_v38 }
  0xf5   :  { %v902_v35 = vadd.f32 %v901_v31, %v900_v30  ;;  %v2052_v39 = vsel %vm705_vm11, %v475_v27, %v769_v32  ;;  %v478_v40 = vadd.f32 %v1993_v41, %v477_v34  ;;  %v772_v47 = vmul.f32 0.01, %v486_v33 }
  0xf6   :  { %v1704_v43 = vpop.f32.mrf.mxu0  ;;  %v905_v45 = vsel %vm889_vm5, %v2052_v39, 0.0  ;;  %vm708_vm14 = vcmp.ge.f32.partialorder %v486_v33, 0.0  ;;  %v909_v5 = vsel %vm889_vm5, %v2061_v56, 0.0 }
  0xf7   :  { %v904_v44 = vadd.f32 %v903_v37, %v902_v35  ;;  %vm706_vm13 = vcmp.ge.f32.partialorder %v478_v40, 0.0  ;;  %v770_v48 = vmul.f32 0.01, %v478_v40  ;;  %v499_v51 = vadd.f32 %v1704_v43, %v1993_v41  ;;  %v2097_v43 = vpop.f32.mrf.mxu1 }
  0xf8   :  { %v490_v49 = vpop.f32.mrf.mxu0  ;;  %v2067_v0 = vsel %vm708_vm14, %v486_v33, %v772_v47 }
  0xf9   :  { %v906_v50 = vadd.f32 %v905_v45, %v904_v44  ;;  %v491_v52 = vadd.f32 %v1993_v41, %v490_v49  ;;  %v2063_v57 = vsel %vm706_vm13, %v478_v40, %v770_v48  ;;  %v775_v6 = vmul.f32 0.01, %v499_v51 }
  0xfa   :  { %v1705_v58 = vpop.f32.mrf.mxu0  ;;  %v907_v61 = vsel %vm889_vm5, %v2063_v57, 0.0  ;;  %vm711_vm0 = vcmp.ge.f32.partialorder %v499_v51, 0.0  ;;  %v911_v14 = vsel %vm889_vm5, %v2067_v0, 0.0 }
  0xfb   :  { %vm709_vm15 = vcmp.ge.f32.partialorder %v491_v52, 0.0  ;;  %v773_v62 = vmul.f32 0.01, %v491_v52  ;;  %v908_v1 = vadd.f32 %v907_v61, %v906_v50  ;;  %v502_v2 = vadd.f32 %v1705_v58, %v1993_v41 }
  0xfc   :  { %v493_v4 = vpop.f32.mrf.mxu0  ;;  %v2079_v19 = vsel %vm711_vm0, %v499_v51, %v775_v6 }
  0xfd   :  { %v494_v7 = vadd.f32 %v1993_v41, %v493_v4  ;;  %v910_v9 = vadd.f32 %v909_v5, %v908_v1  ;;  %v2075_v10 = vsel %vm709_vm15, %v491_v52, %v773_v62  ;;  %v776_v15 = vmul.f32 0.01, %v502_v2 }
  0xfe   :  { %v1708_v12 = vpop.f32.mrf.mxu0  ;;  %vm712_vm2 = vcmp.ge.f32.partialorder %v502_v2, 0.0  ;;  %v913_v20 = vsel %vm889_vm5, %v2075_v10, 0.0  ;;  %v917_v38 = vsel %vm889_vm5, %v2079_v19, 0.0 }
  0xff   :  { %vm710_vm1 = vcmp.ge.f32.partialorder %v494_v7, 0.0  ;;  %v774_v16 = vmul.f32 0.01, %v494_v7  ;;  %v912_v17 = vadd.f32 %v911_v14, %v910_v9  ;;  %v515_v28 = vadd.f32 %v1708_v12, %v1993_v41 }
 0x100   :  { %v506_v18 = vpop.f32.mrf.mxu0  ;;  %v2091_v32 = vsel %vm712_vm2, %v502_v2, %v776_v15  ;;  %v2108_v2 = vpop.f32.mrf.mxu1 }
 0x101   :  { %v2083_v22 = vsel %vm710_vm1, %v494_v7, %v774_v16  ;;  %v914_v26 = vadd.f32 %v913_v20, %v912_v17  ;;  %v507_v30 = vadd.f32 %v1993_v41, %v506_v18  ;;  %v779_v45 = vmul.f32 0.01, %v515_v28 }
 0x102   :  { %v915_v27 = vsel %vm889_vm5, %v2083_v22, 0.0  ;;  %v1709_v31 = vpop.f32.mrf.mxu0  ;;  %v919_v49 = vsel %vm889_vm5, %v2091_v32, 0.0  ;;  %vm715_vm4 = vcmp.ge.f32.partialorder %v515_v28, 0.0  ;;  %v2120_v20 = vpop.f32.mrf.mxu1 }
 0x103   :  { %v916_v33 = vadd.f32 %v915_v27, %v914_v26  ;;  %vm713_vm3 = vcmp.ge.f32.partialorder %v507_v30, 0.0  ;;  %v777_v34 = vmul.f32 0.01, %v507_v30  ;;  %v518_v35 = vadd.f32 %v1709_v31, %v1993_v41 }
 0x104   :  { %v509_v37 = vpop.f32.mrf.mxu0  ;;  %v2110_v4 = vsel %vm715_vm4, %v515_v28, %v779_v45 }
 0x105   :  { %v510_v40 = vadd.f32 %v1993_v41, %v509_v37  ;;  %v918_v44 = vadd.f32 %v917_v38, %v916_v33  ;;  %v2099_v47 = vsel %vm713_vm3, %v507_v30, %v777_v34  ;;  %v780_v52 = vmul.f32 0.01, %v518_v35 }
 0x106   :  { %v1712_v48 = vpop.f32.mrf.mxu0  ;;  %v921_v61 = vsel %vm889_vm5, %v2099_v47, 0.0  ;;  %vm716_vm7 = vcmp.ge.f32.partialorder %v518_v35, 0.0  ;;  %v925_v18 = vsel %vm889_vm5, %v2110_v4, 0.0 }
 0x107   :  { %vm714_vm6 = vcmp.ge.f32.partialorder %v510_v40, 0.0  ;;  %v778_v50 = vmul.f32 0.01, %v510_v40  ;;  %v920_v51 = vadd.f32 %v919_v49, %v918_v44  ;;  %v531_v7 = vadd.f32 %v1712_v48, %v1993_v41  ;;  %v2131_v48 = vpop.f32.mrf.mxu1 }
 0x108   :  { %v522_v58 = vpop.f32.mrf.mxu0  ;;  %v2115_v14 = vsel %vm716_vm7, %v518_v35, %v780_v52 }
 0x109   :  { %v2105_v62 = vsel %vm714_vm6, %v510_v40, %v778_v50  ;;  %v523_v1 = vadd.f32 %v1993_v41, %v522_v58  ;;  %v922_v5 = vadd.f32 %v921_v61, %v920_v51  ;;  %v783_v27 = vmul.f32 0.01, %v531_v7 }
 0x10a   :  { %v923_v6 = vsel %vm889_vm5, %v2105_v62, 0.0  ;;  %v1713_v9 = vpop.f32.mrf.mxu0  ;;  %v927_v33 = vsel %vm889_vm5, %v2115_v14, 0.0  ;;  %vm719_vm9 = vcmp.ge.f32.partialorder %v531_v7, 0.0 }
 0x10b   :  { %vm717_vm8 = vcmp.ge.f32.partialorder %v523_v1, 0.0  ;;  %v781_v12 = vmul.f32 0.01, %v523_v1  ;;  %v924_v15 = vadd.f32 %v923_v6, %v922_v5  ;;  %v534_v16 = vadd.f32 %v1713_v9, %v1993_v41 }
 0x10c   :  { %v525_v17 = vpop.f32.mrf.mxu0  ;;  %v2133_v49 = vsel %vm719_vm9, %v531_v7, %v783_v27 }
 0x10d   :  { %v926_v26 = vadd.f32 %v925_v18, %v924_v15  ;;  %v2122_v28 = vsel %vm717_vm8, %v523_v1, %v781_v12  ;;  %v526_v30 = vadd.f32 %v1993_v41, %v525_v17  ;;  %v784_v35 = vmul.f32 0.01, %v534_v16  ;;  %v2145_v17 = vpop.f32.mrf.mxu1 }
 0x10e   :  { %v1716_v31 = vpop.f32.mrf.mxu0  ;;  %v929_v40 = vsel %vm889_vm5, %v2122_v28, 0.0  ;;  %vm720_vm11 = vcmp.ge.f32.partialorder %v534_v16, 0.0  ;;  %v933_v12 = vsel %vm889_vm5, %v2133_v49, 0.0 }
 0x10f   :  { %v928_v34 = vadd.f32 %v927_v33, %v926_v26  ;;  %vm718_vm10 = vcmp.ge.f32.partialorder %v526_v30, 0.0  ;;  %v782_v37 = vmul.f32 0.01, %v526_v30  ;;  %v547_v44 = vadd.f32 %v1716_v31, %v1993_v41 }
 0x110   :  { %v538_v38 = vpop.f32.mrf.mxu0  ;;  %v2139_v1 = vsel %vm720_vm11, %v534_v16, %v784_v35 }
 0x111   :  { %v539_v45 = vadd.f32 %v1993_v41, %v538_v38  ;;  %v930_v50 = vadd.f32 %v929_v40, %v928_v34  ;;  %v2135_v51 = vsel %vm718_vm10, %v526_v30, %v782_v37  ;;  %v787_v7 = vmul.f32 0.01, %v547_v44  ;;  %v2157_v40 = vpop.f32.mrf.mxu1 }
 0x112   :  { %v1717_v52 = vpop.f32.mrf.mxu0  ;;  %v931_v58 = vsel %vm889_vm5, %v2135_v51, 0.0  ;;  %vm723_vm13 = vcmp.ge.f32.partialorder %v547_v44, 0.0  ;;  %v935_v16 = vsel %vm889_vm5, %v2139_v1, 0.0 }
 0x113   :  { %vm721_vm12 = vcmp.ge.f32.partialorder %v539_v45, 0.0  ;;  %v785_v61 = vmul.f32 0.01, %v539_v45  ;;  %v932_v5 = vadd.f32 %v931_v58, %v930_v50  ;;  %v550_v6 = vadd.f32 %v1717_v52, %v1993_v41 }
 0x114   :  { %v541_v9 = vpop.f32.mrf.mxu0  ;;  %v2151_v35 = vsel %vm723_vm13, %v547_v44, %v787_v7 }
 0x115   :  { %v542_v15 = vadd.f32 %v1993_v41, %v541_v9  ;;  %v934_v18 = vadd.f32 %v933_v12, %v932_v5  ;;  %v2147_v26 = vsel %vm721_vm12, %v539_v45, %v785_v61  ;;  %v788_v30 = vmul.f32 0.01, %v550_v6 }
 0x116   :  { %v1720_v27 = vpop.f32.mrf.mxu0  ;;  %vm724_vm15 = vcmp.ge.f32.partialorder %v550_v6, 0.0  ;;  %v937_v37 = vsel %vm889_vm5, %v2147_v26, 0.0 }
 0x117   :  { %vm722_vm14 = vcmp.ge.f32.partialorder %v542_v15, 0.0  ;;  %v786_v31 = vmul.f32 0.01, %v542_v15  ;;  %v936_v33 = vadd.f32 %v935_v16, %v934_v18  ;;  %v563_v52 = vadd.f32 %v1720_v27, %v1993_v41  ;;  %v2169_v16 = vpop.f32.mrf.mxu1 }
 0x118   :  { %v554_v34 = vpop.f32.mrf.mxu0  ;;  %v2163_v5 = vsel %vm724_vm15, %v550_v6, %v788_v30  ;;  %v571_v6 = vadd.f32 %v1993_v41, %v1999_v46 }
 0x119   :  { %v2155_v38 = vsel %vm722_vm14, %v542_v15, %v786_v31  ;;  %v938_v45 = vadd.f32 %v937_v37, %v936_v33  ;;  %v555_v58 = vadd.f32 %v1993_v41, %v554_v34  ;;  %v941_v15 = vsel %vm889_vm5, %v2151_v35, 0.0  ;;  %v2185_v46 = vpop.f32.mrf.mxu1 }
 0x11a   :  { %v939_v50 = vsel %vm889_vm5, %v2155_v38, 0.0  ;;  %v1721_v61 = vpop.f32.mrf.mxu0  ;;  %v791_v27 = vmul.f32 0.01, %v563_v52  ;;  %v943_v30 = vsel %vm889_vm5, %v2163_v5, 0.0  ;;  %vm727_vm1 = vcmp.ge.f32.partialorder %v563_v52, 0.0 }
 0x11b   :  { %v940_v44 = vadd.f32 %v939_v50, %v938_v45  ;;  %vm725_vm0 = vcmp.ge.f32.partialorder %v555_v58, 0.0  ;;  %v789_v9 = vmul.f32 0.01, %v555_v58  ;;  %v566_v12 = vadd.f32 %v1721_v61, %v1993_v41 }
 0x11c   :  { %v557_v7 = vpop.f32.mrf.mxu0  ;;  %v574_v50 = vadd.f32 %v1993_v41, %v2013_v63  ;;  %v579_v61 = vadd.f32 %v1995_v42, %v1993_v41  ;;  %vm729_vm4 = vcmp.ge.f32.partialorder %v571_v6, 0.0  ;;  %v582_v42 = vadd.f32 %v2003_v53, %v1993_v41 }
 0x11d   :  { %v558_v18 = vadd.f32 %v1993_v41, %v557_v7  ;;  %v942_v31 = vadd.f32 %v941_v15, %v940_v44  ;;  %v2171_v33 = vsel %vm725_vm0, %v555_v58, %v789_v9  ;;  %v792_v45 = vmul.f32 0.01, %v566_v12 }
 0x11e   :  { %3786 = vst [vmem:[#allocation2_spill] sm:$0xff] %v2171_v33  ;;  %v945_v58 = vsel %vm889_vm5, %v2171_v33, 0.0  ;;  %vm728_vm3 = vcmp.ge.f32.partialorder %v566_v12, 0.0  ;;  %v2187_v9 = vsel %vm727_vm1, %v563_v52, %v791_v27  ;;  %v793_v15 = vmul.f32 0.01, %v571_v6 }
 0x11f   :  { %vm726_vm2 = vcmp.ge.f32.partialorder %v558_v18, 0.0  ;;  %v790_v34 = vmul.f32 0.01, %v558_v18  ;;  %v944_v37 = vadd.f32 %v943_v30, %v942_v31  ;;  %3787 = vst [vmem:[#allocation3_spill] sm:$0xff] %v2187_v9  ;;  %v2191_v63 = vsel %vm728_vm3, %v566_v12, %v792_v45 }
 0x120   :  { %v794_v33 = vmul.f32 0.01, %v574_v50  ;;  %vm730_vm6 = vcmp.ge.f32.partialorder %v574_v50, 0.0  ;;  %v795_v52 = vmul.f32 0.01, %v579_v61  ;;  %v2199_v27 = vsel %vm729_vm4, %v571_v6, %v793_v15 }
 0x121   :  { %v2183_v44 = vsel %vm726_vm2, %v558_v18, %v790_v34  ;;  %v946_v7 = vadd.f32 %v945_v58, %v944_v37  ;;  %v949_v18 = vsel %vm889_vm5, %v2187_v9, 0.0  ;;  %v2197_v34 = vpop.f32.mrf.mxu1  ;;  %v587_v58 = vadd.f32 %v1993_v41, %v2037_v24 }
 0x122   :  { %v947_v31 = vsel %vm889_vm5, %v2183_v44, 0.0  ;;  %vm731_vm7 = vcmp.ge.f32.partialorder %v579_v61, 0.0  ;;  %v951_v12 = vsel %vm889_vm5, %v2191_v63, 0.0  ;;  %v796_v53 = vmul.f32 0.01, %v582_v42 }
 0x123   :  { %v948_v30 = vadd.f32 %v947_v31, %v946_v7  ;;  %v2205_v45 = vsel %vm730_vm6, %v574_v50, %v794_v33  ;;  %v590_v31 = vadd.f32 %v1993_v41, %v2059_v54  ;;  %v953_v9 = vsel %vm889_vm5, %v2199_v27, 0.0  ;;  %v2211_v6 = vpop.f32.mrf.mxu1 }
 0x124   :  { %3788 = vst [vmem:[#allocation4_spill] sm:$0xff] %v2205_v45  ;;  %vm732_vm8 = vcmp.ge.f32.partialorder %v582_v42, 0.0  ;;  %v2213_v15 = vsel %vm731_vm7, %v579_v61, %v795_v52  ;;  %v955_v33 = vsel %vm889_vm5, %v2205_v45, 0.0  ;;  %vm733_vm9 = vcmp.ge.f32.partialorder %v587_v58, 0.0 }
 0x125   :  { %v950_v37 = vadd.f32 %v949_v18, %v948_v30  ;;  %v595_v30 = vadd.f32 %v2027_v13, %v1993_v41  ;;  %v797_v18 = vmul.f32 0.01, %v587_v58  ;;  %v2219_v50 = vsel %vm732_vm8, %v582_v42, %v796_v53 }
 0x126   :  { %3789 = vst [vmem:[#allocation5_spill] sm:$0xff] %v2219_v50  ;;  %v957_v61 = vsel %vm889_vm5, %v2213_v15, 0.0  ;;  %vm734_vm10 = vcmp.ge.f32.partialorder %v590_v31, 0.0  ;;  %v603_v45 = vadd.f32 %v1993_v41, %v2085_v25  ;;  %v959_v42 = vsel %vm889_vm5, %v2219_v50, 0.0 }
 0x127   :  { %v952_v7 = vadd.f32 %v951_v12, %v950_v37  ;;  %v598_v37 = vadd.f32 %v2048_v36, %v1993_v41  ;;  %v798_v12 = vmul.f32 0.01, %v590_v31  ;;  %v799_v13 = vmul.f32 0.01, %v595_v30 }
 0x128   :  { %vm735_vm11 = vcmp.ge.f32.partialorder %v595_v30, 0.0  ;;  %v801_v50 = vmul.f32 0.01, %v603_v45  ;;  %vm737_vm13 = vcmp.ge.f32.partialorder %v603_v45, 0.0 }
 0x129   :  { %v954_v24 = vadd.f32 %v953_v9, %v952_v7  ;;  %v2225_v9 = vpop.f32.mrf.mxu1  ;;  %v2227_v7 = vsel %vm733_vm9, %v587_v58, %v797_v18  ;;  %v800_v36 = vmul.f32 0.01, %v598_v37  ;;  %vm736_vm12 = vcmp.ge.f32.partialorder %v598_v37, 0.0 }
 0x12a   :  { %v2241_v18 = vsel %vm735_vm11, %v595_v30, %v799_v13 }
 0x12b   :  { %v956_v54 = vadd.f32 %v955_v33, %v954_v24  ;;  %v2233_v24 = vsel %vm734_vm10, %v590_v31, %v798_v12  ;;  %v606_v33 = vadd.f32 %v1993_v41, %v2108_v2  ;;  %v2239_v58 = vpop.f32.mrf.mxu1  ;;  %v2247_v12 = vsel %vm736_vm12, %v598_v37, %v800_v36 }
 0x12c   :  { %3790 = vst [vmem:[#allocation6_spill] sm:$0xff] %v2233_v24  ;;  %v963_v31 = vsel %vm889_vm5, %v2233_v24, 0.0  ;;  %3791 = vst [vmem:[#allocation7_spill] sm:$0xff] %v2247_v12  ;;  %v965_v30 = vsel %vm889_vm5, %v2241_v18, 0.0  ;;  %v619_v24 = vadd.f32 %v1993_v41, %v2131_v48  ;;  %v967_v37 = vsel %vm889_vm5, %v2247_v12, 0.0 }
 0x12d   :  { %v958_v52 = vadd.f32 %v957_v61, %v956_v54  ;;  %v961_v54 = vsel %vm889_vm5, %v2227_v7, 0.0  ;;  %v611_v61 = vadd.f32 %v2073_v8, %v1993_v41  ;;  %vm738_vm14 = vcmp.ge.f32.partialorder %v606_v33, 0.0  ;;  %v2253_v13 = vpop.f32.mrf.mxu1 }
 0x12e   :  { %v627_v48 = vadd.f32 %v2120_v20, %v1993_v41  ;;  %v805_v12 = vmul.f32 0.01, %v619_v24  ;;  %vm741_vm1 = vcmp.ge.f32.partialorder %v619_v24, 0.0 }
 0x12f   :  { %v960_v53 = vadd.f32 %v959_v42, %v958_v52  ;;  %v614_v52 = vadd.f32 %v2097_v43, %v1993_v41  ;;  %v802_v42 = vmul.f32 0.01, %v606_v33  ;;  %v803_v8 = vmul.f32 0.01, %v611_v61 }
 0x130   :  { %vm739_vm15 = vcmp.ge.f32.partialorder %v611_v61, 0.0  ;;  %v807_v20 = vmul.f32 0.01, %v627_v48  ;;  %vm743_vm3 = vcmp.ge.f32.partialorder %v627_v48, 0.0 }
 0x131   :  { %v962_v25 = vadd.f32 %v961_v54, %v960_v53  ;;  %v2255_v54 = vsel %vm737_vm13, %v603_v45, %v801_v50  ;;  %v804_v43 = vmul.f32 0.01, %v614_v52  ;;  %vm740_vm0 = vcmp.ge.f32.partialorder %v614_v52, 0.0  ;;  %v653_v45 = vpop.f32.mrf.mxu1 }
 0x132   :  { %v2267_v50 = vsel %vm739_vm15, %v611_v61, %v803_v8 }
 0x133   :  { %v964_v2 = vadd.f32 %v963_v31, %v962_v25  ;;  %v2261_v25 = vsel %vm738_vm14, %v606_v33, %v802_v42  ;;  %v622_v31 = vadd.f32 %v1993_v41, %v2157_v40  ;;  %v2273_v33 = vsel %vm740_vm0, %v614_v52, %v804_v43  ;;  %v2279_v8 = vpop.f32.mrf.mxu1 }
 0x134   :  { %3792 = vst [vmem:[#allocation8_spill] sm:$0xff] %v2261_v25  ;;  %3793 = vst [vmem:[#allocation9_spill] sm:$0xff] %v2273_v33  ;;  %v630_v40 = vadd.f32 %v2145_v17, %v1993_v41  ;;  %v973_v61 = vsel %vm889_vm5, %v2267_v50, 0.0  ;;  %v975_v52 = vsel %vm889_vm5, %v2273_v33, 0.0 }
 0x135   :  { %v966_v53 = vadd.f32 %v965_v30, %v964_v2  ;;  %v969_v2 = vsel %vm889_vm5, %v2255_v54, 0.0  ;;  %vm742_vm2 = vcmp.ge.f32.partialorder %v622_v31, 0.0 }
 0x136   :  { %v808_v17 = vmul.f32 0.01, %v630_v40  ;;  %vm744_vm4 = vcmp.ge.f32.partialorder %v630_v40, 0.0 }
 0x137   :  { %v968_v36 = vadd.f32 %v967_v37, %v966_v53  ;;  %v971_v53 = vsel %vm889_vm5, %v2261_v25, 0.0  ;;  %v806_v37 = vmul.f32 0.01, %v622_v31  ;;  %v635_v25 = vadd.f32 %v1993_v41, %v2185_v46 }
 0x138   :  { %v643_v46 = vadd.f32 %v2169_v16, %v1993_v41 }
 0x139   :  { %v970_v30 = vadd.f32 %v969_v2, %v968_v36  ;;  %v2281_v2 = vsel %vm741_vm1, %v619_v24, %v805_v12  ;;  %v666_v24 = vpop.f32.mrf.mxu1  ;;  %v2293_v12 = vsel %vm743_vm3, %v627_v48, %v807_v20  ;;  %v809_v33 = vmul.f32 0.01, %v635_v25 }
 0x13a   :  { %3795 = vst [vmem:[#allocation11_spill] sm:$0xff] %v2293_v12  ;;  %vm745_vm6 = vcmp.ge.f32.partialorder %v635_v25, 0.0  ;;  %v981_v48 = vsel %vm889_vm5, %v2293_v12, 0.0  ;;  %vm747_vm8 = vcmp.ge.f32.partialorder %v643_v46, 0.0 }
 0x13b   :  { %v972_v42 = vadd.f32 %v971_v53, %v970_v30  ;;  %v2287_v30 = vsel %vm742_vm2, %v622_v31, %v806_v37  ;;  %v638_v53 = vadd.f32 %v1993_v41, %v2211_v6  ;;  %v2299_v31 = vsel %vm744_vm4, %v630_v40, %v808_v17  ;;  %v1749_v20 = vpop.f32.mrf.mxu1 }
 0x13c   :  { %3794 = vst [vmem:[#allocation10_spill] sm:$0xff] %v2287_v30  ;;  %v646_v6 = vadd.f32 %v2197_v34, %v1993_v41  ;;  %v2305_v16 = vsel %vm745_vm6, %v635_v25, %v809_v33  ;;  %v983_v40 = vsel %vm889_vm5, %v2299_v31, 0.0 }
 0x13d   :  { %v974_v36 = vadd.f32 %v973_v61, %v972_v42  ;;  %v977_v42 = vsel %vm889_vm5, %v2281_v2, 0.0  ;;  %vm746_vm7 = vcmp.ge.f32.partialorder %v638_v53, 0.0  ;;  %3796 = vst [vmem:[#allocation12_spill] sm:$0xff] %v2305_v16  ;;  %v985_v12 = vsel %vm889_vm5, %v2305_v16, 0.0 }
 0x13e   :  { %vm748_vm9 = vcmp.ge.f32.partialorder %v646_v6, 0.0  ;;  %v667_v16 = vadd.f32 %v1993_v41, %v666_v24  ;;  %v675_v24 = vadd.f32 %v2279_v8, %v1993_v41 }
 0x13f   :  { %v976_v43 = vadd.f32 %v975_v52, %v974_v36  ;;  %v979_v36 = vsel %vm889_vm5, %v2287_v30, 0.0  ;;  %v810_v52 = vmul.f32 0.01, %v638_v53  ;;  %v651_v30 = vadd.f32 %v1993_v41, %v2239_v58 }
 0x140   :  { %v659_v58 = vadd.f32 %v2225_v9, %v1993_v41  ;;  %vm753_vm14 = vcmp.ge.f32.partialorder %v667_v16, 0.0  ;;  %vm755_vm0 = vcmp.ge.f32.partialorder %v675_v24, 0.0 }
 0x141   :  { %v978_v61 = vadd.f32 %v977_v42, %v976_v43  ;;  %v811_v42 = vmul.f32 0.01, %v643_v46  ;;  %v2311_v34 = vsel %vm746_vm7, %v638_v53, %v810_v52  ;;  %vm749_vm10 = vcmp.ge.f32.partialorder %v651_v30, 0.0 }
 0x142   :  { %vm751_vm12 = vcmp.ge.f32.partialorder %v659_v58, 0.0 }
 0x143   :  { %v980_v37 = vadd.f32 %v979_v36, %v978_v61  ;;  %v812_v61 = vmul.f32 0.01, %v646_v6  ;;  %v654_v36 = vadd.f32 %v1993_v41, %v653_v45  ;;  %v2316_v25 = vsel %vm747_vm8, %v643_v46, %v811_v42 }
 0x144   :  { %3797 = vst [vmem:[#allocation13_spill] sm:$0xff] %v2316_v25  ;;  %v662_v45 = vadd.f32 %v2253_v13, %v1993_v41  ;;  %v989_v46 = vsel %vm889_vm5, %v2316_v25, 0.0 }
 0x145   :  { %v982_v43 = vadd.f32 %v981_v48, %v980_v37  ;;  %v669_v37 = vpop.f32.mrf.mxu1  ;;  %v813_v48 = vmul.f32 0.01, %v651_v30  ;;  %v2322_v53 = vsel %vm748_vm9, %v646_v6, %v812_v61  ;;  %vm750_vm11 = vcmp.ge.f32.partialorder %v654_v36, 0.0 }
 0x146   :  { %v991_v6 = vsel %vm889_vm5, %v2322_v53, 0.0  ;;  %v670_v13 = vadd.f32 %v1993_v41, %v669_v37  ;;  %vm752_vm13 = vcmp.ge.f32.partialorder %v662_v45, 0.0  ;;  %v678_v37 = vadd.f32 %v1749_v20, %v1993_v41 }
 0x147   :  { %v984_v17 = vadd.f32 %v983_v40, %v982_v43  ;;  %v987_v43 = vsel %vm889_vm5, %v2311_v34, 0.0  ;;  %v814_v40 = vmul.f32 0.01, %v654_v36  ;;  %v2328_v9 = vsel %vm749_vm10, %v651_v30, %v813_v48 }
 0x148   :  { %3798 = vst [vmem:[#allocation14_spill] sm:$0xff] %v2328_v9  ;;  %v993_v25 = vsel %vm889_vm5, %v2328_v9, 0.0  ;;  %v817_v48 = vmul.f32 0.01, %v667_v16  ;;  %vm754_vm15 = vcmp.ge.f32.partialorder %v670_v13, 0.0  ;;  %vm756_vm1 = vcmp.ge.f32.partialorder %v678_v37, 0.0 }
 0x149   :  { %v986_v33 = vadd.f32 %v985_v12, %v984_v17  ;;  %v1752_v12 = vpop.f32.mrf.mxu1  ;;  %v815_v17 = vmul.f32 0.01, %v659_v58 }
 0x14b   :  { %v988_v52 = vadd.f32 %v987_v43, %v986_v33  ;;  %v816_v33 = vmul.f32 0.01, %v662_v45  ;;  %v2333_v43 = vsel %vm750_vm11, %v654_v36, %v814_v40 }
 0x14c   :  { %3799 = vst [vmem:[#allocation15_spill] sm:$0xff] %v2333_v43 }
 0x14d   :  { %v990_v42 = vadd.f32 %v989_v46, %v988_v52  ;;  %v682_v52 = vpop.f32.mrf.mxu1  ;;  %v2338_v46 = vsel %vm751_vm12, %v659_v58, %v815_v17  ;;  %v2344_v36 = vsel %vm752_vm13, %v662_v45, %v816_v33  ;;  %v819_v17 = vmul.f32 0.01, %v675_v24 }
 0x14e   :  { %3800 = vst [vmem:[#allocation16_spill] sm:$0xff] %v2338_v46  ;;  %v997_v9 = vsel %vm889_vm5, %v2338_v46, 0.0  ;;  %v999_v8 = vsel %vm889_vm5, %v2344_v36, 0.0  ;;  %v820_v45 = vmul.f32 0.01, %v678_v37  ;;  %v683_v20 = vadd.f32 %v1993_v41, %v682_v52 }
 0x14f   :  { %v992_v61 = vadd.f32 %v991_v6, %v990_v42  ;;  %v995_v42 = vsel %vm889_vm5, %v2333_v43, 0.0  ;;  %v818_v6 = vmul.f32 0.01, %v670_v13  ;;  %v1753_v58 = vpop.f32.mrf.mxu1  ;;  %v2358_v46 = vsel %vm755_vm0, %v675_v24, %v819_v17 }
 0x150   :  { %v1005_v52 = vsel %vm889_vm5, %v2358_v46, 0.0  ;;  %vm757_vm2 = vcmp.ge.f32.partialorder %v683_v20, 0.0  ;;  %v691_v24 = vadd.f32 %v1752_v12, %v1993_v41 }
 0x151   :  { %v994_v30 = vadd.f32 %v993_v25, %v992_v61  ;;  %v2349_v61 = vsel %vm753_vm14, %v667_v16, %v817_v48  ;;  %v2353_v33 = vsel %vm754_vm15, %v670_v13, %v818_v6  ;;  %v2362_v48 = vsel %vm756_vm1, %v678_v37, %v820_v45 }
 0x152   :  { %v1003_v16 = vsel %vm889_vm5, %v2353_v33, 0.0  ;;  %v823_v45 = vmul.f32 0.01, %v691_v24  ;;  %vm759_vm4 = vcmp.ge.f32.partialorder %v691_v24, 0.0 }
 0x153   :  { %v996_v40 = vadd.f32 %v995_v42, %v994_v30  ;;  %v1001_v30 = vsel %vm889_vm5, %v2349_v61, 0.0  ;;  %v685_v42 = vpop.f32.mrf.mxu1 }
 0x154   :  { %v686_v13 = vadd.f32 %v1993_v41, %v685_v42 }
 0x155   :  { %v998_v25 = vadd.f32 %v997_v9, %v996_v40 }
 0x156   :  { %vm758_vm3 = vcmp.ge.f32.partialorder %v686_v13, 0.0 }
 0x157   :  { %v1000_v43 = vadd.f32 %v999_v8, %v998_v25  ;;  %v821_v25 = vmul.f32 0.01, %v683_v20  ;;  %v1007_v8 = vsel %vm889_vm5, %v2362_v48, 0.0 }
 0x159   :  { %v1002_v9 = vadd.f32 %v1001_v30, %v1000_v43  ;;  %v2370_v43 = vsel %vm757_vm2, %v683_v20, %v821_v25  ;;  %v822_v30 = vmul.f32 0.01, %v686_v13 }
 0x15a   :  { %v1009_v37 = vsel %vm889_vm5, %v2370_v43, 0.0 }
 0x15b   :  { %v1004_v40 = vadd.f32 %v1003_v16, %v1002_v9  ;;  %v694_v9 = vadd.f32 %v1753_v58, %v1993_v41  ;;  %v2375_v16 = vsel %vm758_vm3, %v686_v13, %v822_v30 }
 0x15c   :  { %3801 = vst [vmem:[#allocation17_spill] sm:$0xff] %v2375_v16 }
 0x15d   :  { %v1006_v6 = vadd.f32 %v1005_v52, %v1004_v40  ;;  %v1011_v40 = vsel %vm889_vm5, %v2375_v16, 0.0  ;;  %v2379_v52 = vsel %vm759_vm4, %v691_v24, %v823_v45  ;;  %v824_v12 = vmul.f32 0.01, %v694_v9 }
 0x15e   :  { %vm760_vm6 = vcmp.ge.f32.partialorder %v694_v9, 0.0  ;;  %v1013_v25 = vsel %vm889_vm5, %v2379_v52, 0.0 }
 0x15f   :  { %v1008_v17 = vadd.f32 %v1007_v8, %v1006_v6  ;;  %v2383_v6 = vsel %vm760_vm6, %v694_v9, %v824_v12 }
 0x160   :  { %v1015_v41 = vsel %vm889_vm5, %v2383_v6, 0.0 }
 0x161   :  { %v1010_v42 = vadd.f32 %v1009_v37, %v1008_v17 }
 0x163   :  { %v1012_v20 = vadd.f32 %v1011_v40, %v1010_v42 }
 0x165   :  { %v1014_v8 = vadd.f32 %v1013_v25, %v1012_v20 }
 0x167   :  { %v1016_v58 = vadd.f32 %v1015_v41, %v1014_v8 }
 0x169   :  { %v1017_v13 = vrot.slane %v1016_v58, 4 }
 0x16b   :  { %v1018_v17 = vadd.f32 %v1017_v13, %v1016_v58 }
 0x16d   :  { %v1019_v30 = vrot.slane %v1018_v17, 2 }
 0x16f   :  { %v1020_v37 = vadd.f32 %v1019_v30, %v1018_v17 }
 0x171   :  { %v1021_v16 = vrot.slane %v1020_v37, 1 }
 0x173   :  { %v1022_v24 = vadd.f32 %v1021_v16, %v1020_v37 }
 0x175   :  { %v2387_v45 = vmul.f32 0.001953125, %v1022_v24 }
 0x177   :  { %v2391_v42 = vsub.f32 %v2005_v55, %v2387_v45  ;;  %v2395_v9 = vsub.f32 %v2009_v60, %v2387_v45  ;;  %v2399_v40 = vsub.f32 %v2007_v59, %v2387_v45  ;;  %v2403_v12 = vsub.f32 %v2019_v3, %v2387_v45 }
 0x178   :  { %v2411_v55 = vsub.f32 %v2024_v11, %v2387_v45  ;;  %v2417_v59 = vsub.f32 %v2035_v23, %v2387_v45  ;;  %v2425_v58 = vsub.f32 %v2033_v21, %v2387_v45  ;;  %v2432_v23 = vsub.f32 %v2043_v29, %v2387_v45 }
 0x179   :  { %v1089_v16 = vmul.f32 %v2391_v42, %v2391_v42  ;;  %v1090_v20 = vmul.f32 %v2395_v9, %v2395_v9  ;;  %v1091_v60 = vmul.f32 %v2399_v40, %v2399_v40  ;;  %v1092_v3 = vmul.f32 %v2403_v12, %v2403_v12 }
 0x17a   :  { %v1093_v11 = vmul.f32 %v2411_v55, %v2411_v55  ;;  %v1094_v30 = vmul.f32 %v2417_v59, %v2417_v59  ;;  %v2439_v21 = vsub.f32 %v2052_v39, %v2387_v45  ;;  %v2446_v29 = vsub.f32 %v2063_v57, %v2387_v45 }
 0x17b   :  { %v1153_v25 = vsel %vm889_vm5, %v1089_v16, 0.0  ;;  %v1154_v8 = vsel %vm889_vm5, %v1090_v20, 0.0  ;;  %v1156_v13 = vsel %vm889_vm5, %v1091_v60, 0.0  ;;  %v1158_v37 = vsel %vm889_vm5, %v1092_v3, 0.0 }
 0x17c   :  { %v1155_v41 = vadd.f32 %v1154_v8, %v1153_v25  ;;  %v1095_v16 = vmul.f32 %v2425_v58, %v2425_v58  ;;  %v1160_v20 = vsel %vm889_vm5, %v1093_v11, 0.0  ;;  %v1096_v25 = vmul.f32 %v2432_v23, %v2432_v23 }
 0x17d   :  { %v1162_v3 = vsel %vm889_vm5, %v1094_v30, 0.0  ;;  %v2453_v39 = vsub.f32 %v2061_v56, %v2387_v45  ;;  %v2460_v57 = vsub.f32 %v2067_v0, %v2387_v45  ;;  %v2467_v56 = vsub.f32 %v2075_v10, %v2387_v45 }
 0x17e   :  { %v1157_v17 = vadd.f32 %v1156_v13, %v1155_v41  ;;  %v1097_v41 = vmul.f32 %v2439_v21, %v2439_v21  ;;  %v1164_v11 = vsel %vm889_vm5, %v1095_v16, 0.0  ;;  %v1166_v30 = vsel %vm889_vm5, %v1096_v25, 0.0 }
 0x17f   :  { %v2474_v0 = vsub.f32 %v2083_v22, %v2387_v45  ;;  %v2481_v10 = vsub.f32 %v2079_v19, %v2387_v45  ;;  %v2488_v22 = vsub.f32 %v2091_v32, %v2387_v45  ;;  %v2495_v19 = vsub.f32 %v2099_v47, %v2387_v45 }
 0x180   :  { %v1159_v24 = vadd.f32 %v1158_v37, %v1157_v17  ;;  %v1098_v17 = vmul.f32 %v2446_v29, %v2446_v29  ;;  %v1168_v16 = vsel %vm889_vm5, %v1097_v41, 0.0  ;;  %v2502_v32 = vsub.f32 %v2105_v62, %v2387_v45 }
 0x181   :  { %v2509_v47 = vsub.f32 %v2110_v4, %v2387_v45  ;;  %v2516_v62 = vsub.f32 %v2115_v14, %v2387_v45  ;;  %v2523_v4 = vsub.f32 %v2122_v28, %v2387_v45  ;;  %v2530_v14 = vsub.f32 %v2135_v51, %v2387_v45 }
 0x182   :  { %v1161_v60 = vadd.f32 %v1160_v20, %v1159_v24  ;;  %v1099_v24 = vmul.f32 %v2453_v39, %v2453_v39  ;;  %v1170_v25 = vsel %vm889_vm5, %v1098_v17, 0.0  ;;  %v2537_v28 = vsub.f32 %v2133_v49, %v2387_v45 }
 0x183   :  { %v2544_v51 = vsub.f32 %v2139_v1, %v2387_v45  ;;  %v2551_v49 = vsub.f32 %v2147_v26, %v2387_v45  ;;  %v2558_v1 = vsub.f32 %v2155_v38, %v2387_v45  ;;  %v2565_v26 = vsub.f32 %v2151_v35, %v2387_v45 }
 0x184   :  { %v1163_v8 = vadd.f32 %v1162_v3, %v1161_v60  ;;  %v1100_v60 = vmul.f32 %v2460_v57, %v2460_v57  ;;  %v1172_v41 = vsel %vm889_vm5, %v1099_v24, 0.0  ;;  %v2572_v38 = vsub.f32 %v2163_v5, %v2387_v45 }
 0x185   :  { %v2586_v5 = vsub.f32 %v2183_v44, %v2387_v45  ;;  %v2600_v44 = vsub.f32 %v2191_v63, %v2387_v45 }
 0x186   :  { %v1165_v13 = vadd.f32 %v1164_v11, %v1163_v8  ;;  %v1101_v8 = vmul.f32 %v2467_v56, %v2467_v56  ;;  %v1174_v17 = vsel %vm889_vm5, %v1100_v60, 0.0 }
 0x188   :  { %v1167_v37 = vadd.f32 %v1166_v30, %v1165_v13  ;;  %v1102_v13 = vmul.f32 %v2474_v0, %v2474_v0  ;;  %v1176_v24 = vsel %vm889_vm5, %v1101_v8, 0.0 }
 0x18a   :  { %v1169_v20 = vadd.f32 %v1168_v16, %v1167_v37  ;;  %v1103_v37 = vmul.f32 %v2481_v10, %v2481_v10  ;;  %v1178_v60 = vsel %vm889_vm5, %v1102_v13, 0.0 }
 0x18c   :  { %v1171_v3 = vadd.f32 %v1170_v25, %v1169_v20  ;;  %v1104_v20 = vmul.f32 %v2488_v22, %v2488_v22  ;;  %v1180_v8 = vsel %vm889_vm5, %v1103_v37, 0.0 }
 0x18e   :  { %v1173_v11 = vadd.f32 %v1172_v41, %v1171_v3  ;;  %v1105_v3 = vmul.f32 %v2495_v19, %v2495_v19  ;;  %v1182_v13 = vsel %vm889_vm5, %v1104_v20, 0.0 }
 0x190   :  { %v1175_v30 = vadd.f32 %v1174_v17, %v1173_v11  ;;  %v1106_v11 = vmul.f32 %v2502_v32, %v2502_v32  ;;  %v1184_v37 = vsel %vm889_vm5, %v1105_v3, 0.0 }
 0x192   :  { %v1177_v16 = vadd.f32 %v1176_v24, %v1175_v30  ;;  %v1107_v30 = vmul.f32 %v2509_v47, %v2509_v47  ;;  %v1186_v20 = vsel %vm889_vm5, %v1106_v11, 0.0 }
 0x194   :  { %v1179_v25 = vadd.f32 %v1178_v60, %v1177_v16  ;;  %v1108_v16 = vmul.f32 %v2516_v62, %v2516_v62  ;;  %v1188_v3 = vsel %vm889_vm5, %v1107_v30, 0.0 }
 0x196   :  { %v1181_v41 = vadd.f32 %v1180_v8, %v1179_v25  ;;  %v1109_v25 = vmul.f32 %v2523_v4, %v2523_v4  ;;  %v1190_v11 = vsel %vm889_vm5, %v1108_v16, 0.0 }
 0x198   :  { %v1183_v17 = vadd.f32 %v1182_v13, %v1181_v41  ;;  %v1110_v41 = vmul.f32 %v2530_v14, %v2530_v14  ;;  %v1192_v30 = vsel %vm889_vm5, %v1109_v25, 0.0 }
 0x19a   :  { %v1185_v24 = vadd.f32 %v1184_v37, %v1183_v17  ;;  %v1111_v17 = vmul.f32 %v2537_v28, %v2537_v28  ;;  %v1194_v16 = vsel %vm889_vm5, %v1110_v41, 0.0 }
 0x19c   :  { %v1187_v60 = vadd.f32 %v1186_v20, %v1185_v24  ;;  %v1112_v24 = vmul.f32 %v2544_v51, %v2544_v51  ;;  %v1196_v25 = vsel %vm889_vm5, %v1111_v17, 0.0 }
 0x19e   :  { %v1189_v8 = vadd.f32 %v1188_v3, %v1187_v60  ;;  %v1113_v60 = vmul.f32 %v2551_v49, %v2551_v49  ;;  %v1198_v41 = vsel %vm889_vm5, %v1112_v24, 0.0 }
 0x1a0   :  { %v1191_v13 = vadd.f32 %v1190_v11, %v1189_v8  ;;  %v1114_v8 = vmul.f32 %v2558_v1, %v2558_v1  ;;  %v1200_v17 = vsel %vm889_vm5, %v1113_v60, 0.0 }
 0x1a2   :  { %v1193_v37 = vadd.f32 %v1192_v30, %v1191_v13  ;;  %v3802_v13 = vld [vmem:[#allocation2_spill] sm:$0xff]  ;;  %v1115_v30 = vmul.f32 %v2565_v26, %v2565_v26  ;;  %v1202_v24 = vsel %vm889_vm5, %v1114_v8, 0.0 }
 0x1a3   :  { %v2579_v35 = vsub.f32 %v3802_v13, %v2387_v45  ;;  %3804 = vst [vmem:[#allocation2_spill] sm:$0xff] %v2600_v44  ;;  %v1118_v13 = vmul.f32 %v2586_v5, %v2586_v5 }
 0x1a4   :  { %v1195_v20 = vadd.f32 %v1194_v16, %v1193_v37  ;;  %v1116_v16 = vmul.f32 %v2572_v38, %v2572_v38  ;;  %v1204_v60 = vsel %vm889_vm5, %v1115_v30, 0.0 }
 0x1a6   :  { %v1197_v3 = vadd.f32 %v1196_v25, %v1195_v20  ;;  %v3803_v25 = vld [vmem:[#allocation3_spill] sm:$0xff]  ;;  %v1206_v8 = vsel %vm889_vm5, %v1116_v16, 0.0  ;;  %v1210_v16 = vsel %vm889_vm5, %v1118_v13, 0.0 }
 0x1a8   :  { %v1199_v11 = vadd.f32 %v1198_v41, %v1197_v3  ;;  %v2593_v3 = vsub.f32 %v3803_v25, %v2387_v45  ;;  %v1117_v41 = vmul.f32 %v2579_v35, %v2579_v35  ;;  %v3805_v25 = vld [vmem:[#allocation4_spill] sm:$0xff] }
 0x1a9   :  { %v2614_v63 = vsub.f32 %v3805_v25, %v2387_v45 }
 0x1aa   :  { %v1201_v37 = vadd.f32 %v1200_v17, %v1199_v11  ;;  %v1208_v30 = vsel %vm889_vm5, %v1117_v41, 0.0 }
 0x1ab   :  { %3806 = vst [vmem:[#allocation3_spill] sm:$0xff] %v2614_v63 }
 0x1ac   :  { %v1203_v20 = vadd.f32 %v1202_v24, %v1201_v37  ;;  %v2607_v37 = vsub.f32 %v2199_v27, %v2387_v45  ;;  %v1119_v24 = vmul.f32 %v2593_v3, %v2593_v3  ;;  %v2621_v27 = vsub.f32 %v2213_v15, %v2387_v45 }
 0x1ad   :  { %v2635_v15 = vsub.f32 %v2227_v7, %v2387_v45  ;;  %v2649_v7 = vsub.f32 %v2241_v18, %v2387_v45  ;;  %v2663_v18 = vsub.f32 %v2255_v54, %v2387_v45  ;;  %v2677_v54 = vsub.f32 %v2267_v50, %v2387_v45 }
 0x1ae   :  { %v1205_v11 = vadd.f32 %v1204_v60, %v1203_v20  ;;  %v1120_v60 = vmul.f32 %v2600_v44, %v2600_v44  ;;  %v1212_v41 = vsel %vm889_vm5, %v1119_v24, 0.0  ;;  %v1122_v44 = vmul.f32 %v2614_v63, %v2614_v63 }
 0x1af   :  { %v2691_v50 = vsub.f32 %v2281_v2, %v2387_v45 }
 0x1b0   :  { %v1207_v17 = vadd.f32 %v1206_v8, %v1205_v11  ;;  %v1121_v8 = vmul.f32 %v2607_v37, %v2607_v37  ;;  %v1214_v13 = vsel %vm889_vm5, %v1120_v60, 0.0  ;;  %v1218_v60 = vsel %vm889_vm5, %v1122_v44, 0.0 }
 0x1b2   :  { %v1209_v20 = vadd.f32 %v1208_v30, %v1207_v17  ;;  %v3807_v30 = vld [vmem:[#allocation5_spill] sm:$0xff]  ;;  %v1216_v24 = vsel %vm889_vm5, %v1121_v8, 0.0 }
 0x1b3   :  { %v2628_v25 = vsub.f32 %v3807_v30, %v2387_v45 }
 0x1b4   :  { %v1211_v11 = vadd.f32 %v1210_v16, %v1209_v20  ;;  %v1123_v16 = vmul.f32 %v2621_v27, %v2621_v27 }
 0x1b5   :  { %3808 = vst [vmem:[#allocation4_spill] sm:$0xff] %v2628_v25  ;;  %v1124_v63 = vmul.f32 %v2628_v25, %v2628_v25 }
 0x1b6   :  { %v1213_v17 = vadd.f32 %v1212_v41, %v1211_v11  ;;  %v3809_v41 = vld [vmem:[#allocation6_spill] sm:$0xff]  ;;  %v1220_v8 = vsel %vm889_vm5, %v1123_v16, 0.0 }
 0x1b7   :  { %v2642_v30 = vsub.f32 %v3809_v41, %v2387_v45  ;;  %v1222_v44 = vsel %vm889_vm5, %v1124_v63, 0.0 }
 0x1b8   :  { %v1215_v20 = vadd.f32 %v1214_v13, %v1213_v17  ;;  %v1125_v13 = vmul.f32 %v2635_v15, %v2635_v15 }
 0x1b9   :  { %3810 = vst [vmem:[#allocation5_spill] sm:$0xff] %v2642_v30  ;;  %v1126_v25 = vmul.f32 %v2642_v30, %v2642_v30 }
 0x1ba   :  { %v1217_v11 = vadd.f32 %v1216_v24, %v1215_v20  ;;  %v3811_v24 = vld [vmem:[#allocation7_spill] sm:$0xff]  ;;  %v1224_v16 = vsel %vm889_vm5, %v1125_v13, 0.0 }
 0x1bb   :  { %v2656_v41 = vsub.f32 %v3811_v24, %v2387_v45  ;;  %v1226_v63 = vsel %vm889_vm5, %v1126_v25, 0.0 }
 0x1bc   :  { %v1219_v17 = vadd.f32 %v1218_v60, %v1217_v11  ;;  %v1127_v60 = vmul.f32 %v2649_v7, %v2649_v7 }
 0x1bd   :  { %3812 = vst [vmem:[#allocation6_spill] sm:$0xff] %v2656_v41  ;;  %v1128_v30 = vmul.f32 %v2656_v41, %v2656_v41 }
 0x1be   :  { %v1221_v20 = vadd.f32 %v1220_v8, %v1219_v17  ;;  %v3813_v8 = vld [vmem:[#allocation8_spill] sm:$0xff]  ;;  %v1228_v13 = vsel %vm889_vm5, %v1127_v60, 0.0 }
 0x1bf   :  { %v2670_v24 = vsub.f32 %v3813_v8, %v2387_v45  ;;  %3815 = vst [vmem:[#allocation8_spill] sm:$0xff] %v2677_v54  ;;  %v1230_v25 = vsel %vm889_vm5, %v1128_v30, 0.0 }
 0x1c0   :  { %v1223_v11 = vadd.f32 %v1222_v44, %v1221_v20  ;;  %v1129_v44 = vmul.f32 %v2663_v18, %v2663_v18 }
 0x1c1   :  { %3814 = vst [vmem:[#allocation7_spill] sm:$0xff] %v2670_v24  ;;  %v1130_v41 = vmul.f32 %v2670_v24, %v2670_v24 }
 0x1c2   :  { %v1225_v17 = vadd.f32 %v1224_v16, %v1223_v11  ;;  %v3816_v16 = vld [vmem:[#allocation9_spill] sm:$0xff]  ;;  %v1232_v60 = vsel %vm889_vm5, %v1129_v44, 0.0 }
 0x1c3   :  { %v2684_v8 = vsub.f32 %v3816_v16, %v2387_v45  ;;  %3817 = vst [vmem:[#allocation9_spill] sm:$0xff] %v2691_v50  ;;  %v1234_v30 = vsel %vm889_vm5, %v1130_v41, 0.0 }
 0x1c4   :  { %v1227_v20 = vadd.f32 %v1226_v63, %v1225_v17  ;;  %v1131_v63 = vmul.f32 %v2677_v54, %v2677_v54  ;;  %v1133_v54 = vmul.f32 %v2691_v50, %v2691_v50 }
 0x1c5   :  { %v1132_v24 = vmul.f32 %v2684_v8, %v2684_v8 }
 0x1c6   :  { %v1229_v11 = vadd.f32 %v1228_v13, %v1227_v20  ;;  %v3818_v13 = vld [vmem:[#allocation10_spill] sm:$0xff]  ;;  %v1236_v44 = vsel %vm889_vm5, %v1131_v63, 0.0  ;;  %v1240_v63 = vsel %vm889_vm5, %v1133_v54, 0.0 }
 0x1c7   :  { %v2698_v16 = vsub.f32 %v3818_v13, %v2387_v45  ;;  %v1238_v41 = vsel %vm889_vm5, %v1132_v24, 0.0 }
 0x1c8   :  { %v1231_v17 = vadd.f32 %v1230_v25, %v1229_v11  ;;  %v3819_v25 = vld [vmem:[#allocation11_spill] sm:$0xff] }
 0x1c9   :  { %v2705_v2 = vsub.f32 %v3819_v25, %v2387_v45  ;;  %v1134_v13 = vmul.f32 %v2698_v16, %v2698_v16 }
 0x1ca   :  { %v1233_v20 = vadd.f32 %v1232_v60, %v1231_v17  ;;  %v2712_v60 = vsub.f32 %v2299_v31, %v2387_v45  ;;  %v2726_v31 = vsub.f32 %v2311_v34, %v2387_v45  ;;  %v2740_v34 = vsub.f32 %v2322_v53, %v2387_v45 }
 0x1cb   :  { %3820 = vst [vmem:[#allocation10_spill] sm:$0xff] %v2705_v2  ;;  %v1135_v50 = vmul.f32 %v2705_v2, %v2705_v2  ;;  %v1242_v24 = vsel %vm889_vm5, %v1134_v13, 0.0 }
 0x1cc   :  { %v1235_v11 = vadd.f32 %v1234_v30, %v1233_v20  ;;  %v3821_v30 = vld [vmem:[#allocation12_spill] sm:$0xff] }
 0x1cd   :  { %v2719_v25 = vsub.f32 %v3821_v30, %v2387_v45  ;;  %3823 = vst [vmem:[#allocation12_spill] sm:$0xff] %v2726_v31  ;;  %v1244_v54 = vsel %vm889_vm5, %v1135_v50, 0.0 }
 0x1ce   :  { %v1237_v17 = vadd.f32 %v1236_v44, %v1235_v11  ;;  %v1136_v44 = vmul.f32 %v2712_v60, %v2712_v60 }
 0x1cf   :  { %3822 = vst [vmem:[#allocation11_spill] sm:$0xff] %v2719_v25  ;;  %v1137_v2 = vmul.f32 %v2719_v25, %v2719_v25 }
 0x1d0   :  { %v1239_v20 = vadd.f32 %v1238_v41, %v1237_v17  ;;  %v3824_v41 = vld [vmem:[#allocation13_spill] sm:$0xff]  ;;  %v1246_v13 = vsel %vm889_vm5, %v1136_v44, 0.0 }
 0x1d1   :  { %v2733_v30 = vsub.f32 %v3824_v41, %v2387_v45  ;;  %v1248_v50 = vsel %vm889_vm5, %v1137_v2, 0.0 }
 0x1d2   :  { %v1241_v11 = vadd.f32 %v1240_v63, %v1239_v20  ;;  %v1138_v63 = vmul.f32 %v2726_v31, %v2726_v31  ;;  %v1140_v31 = vmul.f32 %v2740_v34, %v2740_v34 }
 0x1d3   :  { %3825 = vst [vmem:[#allocation13_spill] sm:$0xff] %v2733_v30  ;;  %v1139_v25 = vmul.f32 %v2733_v30, %v2733_v30 }
 0x1d4   :  { %v1243_v17 = vadd.f32 %v1242_v24, %v1241_v11  ;;  %v3826_v24 = vld [vmem:[#allocation14_spill] sm:$0xff]  ;;  %v1250_v44 = vsel %vm889_vm5, %v1138_v63, 0.0  ;;  %v1254_v63 = vsel %vm889_vm5, %v1140_v31, 0.0 }
 0x1d5   :  { %v2747_v41 = vsub.f32 %v3826_v24, %v2387_v45  ;;  %v1252_v2 = vsel %vm889_vm5, %v1139_v25, 0.0 }
 0x1d6   :  { %v1245_v20 = vadd.f32 %v1244_v54, %v1243_v17  ;;  %v3827_v54 = vld [vmem:[#allocation15_spill] sm:$0xff] }
 0x1d7   :  { %v2754_v53 = vsub.f32 %v3827_v54, %v2387_v45  ;;  %v1141_v30 = vmul.f32 %v2747_v41, %v2747_v41 }
 0x1d8   :  { %v1247_v11 = vadd.f32 %v1246_v13, %v1245_v20  ;;  %v3828_v13 = vld [vmem:[#allocation16_spill] sm:$0xff] }
 0x1d9   :  { %v2761_v24 = vsub.f32 %v3828_v13, %v2387_v45  ;;  %v1142_v54 = vmul.f32 %v2754_v53, %v2754_v53  ;;  %v1256_v25 = vsel %vm889_vm5, %v1141_v30, 0.0 }
 0x1da   :  { %v1249_v17 = vadd.f32 %v1248_v50, %v1247_v11  ;;  %v2768_v50 = vsub.f32 %v2344_v36, %v2387_v45  ;;  %v2782_v36 = vsub.f32 %v2353_v33, %v2387_v45  ;;  %v2796_v33 = vsub.f32 %v2362_v48, %v2387_v45 }
 0x1db   :  { %v1143_v13 = vmul.f32 %v2761_v24, %v2761_v24  ;;  %v1258_v31 = vsel %vm889_vm5, %v1142_v54, 0.0 }
 0x1dc   :  { %v1251_v20 = vadd.f32 %v1250_v44, %v1249_v17  ;;  %v2775_v44 = vsub.f32 %v2349_v61, %v2387_v45  ;;  %3830 = vst [vmem:[#allocation15_spill] sm:$0xff] %v2782_v36  ;;  %v2789_v61 = vsub.f32 %v2358_v46, %v2387_v45  ;;  %3832 = vst [vmem:[#allocation18_spill] sm:$0xff] %v2796_v33 }
 0x1dd   :  { %v1260_v30 = vsel %vm889_vm5, %v1143_v13, 0.0  ;;  %v2803_v46 = vsub.f32 %v2370_v43, %v2387_v45  ;;  %v2817_v43 = vsub.f32 %v2379_v52, %v2387_v45 }
 0x1de   :  { %v1253_v11 = vadd.f32 %v1252_v2, %v1251_v20  ;;  %3829 = vst [vmem:[#allocation14_spill] sm:$0xff] %v2775_v44  ;;  %v1144_v2 = vmul.f32 %v2768_v50, %v2768_v50  ;;  %3831 = vst [vmem:[#allocation16_spill] sm:$0xff] %v2789_v61 }
 0x1df   :  { %3833 = vst [vmem:[#allocation19_spill] sm:$0xff] %v2803_v46  ;;  %3836 = vst [vmem:[#allocation20_spill] sm:$0xff] %v2817_v43  ;;  %v1151_v52 = vmul.f32 %v2817_v43, %v2817_v43 }
 0x1e0   :  { %v1255_v17 = vadd.f32 %v1254_v63, %v1253_v11  ;;  %v1145_v63 = vmul.f32 %v2775_v44, %v2775_v44  ;;  %v1262_v54 = vsel %vm889_vm5, %v1144_v2, 0.0 }
 0x1e2   :  { %v1257_v20 = vadd.f32 %v1256_v25, %v1255_v17  ;;  %v1146_v25 = vmul.f32 %v2782_v36, %v2782_v36  ;;  %v1264_v13 = vsel %vm889_vm5, %v1145_v63, 0.0  ;;  %v1148_v36 = vmul.f32 %v2796_v33, %v2796_v33 }
 0x1e4   :  { %v1259_v11 = vadd.f32 %v1258_v31, %v1257_v20  ;;  %v1147_v31 = vmul.f32 %v2789_v61, %v2789_v61  ;;  %v1266_v2 = vsel %vm889_vm5, %v1146_v25, 0.0  ;;  %v1270_v25 = vsel %vm889_vm5, %v1148_v36, 0.0 }
 0x1e6   :  { %v1261_v17 = vadd.f32 %v1260_v30, %v1259_v11  ;;  %v3834_v30 = vld [vmem:[#allocation17_spill] sm:$0xff]  ;;  %v1268_v63 = vsel %vm889_vm5, %v1147_v31, 0.0 }
 0x1e7   :  { %v2810_v48 = vsub.f32 %v3834_v30, %v2387_v45 }
 0x1e8   :  { %v1263_v20 = vadd.f32 %v1262_v54, %v1261_v17  ;;  %v1149_v54 = vmul.f32 %v2803_v46, %v2803_v46 }
 0x1e9   :  { %3835 = vst [vmem:[#allocation17_spill] sm:$0xff] %v2810_v48  ;;  %v1150_v30 = vmul.f32 %v2810_v48, %v2810_v48 }
 0x1ea   :  { %v1265_v11 = vadd.f32 %v1264_v13, %v1263_v20  ;;  %v2824_v13 = vsub.f32 %v2383_v6, %v2387_v45  ;;  %v1276_v6 = vsel %vm889_vm5, %v1151_v52, 0.0  ;;  %v3839_v52 = vld [vmem:[#allocation4_spill] sm:$0xff] }
 0x1ec   :  { %v1267_v17 = vadd.f32 %v1266_v2, %v1265_v11  ;;  %v1272_v2 = vsel %vm889_vm5, %v1149_v54, 0.0  ;;  %v1152_v31 = vmul.f32 %v2824_v13, %v2824_v13 }
 0x1ee   :  { %v1269_v20 = vadd.f32 %v1268_v63, %v1267_v17  ;;  %v1274_v17 = vsel %vm889_vm5, %v1150_v30, 0.0  ;;  %v1278_v48 = vsel %vm889_vm5, %v1152_v31, 0.0 }
 0x1f0   :  { %v1271_v11 = vadd.f32 %v1270_v25, %v1269_v20 }
 0x1f2   :  { %v1273_v33 = vadd.f32 %v1272_v2, %v1271_v11 }
 0x1f4   :  { %v1275_v63 = vadd.f32 %v1274_v17, %v1273_v33  ;;  %v3840_v17 = vld [vmem:[#allocation5_spill] sm:$0xff] }
 0x1f6   :  { %v1277_v45 = vadd.f32 %v1276_v6, %v1275_v63  ;;  %v3841_v6 = vld [vmem:[#allocation6_spill] sm:$0xff] }
 0x1f8   :  { %v1279_v46 = vadd.f32 %v1278_v48, %v1277_v45  ;;  %v3837_v48 = vld [vmem:[#allocation2_spill] sm:$0xff] }
 0x1fa   :  { %v1280_v36 = vrot.slane %v1279_v46, 4 }
 0x1fc   :  { %v1281_v20 = vadd.f32 %v1280_v36, %v1279_v46  ;;  %v3842_v36 = vld [vmem:[#allocation7_spill] sm:$0xff] }
 0x1fe   :  { %v1282_v25 = vrot.slane %v1281_v20, 2 }
 0x200   :  { %v1283_v61 = vadd.f32 %v1282_v25, %v1281_v20  ;;  %v3843_v20 = vld [vmem:[#allocation8_spill] sm:$0xff] }
 0x202   :  { %v1284_v43 = vrot.slane %v1283_v61, 1 }
 0x204   :  { %v1285_v44 = vadd.f32 %v1284_v43, %v1283_v61  ;;  %v3838_v43 = vld [vmem:[#allocation3_spill] sm:$0xff] }
 0x206   :  { %v1286_v54 = vmul.f32 0.001953125, %v1285_v44 }
 0x208   :  { %v1287_v11 = vadd.f32 1e-05, %v1286_v54  ;;  %v3844_v54 = vld [vmem:[#allocation9_spill] sm:$0xff] }
 0x20a   :  { %1809 = vrsqrt.f32 %v1287_v11 }
 0x217   :  { %v2837_v2 = vpop.eup %1809 }
 0x218   :  { %v2841_v33 = vmul.f32 %v2837_v2, %v2391_v42  ;;  %v2845_v30 = vmul.f32 %v2837_v2, %v2395_v9  ;;  %v2849_v46 = vmul.f32 %v2837_v2, %v2399_v40  ;;  %v2853_v61 = vmul.f32 %v2837_v2, %v2403_v12 }
 0x219   :  { %v2857_v44 = vmul.f32 %v2837_v2, %v2411_v55  ;;  %v2861_v42 = vmul.f32 %v2837_v2, %v2417_v59  ;;  %v2865_v9 = vmul.f32 %v2837_v2, %v2425_v58  ;;  %v2869_v40 = vmul.f32 %v2837_v2, %v2432_v23 }
 0x21a   :  { %v2873_v12 = vmul.f32 %v2837_v2, %v2439_v21  ;;  %v2877_v55 = vmul.f32 %v2837_v2, %v2446_v29  ;;  %v2881_v59 = vmul.f32 %v2837_v2, %v2453_v39  ;;  %v2885_v58 = vmul.f32 %v2837_v2, %v2460_v57 }
 0x21b   :  { %v2889_v23 = vmul.f32 %v2837_v2, %v2467_v56  ;;  %v2893_v21 = vmul.f32 %v2837_v2, %v2474_v0  ;;  %v2897_v29 = vmul.f32 %v2837_v2, %v2481_v10  ;;  %v2901_v39 = vmul.f32 %v2837_v2, %v2488_v22 }
 0x21c   :  { %v2905_v57 = vmul.f32 %v2837_v2, %v2495_v19  ;;  %v2909_v56 = vmul.f32 %v2837_v2, %v2502_v32  ;;  %v2913_v0 = vmul.f32 %v2837_v2, %v2509_v47  ;;  %v2917_v10 = vmul.f32 %v2837_v2, %v2516_v62 }
 0x21d   :  { %v2921_v22 = vmul.f32 %v2837_v2, %v2523_v4  ;;  %v2925_v19 = vmul.f32 %v2837_v2, %v2530_v14  ;;  %v2929_v32 = vmul.f32 %v2837_v2, %v2537_v28  ;;  %v2933_v47 = vmul.f32 %v2837_v2, %v2544_v51 }
 0x21e   :  { %v2937_v62 = vmul.f32 %v2837_v2, %v2551_v49  ;;  %v2941_v4 = vmul.f32 %v2837_v2, %v2558_v1  ;;  %v2945_v14 = vmul.f32 %v2837_v2, %v2565_v26  ;;  %v2949_v28 = vmul.f32 %v2837_v2, %v2572_v38 }
 0x21f   :  { %v2953_v51 = vmul.f32 %v2837_v2, %v2579_v35  ;;  %v2957_v49 = vmul.f32 %v2837_v2, %v2586_v5  ;;  %v2961_v1 = vmul.f32 %v2837_v2, %v2593_v3  ;;  %v2965_v26 = vmul.f32 %v2837_v2, %v3837_v48  ;;  %v3845_v48 = vld [vmem:[#allocation10_spill] sm:$0xff] }
 0x220   :  { %v2969_v38 = vmul.f32 %v2837_v2, %v2607_v37  ;;  %v2973_v35 = vmul.f32 %v2837_v2, %v3838_v43  ;;  %v2977_v5 = vmul.f32 %v2837_v2, %v2621_v27  ;;  %v2981_v3 = vmul.f32 %v2837_v2, %v3839_v52 }
 0x221   :  { %v2985_v31 = vmul.f32 %v2837_v2, %v2635_v15  ;;  %v2989_v37 = vmul.f32 %v2837_v2, %v3840_v17  ;;  %v2993_v63 = vmul.f32 %v2837_v2, %v2649_v7  ;;  %v2997_v27 = vmul.f32 %v2837_v2, %v3841_v6  ;;  %v3846_v17 = vld [vmem:[#allocation11_spill] sm:$0xff]  ;;  %v3847_v6 = vld [vmem:[#allocation12_spill] sm:$0xff] }
 0x222   :  { %v3001_v45 = vmul.f32 %v2837_v2, %v2663_v18  ;;  %v3005_v15 = vmul.f32 %v2837_v2, %v3842_v36  ;;  %v3009_v25 = vmul.f32 %v2837_v2, %v3843_v20  ;;  %v3013_v7 = vmul.f32 %v2837_v2, %v2684_v8  ;;  %v3848_v20 = vld [vmem:[#allocation13_spill] sm:$0xff] }
 0x223   :  { %v3017_v11 = vmul.f32 %v2837_v2, %v3844_v54  ;;  %v3021_v18 = vmul.f32 %v2837_v2, %v2698_v16  ;;  %v3025_v43 = vmul.f32 %v2837_v2, %v3845_v48  ;;  %v3029_v52 = vmul.f32 %v2837_v2, %v2712_v60 }
 0x224   :  { %v3033_v8 = vmul.f32 %v2837_v2, %v3846_v17  ;;  %v3037_v36 = vmul.f32 %v2837_v2, %v3847_v6  ;;  %v3041_v16 = vmul.f32 %v2837_v2, %v3848_v20  ;;  %v3045_v54 = vmul.f32 %v2837_v2, %v2740_v34  ;;  %v3066_v34 = vld [vmem:[%s3748_s3] ss:$0 sm:$0xff] }
 0x225   :  { %v3049_v60 = vmul.f32 %v2837_v2, %v2747_v41  ;;  %v3053_v48 = vmul.f32 %v2837_v2, %v2754_v53  ;;  %v3057_v17 = vmul.f32 %v2837_v2, %v2761_v24  ;;  %v3061_v6 = vmul.f32 %v2837_v2, %v2768_v50  ;;  %v3855_v20 = vld [vmem:[#allocation14_spill] sm:$0xff] }
 0x226   :  { %3849 = vst [vmem:[#allocation2_spill] sm:$0xff] %v3041_v16  ;;  %3850 = vst [vmem:[#allocation3_spill] sm:$0xff] %v3045_v54  ;;  %v3070_v41 = vmul.f32 %v2837_v2, %v3855_v20  ;;  %v3861_v16 = vld [vmem:[#allocation17_spill] sm:$0xff] }
 0x227   :  { %3851 = vst [vmem:[#allocation4_spill] sm:$0xff] %v3049_v60  ;;  %3852 = vst [vmem:[#allocation5_spill] sm:$0xff] %v3053_v48  ;;  %v3857_v60 = vld [vmem:[#allocation15_spill] sm:$0xff]  ;;  %v3858_v48 = vld [vmem:[#allocation16_spill] sm:$0xff]  ;;  %v3090_v20 = vmul.f32 %v2837_v2, %v3861_v16  ;;  %v3110_v16 = vmul.f32 %v3066_v34, %v2849_v46  ;;  %v3134_v46 = vmul.f32 %v3066_v34, %v2873_v12 }
 0x228   :  { %3853 = vst [vmem:[#allocation6_spill] sm:$0xff] %v3057_v17  ;;  %3854 = vst [vmem:[#allocation7_spill] sm:$0xff] %v3061_v6  ;;  %v3074_v53 = vmul.f32 %v2837_v2, %v3857_v60  ;;  %v3078_v24 = vmul.f32 %v2837_v2, %v3858_v48  ;;  %v3859_v17 = vld [vmem:[#allocation18_spill] sm:$0xff]  ;;  %v3860_v6 = vld [vmem:[#allocation19_spill] sm:$0xff]  ;;  %v3098_v48 = vmul.f32 %v2837_v2, %v2824_v13 }
 0x229   :  { %3856 = vst [vmem:[#allocation8_spill] sm:$0xff] %v3070_v41  ;;  %v3082_v50 = vmul.f32 %v2837_v2, %v3859_v17  ;;  %v3086_v54 = vmul.f32 %v2837_v2, %v3860_v6  ;;  %v3862_v41 = vld [vmem:[#allocation20_spill] sm:$0xff]  ;;  %v3102_v17 = vmul.f32 %v3066_v34, %v2841_v33  ;;  %v3106_v6 = vmul.f32 %v3066_v34, %v2845_v30 }
 0x22a   :  { %v3094_v60 = vmul.f32 %v2837_v2, %v3862_v41  ;;  %v3114_v41 = vmul.f32 %v3066_v34, %v2853_v61  ;;  %v3118_v13 = vmul.f32 %v3066_v34, %v2857_v44  ;;  %v3122_v2 = vmul.f32 %v3066_v34, %v2861_v42 }
 0x22b   :  { %v3126_v33 = vmul.f32 %v3066_v34, %v2865_v9  ;;  %v3130_v30 = vmul.f32 %v3066_v34, %v2869_v40  ;;  %v3138_v61 = vmul.f32 %v3066_v34, %v2877_v55  ;;  %v3142_v44 = vmul.f32 %v3066_v34, %v2881_v59 }
 0x22c   :  { %v3146_v42 = vmul.f32 %v3066_v34, %v2885_v58  ;;  %v3150_v9 = vmul.f32 %v3066_v34, %v2889_v23  ;;  %v3154_v40 = vmul.f32 %v3066_v34, %v2893_v21  ;;  %v3158_v12 = vmul.f32 %v3066_v34, %v2897_v29 }
 0x22d   :  { %v3162_v55 = vmul.f32 %v3066_v34, %v2901_v39  ;;  %v3166_v59 = vmul.f32 %v3066_v34, %v2905_v57  ;;  %v3170_v58 = vmul.f32 %v3066_v34, %v2909_v56  ;;  %v3174_v23 = vmul.f32 %v3066_v34, %v2913_v0 }
 0x22e   :  { %v3178_v21 = vmul.f32 %v3066_v34, %v2917_v10  ;;  %v3182_v29 = vmul.f32 %v3066_v34, %v2921_v22  ;;  %v3186_v39 = vmul.f32 %v3066_v34, %v2925_v19  ;;  %v3190_v57 = vmul.f32 %v3066_v34, %v2929_v32 }
 0x22f   :  { %v3194_v56 = vmul.f32 %v3066_v34, %v2933_v47  ;;  %v3198_v0 = vmul.f32 %v3066_v34, %v2937_v62  ;;  %v3202_v10 = vmul.f32 %v3066_v34, %v2941_v4  ;;  %v3206_v22 = vmul.f32 %v3066_v34, %v2945_v14 }
 0x230   :  { %v3210_v19 = vmul.f32 %v3066_v34, %v2949_v28  ;;  %v3214_v32 = vmul.f32 %v3066_v34, %v2953_v51  ;;  %v3218_v47 = vmul.f32 %v3066_v34, %v2957_v49  ;;  %v3222_v62 = vmul.f32 %v3066_v34, %v2961_v1 }
 0x231   :  { %v3226_v4 = vmul.f32 %v3066_v34, %v2965_v26  ;;  %v3230_v14 = vmul.f32 %v3066_v34, %v2969_v38  ;;  %v3234_v28 = vmul.f32 %v3066_v34, %v2973_v35  ;;  %v3238_v51 = vmul.f32 %v3066_v34, %v2977_v5 }
 0x232   :  { %v3242_v49 = vmul.f32 %v3066_v34, %v2981_v3  ;;  %v3246_v1 = vmul.f32 %v3066_v34, %v2985_v31  ;;  %v3250_v26 = vmul.f32 %v3066_v34, %v2989_v37  ;;  %v3254_v38 = vmul.f32 %v3066_v34, %v2993_v63 }
 0x233   :  { %v3258_v35 = vmul.f32 %v3066_v34, %v2997_v27  ;;  %v3262_v5 = vmul.f32 %v3066_v34, %v3001_v45  ;;  %v3266_v3 = vmul.f32 %v3066_v34, %v3005_v15  ;;  %v3270_v31 = vmul.f32 %v3066_v34, %v3009_v25 }
 0x234   :  { %v3274_v37 = vmul.f32 %v3066_v34, %v3013_v7  ;;  %v3278_v63 = vmul.f32 %v3066_v34, %v3017_v11  ;;  %v3282_v27 = vmul.f32 %v3066_v34, %v3021_v18  ;;  %v3286_v45 = vmul.f32 %v3066_v34, %v3025_v43  ;;  %v3868_v11 = vld [vmem:[#allocation2_spill] sm:$0xff] }
 0x235   :  { %v3290_v15 = vmul.f32 %v3066_v34, %v3029_v52  ;;  %v3294_v25 = vmul.f32 %v3066_v34, %v3033_v8  ;;  %v3298_v7 = vmul.f32 %v3066_v34, %v3037_v36  ;;  %v3302_v18 = vmul.f32 %v3066_v34, %v3868_v11 }
 0x236   :  { %3863 = vst [vmem:[#allocation9_spill] sm:$0xff] %v3282_v27  ;;  %3864 = vst [vmem:[#allocation10_spill] sm:$0xff] %v3286_v45  ;;  %v3869_v27 = vld [vmem:[#allocation3_spill] sm:$0xff]  ;;  %v3871_v45 = vld [vmem:[#allocation4_spill] sm:$0xff] }
 0x237   :  { %3865 = vst [vmem:[#allocation11_spill] sm:$0xff] %v3290_v15  ;;  %3866 = vst [vmem:[#allocation12_spill] sm:$0xff] %v3294_v25  ;;  %v3306_v43 = vmul.f32 %v3066_v34, %v3869_v27  ;;  %v3310_v52 = vmul.f32 %v3066_v34, %v3871_v45  ;;  %v3872_v15 = vld [vmem:[#allocation5_spill] sm:$0xff]  ;;  %v3873_v25 = vld [vmem:[#allocation6_spill] sm:$0xff] }
 0x238   :  { %3867 = vst [vmem:[#allocation13_spill] sm:$0xff] %v3298_v7  ;;  %v3314_v8 = vmul.f32 %v3066_v34, %v3872_v15  ;;  %v3318_v36 = vmul.f32 %v3066_v34, %v3873_v25  ;;  %v3874_v7 = vld [vmem:[#allocation7_spill] sm:$0xff]  ;;  %v3327_v27 = vld [vmem:[%s3749_s4] ss:$0 sm:$0xff]  ;;  %v3335_v15 = vmul.f32 %v3066_v34, %v3074_v53  ;;  %v3339_v25 = vmul.f32 %v3066_v34, %v3078_v24 }
 0x239   :  { %3870 = vst [vmem:[#allocation14_spill] sm:$0xff] %v3306_v43  ;;  %v3322_v11 = vmul.f32 %v3066_v34, %v3874_v7  ;;  %v3876_v43 = vld [vmem:[#allocation8_spill] sm:$0xff]  ;;  %v3343_v7 = vmul.f32 %v3066_v34, %v3082_v50  ;;  %v3355_v53 = vmul.f32 %v3066_v34, %v3094_v60  ;;  %v3359_v24 = vmul.f32 %v3066_v34, %v3098_v48 }
 0x23a   :  { %v3331_v45 = vmul.f32 %v3066_v34, %v3876_v43  ;;  %v3351_v43 = vmul.f32 %v3066_v34, %v3090_v20  ;;  %v1431_v50 = vadd.f32 %v3327_v27, %v3102_v17  ;;  %v1434_v20 = vadd.f32 %v3327_v27, %v3114_v41 }
 0x23b   :  { %3875 = vst [vmem:[#allocation15_spill] sm:$0xff] %v3322_v11  ;;  %3877 = vst [vmem:[#allocation16_spill] sm:$0xff] %v3343_v7  ;;  %v3347_v11 = vmul.f32 %v3066_v34, %v3086_v54  ;;  %v1432_v7 = vadd.f32 %v3327_v27, %v3106_v6  ;;  %v1433_v54 = vadd.f32 %v3327_v27, %v3110_v16 }
 0x23c   :  { %3878 = vst [vmem:[#allocation18_spill] sm:$0xff] %v3355_v53  ;;  %v1435_v60 = vadd.f32 %v3327_v27, %v3118_v13  ;;  %v1436_v53 = vadd.f32 %v3327_v27, %v3122_v2  ;;  %v1437_v34 = vadd.f32 %v3327_v27, %v3126_v33  ;;  %v1438_v48 = vadd.f32 %v3327_v27, %v3130_v30 }
 0x23d   :  { %v1439_v17 = vadd.f32 %v3327_v27, %v3134_v46  ;;  %v1440_v6 = vadd.f32 %v3327_v27, %v3138_v61  ;;  %v1441_v16 = vadd.f32 %v3327_v27, %v3142_v44  ;;  %v1442_v41 = vadd.f32 %v3327_v27, %v3146_v42  ;;  %1495 = vst.msk [vmem:[%s3750_s5] sm:$0xff] %vm889_vm5, %v1431_v50 }
 0x23e   :  { %1496 = vst.msk [vmem:[%s3750_s5 + $0x8] sm:$0xff] %vm889_vm5, %v1432_v7  ;;  %1497 = vst.msk [vmem:[%s3750_s5 + $0x10] sm:$0xff] %vm889_vm5, %v1433_v54  ;;  %v1443_v13 = vadd.f32 %v3327_v27, %v3150_v9  ;;  %v1444_v2 = vadd.f32 %v3327_v27, %v3154_v40  ;;  %v1445_v33 = vadd.f32 %v3327_v27, %v3158_v12 }
 0x23f   :  { %1498 = vst.msk [vmem:[%s3750_s5 + $0x18] sm:$0xff] %vm889_vm5, %v1434_v20  ;;  %v1446_v30 = vadd.f32 %v3327_v27, %v3162_v55  ;;  %1499 = vst.msk [vmem:[%s3750_s5 + $0x20] sm:$0xff] %vm889_vm5, %v1435_v60  ;;  %v1447_v46 = vadd.f32 %v3327_v27, %v3166_v59  ;;  %v1448_v61 = vadd.f32 %v3327_v27, %v3170_v58  ;;  %v3883_v7 = vld [vmem:[#allocation13_spill] sm:$0xff] }
 0x240   :  { %1500 = vst.msk [vmem:[%s3750_s5 + $0x28] sm:$0xff] %vm889_vm5, %v1436_v53  ;;  %1501 = vst.msk [vmem:[%s3750_s5 + $0x30] sm:$0xff] %vm889_vm5, %v1437_v34  ;;  %v1449_v44 = vadd.f32 %v3327_v27, %v3174_v23  ;;  %v1450_v42 = vadd.f32 %v3327_v27, %v3178_v21  ;;  %v1451_v9 = vadd.f32 %v3327_v27, %v3182_v29  ;;  %v3884_v54 = vld [vmem:[#allocation14_spill] sm:$0xff] }
 0x241   :  { %1502 = vst.msk [vmem:[%s3750_s5 + $0x38] sm:$0xff] %vm889_vm5, %v1438_v48  ;;  %1503 = vst.msk [vmem:[%s3750_s5 + $0x40] sm:$0xff] %vm889_vm5, %v1439_v17  ;;  %v1452_v40 = vadd.f32 %v3327_v27, %v3186_v39  ;;  %v1453_v12 = vadd.f32 %v3327_v27, %v3190_v57  ;;  %v1454_v55 = vadd.f32 %v3327_v27, %v3194_v56 }
 0x242   :  { %1504 = vst.msk [vmem:[%s3750_s5 + $0x48] sm:$0xff] %vm889_vm5, %v1440_v6  ;;  %1505 = vst.msk [vmem:[%s3750_s5 + $0x50] sm:$0xff] %vm889_vm5, %v1441_v16  ;;  %v1455_v59 = vadd.f32 %v3327_v27, %v3198_v0  ;;  %v1456_v58 = vadd.f32 %v3327_v27, %v3202_v10  ;;  %v1457_v23 = vadd.f32 %v3327_v27, %v3206_v22  ;;  %v3885_v48 = vld [vmem:[#allocation15_spill] sm:$0xff]  ;;  %v3886_v6 = vld [vmem:[#allocation16_spill] sm:$0xff] }
 0x243   :  { %1506 = vst.msk [vmem:[%s3750_s5 + $0x58] sm:$0xff] %vm889_vm5, %v1442_v41  ;;  %1507 = vst.msk [vmem:[%s3750_s5 + $0x60] sm:$0xff] %vm889_vm5, %v1443_v13  ;;  %v1458_v21 = vadd.f32 %v3327_v27, %v3210_v19  ;;  %v1459_v29 = vadd.f32 %v3327_v27, %v3214_v32  ;;  %v1460_v39 = vadd.f32 %v3327_v27, %v3218_v47 }
 0x244   :  { %1508 = vst.msk [vmem:[%s3750_s5 + $0x68] sm:$0xff] %vm889_vm5, %v1444_v2  ;;  %1509 = vst.msk [vmem:[%s3750_s5 + $0x70] sm:$0xff] %vm889_vm5, %v1445_v33  ;;  %v1461_v57 = vadd.f32 %v3327_v27, %v3222_v62  ;;  %v1462_v56 = vadd.f32 %v3327_v27, %v3226_v4  ;;  %v1463_v0 = vadd.f32 %v3327_v27, %v3230_v14 }
 0x245   :  { %1510 = vst.msk [vmem:[%s3750_s5 + $0x78] sm:$0xff] %vm889_vm5, %v1446_v30  ;;  %1511 = vst.msk [vmem:[%s3750_s5 + $0x80] sm:$0xff] %vm889_vm5, %v1447_v46  ;;  %v1464_v10 = vadd.f32 %v3327_v27, %v3234_v28  ;;  %v1465_v22 = vadd.f32 %v3327_v27, %v3238_v51  ;;  %v1466_v19 = vadd.f32 %v3327_v27, %v3242_v49 }
 0x246   :  { %1512 = vst.msk [vmem:[%s3750_s5 + $0x88] sm:$0xff] %vm889_vm5, %v1448_v61  ;;  %1513 = vst.msk [vmem:[%s3750_s5 + $0x90] sm:$0xff] %vm889_vm5, %v1449_v44  ;;  %v1467_v32 = vadd.f32 %v3327_v27, %v3246_v1  ;;  %v1468_v47 = vadd.f32 %v3327_v27, %v3250_v26  ;;  %v1469_v62 = vadd.f32 %v3327_v27, %v3254_v38  ;;  %v3879_v26 = vld [vmem:[#allocation9_spill] sm:$0xff] }
 0x247   :  { %1514 = vst.msk [vmem:[%s3750_s5 + $0x98] sm:$0xff] %vm889_vm5, %v1450_v42  ;;  %1515 = vst.msk [vmem:[%s3750_s5 + $0xa0] sm:$0xff] %vm889_vm5, %v1451_v9  ;;  %v1470_v4 = vadd.f32 %v3327_v27, %v3258_v35  ;;  %v1471_v14 = vadd.f32 %v3327_v27, %v3262_v5  ;;  %v1472_v28 = vadd.f32 %v3327_v27, %v3266_v3  ;;  %v3880_v35 = vld [vmem:[#allocation10_spill] sm:$0xff]  ;;  %v3881_v3 = vld [vmem:[#allocation11_spill] sm:$0xff] }
 0x248   :  { %1516 = vst.msk [vmem:[%s3750_s5 + $0xa8] sm:$0xff] %vm889_vm5, %v1452_v40  ;;  %1517 = vst.msk [vmem:[%s3750_s5 + $0xb0] sm:$0xff] %vm889_vm5, %v1453_v12  ;;  %v1473_v51 = vadd.f32 %v3327_v27, %v3270_v31  ;;  %v1474_v49 = vadd.f32 %v3327_v27, %v3274_v37  ;;  %v1475_v1 = vadd.f32 %v3327_v27, %v3278_v63  ;;  %v3882_v37 = vld [vmem:[#allocation12_spill] sm:$0xff] }
 0x249   :  { %1518 = vst.msk [vmem:[%s3750_s5 + $0xb8] sm:$0xff] %vm889_vm5, %v1454_v55  ;;  %1519 = vst.msk [vmem:[%s3750_s5 + $0xc0] sm:$0xff] %vm889_vm5, %v1455_v59  ;;  %v1476_v38 = vadd.f32 %v3327_v27, %v3879_v26  ;;  %v1477_v5 = vadd.f32 %v3327_v27, %v3880_v35  ;;  %v1478_v31 = vadd.f32 %v3327_v27, %v3881_v3 }
 0x24a   :  { %1520 = vst.msk [vmem:[%s3750_s5 + $0xc8] sm:$0xff] %vm889_vm5, %v1456_v58  ;;  %1521 = vst.msk [vmem:[%s3750_s5 + $0xd0] sm:$0xff] %vm889_vm5, %v1457_v23  ;;  %v1479_v63 = vadd.f32 %v3327_v27, %v3882_v37  ;;  %v1480_v53 = vadd.f32 %v3327_v27, %v3883_v7  ;;  %v1481_v50 = vadd.f32 %v3327_v27, %v3302_v18 }
 0x24b   :  { %1522 = vst.msk [vmem:[%s3750_s5 + $0xd8] sm:$0xff] %vm889_vm5, %v1458_v21  ;;  %1523 = vst.msk [vmem:[%s3750_s5 + $0xe0] sm:$0xff] %vm889_vm5, %v1459_v29  ;;  %v1482_v20 = vadd.f32 %v3327_v27, %v3884_v54  ;;  %v1483_v18 = vadd.f32 %v3327_v27, %v3310_v52  ;;  %v1484_v60 = vadd.f32 %v3327_v27, %v3314_v8 }
 0x24c   :  { %1524 = vst.msk [vmem:[%s3750_s5 + $0xe8] sm:$0xff] %vm889_vm5, %v1460_v39  ;;  %1525 = vst.msk [vmem:[%s3750_s5 + $0xf0] sm:$0xff] %vm889_vm5, %v1461_v57  ;;  %v1485_v34 = vadd.f32 %v3327_v27, %v3318_v36  ;;  %v1486_v17 = vadd.f32 %v3327_v27, %v3885_v48  ;;  %v1487_v52 = vadd.f32 %v3327_v27, %v3331_v45 }
 0x24d   :  { %1526 = vst.msk [vmem:[%s3750_s5 + $0xf8] sm:$0xff] %vm889_vm5, %v1462_v56  ;;  %1527 = vst.msk [vmem:[%s3750_s5 + $0x100] sm:$0xff] %vm889_vm5, %v1463_v0  ;;  %v1488_v8 = vadd.f32 %v3327_v27, %v3335_v15  ;;  %v1489_v36 = vadd.f32 %v3327_v27, %v3339_v25  ;;  %v1490_v16 = vadd.f32 %v3327_v27, %v3886_v6  ;;  %v3887_v25 = vld [vmem:[#allocation18_spill] sm:$0xff] }
 0x24e   :  { %1528 = vst.msk [vmem:[%s3750_s5 + $0x108] sm:$0xff] %vm889_vm5, %v1464_v10  ;;  %1529 = vst.msk [vmem:[%s3750_s5 + $0x110] sm:$0xff] %vm889_vm5, %v1465_v22  ;;  %v1491_v45 = vadd.f32 %v3327_v27, %v3347_v11  ;;  %v1492_v15 = vadd.f32 %v3327_v27, %v3351_v43  ;;  %v1493_v41 = vadd.f32 %v3327_v27, %v3887_v25 }
 0x24f   :  { %1530 = vst.msk [vmem:[%s3750_s5 + $0x118] sm:$0xff] %vm889_vm5, %v1466_v19  ;;  %1531 = vst.msk [vmem:[%s3750_s5 + $0x120] sm:$0xff] %vm889_vm5, %v1467_v32  ;;  %v1494_v13 = vadd.f32 %v3327_v27, %v3359_v24 }
 0x250   :  { %1532 = vst.msk [vmem:[%s3750_s5 + $0x128] sm:$0xff] %vm889_vm5, %v1468_v47  ;;  %1533 = vst.msk [vmem:[%s3750_s5 + $0x130] sm:$0xff] %vm889_vm5, %v1469_v62 }
 0x251   :  { %1534 = vst.msk [vmem:[%s3750_s5 + $0x138] sm:$0xff] %vm889_vm5, %v1470_v4  ;;  %1535 = vst.msk [vmem:[%s3750_s5 + $0x140] sm:$0xff] %vm889_vm5, %v1471_v14 }
 0x252   :  { %1536 = vst.msk [vmem:[%s3750_s5 + $0x148] sm:$0xff] %vm889_vm5, %v1472_v28  ;;  %1537 = vst.msk [vmem:[%s3750_s5 + $0x150] sm:$0xff] %vm889_vm5, %v1473_v51 }
 0x253   :  { %1538 = vst.msk [vmem:[%s3750_s5 + $0x158] sm:$0xff] %vm889_vm5, %v1474_v49  ;;  %1539 = vst.msk [vmem:[%s3750_s5 + $0x160] sm:$0xff] %vm889_vm5, %v1475_v1 }
 0x254   :  { %1540 = vst.msk [vmem:[%s3750_s5 + $0x168] sm:$0xff] %vm889_vm5, %v1476_v38  ;;  %1541 = vst.msk [vmem:[%s3750_s5 + $0x170] sm:$0xff] %vm889_vm5, %v1477_v5 }
 0x255   :  { %1542 = vst.msk [vmem:[%s3750_s5 + $0x178] sm:$0xff] %vm889_vm5, %v1478_v31  ;;  %1543 = vst.msk [vmem:[%s3750_s5 + $0x180] sm:$0xff] %vm889_vm5, %v1479_v63 }
 0x256   :  { %1544 = vst.msk [vmem:[%s3750_s5 + $0x188] sm:$0xff] %vm889_vm5, %v1480_v53  ;;  %1545 = vst.msk [vmem:[%s3750_s5 + $0x190] sm:$0xff] %vm889_vm5, %v1481_v50 }
 0x257   :  { %1546 = vst.msk [vmem:[%s3750_s5 + $0x198] sm:$0xff] %vm889_vm5, %v1482_v20  ;;  %1547 = vst.msk [vmem:[%s3750_s5 + $0x1a0] sm:$0xff] %vm889_vm5, %v1483_v18 }
 0x258   :  { %1548 = vst.msk [vmem:[%s3750_s5 + $0x1a8] sm:$0xff] %vm889_vm5, %v1484_v60  ;;  %1549 = vst.msk [vmem:[%s3750_s5 + $0x1b0] sm:$0xff] %vm889_vm5, %v1485_v34 }
 0x259   :  { %1550 = vst.msk [vmem:[%s3750_s5 + $0x1b8] sm:$0xff] %vm889_vm5, %v1486_v17  ;;  %1551 = vst.msk [vmem:[%s3750_s5 + $0x1c0] sm:$0xff] %vm889_vm5, %v1487_v52 }
 0x25a   :  { %1552 = vst.msk [vmem:[%s3750_s5 + $0x1c8] sm:$0xff] %vm889_vm5, %v1488_v8  ;;  %1553 = vst.msk [vmem:[%s3750_s5 + $0x1d0] sm:$0xff] %vm889_vm5, %v1489_v36 }
 0x25b   :  { %1554 = vst.msk [vmem:[%s3750_s5 + $0x1d8] sm:$0xff] %vm889_vm5, %v1490_v16  ;;  %1555 = vst.msk [vmem:[%s3750_s5 + $0x1e0] sm:$0xff] %vm889_vm5, %v1491_v45 }
 0x25c   :  { %1556 = vst.msk [vmem:[%s3750_s5 + $0x1e8] sm:$0xff] %vm889_vm5, %v1492_v15  ;;  %1557 = vst.msk [vmem:[%s3750_s5 + $0x1f0] sm:$0xff] %vm889_vm5, %v1493_v41 }
 0x25d   :  { %1558 = vst.msk [vmem:[%s3750_s5 + $0x1f8] sm:$0xff] %vm889_vm5, %v1494_v13 }

// kernel: block_fwd.3
= control target key start
LH: loop header
LB: loop body
LE: loop exit
PB: predicated region body
PF: predicated region fallthrough
CT: control target
= control target key end

     0   :  { %v4961_v1 = vmov 0   ;;  %s8338_s0 = inlined_call_operand.vmem [shape: bf16[512,864], index: 0, kind: input, shape index: {}]   ;;  %s8339_s1 = inlined_call_operand.vmem [shape: bf16[864,32], index: 1, kind: input, shape index: {}]   ;;  %s8340_s2 = inlined_call_operand.vmem [shape: f32[1,32], index: 2, kind: input, shape index: {}]   ;;  %s8341_s3 = inlined_call_operand.vmem [shape: f32[1,32], index: 3, kind: input, shape index: {}]   ;;  %s8342_s4 = inlined_call_operand.vmem [shape: f32[1,32], index: 4, kind: input, shape index: {}]   ;;  %s8343_s5 = inlined_call_operand.vmem [shape: f32[512,32], index: 5, kind: input, shape index: {}]   ;;  %s8344_s6 = inlined_call_operand.hbm [shape: f32[512,32], index: 6, kind: output, shape index: {}]  }
   0x1   :  { %v4562_v0 = vld [vmem:[%s8339_s1 + $0x38] sm:$0xff]   ;;  %1937 = vmatprep.subr.bf16.mxu0 %v4961_v1  ;;  %4526 = vmatprep.subr.bf16.mxu1 %v4961_v1  ;;  %v4563_v2 = vld [vmem:[%s8339_s1 + $0x30] sm:$0xff]   ;;  %v4564_v3 = vld [vmem:[%s8339_s1 + $0x28] sm:$0xff]  }
   0x2   :  { %1938 = vmatpush1.bf16.msra.mxu0 %v4562_v0  ;;  %4542 = vmatpush1.bf16.msra.mxu1 %v4562_v0  ;;  %v4565_v4 = vld [vmem:[%s8339_s1 + $0x20] sm:$0xff]   ;;  %v4566_v5 = vld [vmem:[%s8339_s1 + $0x18] sm:$0xff]   ;;  %v4567_v7 = vld [vmem:[%s8339_s1 + $0x10] sm:$0xff]  }
   0x3   :  { %1939 = vmatprep.subr.bf16.mxu0 %v4961_v1  ;;  %4527 = vmatprep.subr.bf16.mxu1 %v4961_v1  ;;  %v4580_v6 = vld [vmem:[%s8338_s0 + $0x4] ss:$28 sps:$4 sm:$0xff]   ;;  %v4568_v9 = vld [vmem:[%s8339_s1 + $0x8] sm:$0xff]   ;;  %v4570_v11 = vld [vmem:[%s8339_s1 + $0x78] sm:$0xff]  }
   0x4   :  { %v4583_v8 = vld [vmem:[%s8338_s0 + $0x544] ss:$28 sps:$4 sm:$0xff]   ;;  %1969 = vmatprep.mubr.bf16.mxu0 %v4580_v6  ;;  %v4571_v12 = vld [vmem:[%s8339_s1 + $0x70] sm:$0xff]   ;;  %v4572_v13 = vld [vmem:[%s8339_s1 + $0x68] sm:$0xff]  }
   0x5   :  { %2161 = vmatprep.mubr.bf16.mxu1 %v4583_v8  ;;  %v4569_v10 = vld [vmem:[%s8339_s1] sm:$0xff]   ;;  %v4574_v15 = vld [vmem:[%s8339_s1 + $0x58] sm:$0xff]   ;;  %v4575_v16 = vld [vmem:[%s8339_s1 + $0x50] sm:$0xff]  }
   0x6   :  { %1940 = vmatpush1.bf16.msra.mxu0 %v4563_v2  ;;  %4543 = vmatpush1.bf16.msra.mxu1 %v4563_v2  ;;  %v4573_v14 = vld [vmem:[%s8339_s1 + $0x60] sm:$0xff]   ;;  %v4576_v17 = vld [vmem:[%s8339_s1 + $0x48] sm:$0xff]   ;;  %v4584_v21 = vld [vmem:[%s8339_s1 + $0xb8] sm:$0xff]  }
   0x7   :  { %1941 = vmatprep.subr.bf16.mxu0 %v4961_v1  ;;  %4528 = vmatprep.subr.bf16.mxu1 %v4961_v1  ;;  %v4577_v18 = vld [vmem:[%s8339_s1 + $0x40] sm:$0xff]   ;;  %v4586_v22 = vld [vmem:[%s8339_s1 + $0x138] sm:$0xff]   ;;  %v4585_v25 = vld [vmem:[%s8339_s1 + $0xb0] sm:$0xff]  }
   0x8   :  { %v4578_v19 = vld [vmem:[%s8338_s0] ss:$28 sps:$4 sm:$0xff]   ;;  %v4602_v26 = vld [vmem:[%s8339_s1 + $0x130] sm:$0xff]   ;;  %v4593_v29 = vld [vmem:[%s8339_s1 + $0xa8] sm:$0xff]  }
   0x9   :  { %v4581_v20 = vld [vmem:[%s8338_s0 + $0x540] ss:$28 sps:$4 sm:$0xff]   ;;  %v4591_v27 = vld [vmem:[%s8338_s0 + $0x38] ss:$28 sps:$4 sm:$0xff]   ;;  %v4612_v32 = vld [vmem:[%s8339_s1 + $0x128] sm:$0xff]  }
   0xa   :  { %1942 = vmatpush1.bf16.msra.mxu0 %v4564_v3  ;;  %4544 = vmatpush1.bf16.msra.mxu1 %v4564_v3  ;;  %v4587_v23 = vld [vmem:[%s8338_s0 + $0x3c] ss:$28 sps:$4 sm:$0xff]   ;;  %v4595_v30 = vld [vmem:[%s8338_s0 + $0x74] ss:$28 sps:$4 sm:$0xff]   ;;  %v4594_v33 = vld [vmem:[%s8339_s1 + $0xa0] sm:$0xff]  }
   0xb   :  { %1943 = vmatprep.subr.bf16.mxu0 %v4961_v1  ;;  %4529 = vmatprep.subr.bf16.mxu1 %v4961_v1  ;;  %v4589_v24 = vld [vmem:[%s8338_s0 + $0x57c] ss:$28 sps:$4 sm:$0xff]   ;;  %v4597_v31 = vld [vmem:[%s8338_s0 + $0x5b4] ss:$28 sps:$4 sm:$0xff]   ;;  %v4628_v35 = vld [vmem:[%s8339_s1 + $0x120] sm:$0xff]  }
   0xc   :  { %v4592_v28 = vld [vmem:[%s8338_s0 + $0x578] ss:$28 sps:$4 sm:$0xff]   ;;  %v4599_v34 = vld [vmem:[%s8338_s0 + $0x70] ss:$28 sps:$4 sm:$0xff]   ;;  %v4608_v42 = vld [vmem:[%s8338_s0 + $0xa8] ss:$28 sps:$4 sm:$0xff]  }
   0xd   :  { %v4600_v36 = vld [vmem:[%s8338_s0 + $0x5b0] ss:$28 sps:$4 sm:$0xff]   ;;  %v4601_v37 = vld [vmem:[%s8339_s1 + $0x98] sm:$0xff]   ;;  %v4609_v43 = vld [vmem:[%s8338_s0 + $0x5e8] ss:$28 sps:$4 sm:$0xff]  }
   0xe   :  { %1944 = vmatpush1.bf16.msra.mxu0 %v4565_v4  ;;  %4545 = vmatpush1.bf16.msra.mxu1 %v4565_v4  ;;  %v4604_v38 = vld [vmem:[%s8338_s0 + $0xac] ss:$28 sps:$4 sm:$0xff]   ;;  %v4638_v40 = vld [vmem:[%s8339_s1 + $0x118] sm:$0xff]   ;;  %v4603_v41 = vld [vmem:[%s8339_s1 + $0x90] sm:$0xff]  }
   0xf   :  { %1945 = vmatprep.subr.bf16.mxu0 %v4961_v1  ;;  %4530 = vmatprep.subr.bf16.mxu1 %v4961_v1  ;;  %v4606_v39 = vld [vmem:[%s8338_s0 + $0x5ec] ss:$28 sps:$4 sm:$0xff]   ;;  %v4613_v45 = vld [vmem:[%s8338_s0 + $0xe4] ss:$28 sps:$4 sm:$0xff]   ;;  %v4654_v47 = vld [vmem:[%s8339_s1 + $0x110] sm:$0xff]  }
  0x10   :  { %v4610_v44 = vld [vmem:[%s8339_s1 + $0x88] sm:$0xff]   ;;  %v4615_v46 = vld [vmem:[%s8338_s0 + $0x624] ss:$28 sps:$4 sm:$0xff]   ;;  %v4619_v52 = vld [vmem:[%s8339_s1 + $0xf8] sm:$0xff]  }
  0x11   :  { %v4611_v48 = vld [vmem:[%s8339_s1 + $0x80] sm:$0xff]   ;;  %v4661_v51 = vld [vmem:[%s8339_s1 + $0x108] sm:$0xff]   ;;  %v4621_v53 = vld [vmem:[%s8338_s0 + $0x11c] ss:$28 sps:$4 sm:$0xff]  }
  0x12   :  { %1946 = vmatpush1.bf16.msra.mxu0 %v4566_v5  ;;  %4546 = vmatpush1.bf16.msra.mxu1 %v4566_v5  ;;  %v4617_v49 = vld [vmem:[%s8338_s0 + $0xe0] ss:$28 sps:$4 sm:$0xff]   ;;  %v4620_v56 = vld [vmem:[%s8339_s1 + $0xf0] sm:$0xff]   ;;  %v4627_v59 = vld [vmem:[%s8339_s1 + $0xe8] sm:$0xff]  }
  0x13   :  { %1947 = vmatprep.subr.bf16.mxu0 %v4961_v1  ;;  %4531 = vmatprep.subr.bf16.mxu1 %v4961_v1  ;;  %v4618_v50 = vld [vmem:[%s8338_s0 + $0x620] ss:$28 sps:$4 sm:$0xff]   ;;  %v4625_v57 = vld [vmem:[%s8338_s0 + $0x118] ss:$28 sps:$4 sm:$0xff]   ;;  %v4634_v0 = vld [vmem:[%s8338_s0 + $0x150] ss:$28 sps:$4 sm:$0xff]  }
  0x14   :  { %v4623_v54 = vld [vmem:[%s8338_s0 + $0x65c] ss:$28 sps:$4 sm:$0xff]   ;;  %v4674_v55 = vld [vmem:[%s8339_s1 + $0x100] sm:$0xff]   ;;  %v4630_v60 = vld [vmem:[%s8338_s0 + $0x154] ss:$28 sps:$4 sm:$0xff]  }
  0x15   :  { %v4626_v58 = vld [vmem:[%s8338_s0 + $0x658] ss:$28 sps:$4 sm:$0xff]   ;;  %v4629_v63 = vld [vmem:[%s8339_s1 + $0xe0] sm:$0xff]   ;;  %v4635_v3 = vld [vmem:[%s8338_s0 + $0x690] ss:$28 sps:$4 sm:$0xff]  }
  0x16   :  { %1948 = vmatpush1.bf16.msra.mxu0 %v4567_v7  ;;  %4547 = vmatpush1.bf16.msra.mxu1 %v4567_v7  ;;  %v4632_v61 = vld [vmem:[%s8338_s0 + $0x694] ss:$28 sps:$4 sm:$0xff]   ;;  %v4681_v62 = vld [vmem:[%s8339_s1 + $0x178] sm:$0xff]   ;;  %v4639_v5 = vld [vmem:[%s8338_s0 + $0x18c] ss:$28 sps:$4 sm:$0xff]  }
  0x17   :  { %1949 = vmatprep.subr.bf16.mxu0 %v4961_v1  ;;  %4532 = vmatprep.subr.bf16.mxu1 %v4961_v1  ;;  %v4695_v2 = vld [vmem:[%s8339_s1 + $0x170] sm:$0xff]   ;;  %v4636_v4 = vld [vmem:[%s8339_s1 + $0xd8] sm:$0xff]   ;;  %v4641_v6 = vld [vmem:[%s8338_s0 + $0x6cc] ss:$28 sps:$4 sm:$0xff]  }
  0x18   :  { %v4702_v7 = vld [vmem:[%s8339_s1 + $0x168] sm:$0xff]   ;;  %v4637_v8 = vld [vmem:[%s8339_s1 + $0xd0] sm:$0xff]  }
  0x1a   :  { %1950 = vmatpush1.bf16.msra.mxu0 %v4568_v9  ;;  %4548 = vmatpush1.bf16.msra.mxu1 %v4568_v9  ;;  %v4643_v9 = vld [vmem:[%s8338_s0 + $0x188] ss:$28 sps:$4 sm:$0xff]  }
  0x1b   :  { %1951 = vmatprep.subr.bf16.mxu0 %v4961_v1  ;;  %4533 = vmatprep.subr.bf16.mxu1 %v4961_v1 }
  0x1e   :  { %1952 = vmatpush1.bf16.msra.mxu0 %v4569_v10  ;;  %4549 = vmatpush1.bf16.msra.mxu1 %v4569_v10  ;;  %v4644_v10 = vld [vmem:[%s8338_s0 + $0x6c8] ss:$28 sps:$4 sm:$0xff]  }
  0x1f   :  { %1953 = vmatprep.subr.bf16.mxu0 %v4961_v1  ;;  %4534 = vmatprep.subr.bf16.mxu1 %v4961_v1 }
  0x22   :  { %1954 = vmatpush2.bf16.msra.mxu0 %v4570_v11  ;;  %4550 = vmatpush2.bf16.msra.mxu1 %v4570_v11  ;;  %v4645_v11 = vld [vmem:[%s8339_s1 + $0xc8] sm:$0xff]  }
  0x23   :  { %1955 = vmatprep.subr.bf16.mxu0 %v4961_v1  ;;  %4535 = vmatprep.subr.bf16.mxu1 %v4961_v1 }
  0x26   :  { %1956 = vmatpush2.bf16.msra.mxu0 %v4571_v12  ;;  %4551 = vmatpush2.bf16.msra.mxu1 %v4571_v12  ;;  %v4647_v12 = vld [vmem:[%s8338_s0 + $0x1c4] ss:$28 sps:$4 sm:$0xff]  }
  0x27   :  { %1957 = vmatprep.subr.bf16.mxu0 %v4961_v1  ;;  %4536 = vmatprep.subr.bf16.mxu1 %v4961_v1 }
  0x2a   :  { %1958 = vmatpush2.bf16.msra.mxu0 %v4572_v13  ;;  %4552 = vmatpush2.bf16.msra.mxu1 %v4572_v13  ;;  %v4651_v13 = vld [vmem:[%s8338_s0 + $0xc] ss:$28 sps:$4 sm:$0xff]  }
  0x2b   :  { %1959 = vmatprep.subr.bf16.mxu0 %v4961_v1  ;;  %4537 = vmatprep.subr.bf16.mxu1 %v4961_v1 }
  0x2e   :  { %1960 = vmatpush2.bf16.msra.mxu0 %v4573_v14  ;;  %4553 = vmatpush2.bf16.msra.mxu1 %v4573_v14  ;;  %v4715_v14 = vld [vmem:[%s8339_s1 + $0x160] sm:$0xff]  }
  0x2f   :  { %1961 = vmatprep.subr.bf16.mxu0 %v4961_v1  ;;  %4538 = vmatprep.subr.bf16.mxu1 %v4961_v1 }
  0x32   :  { %1962 = vmatpush2.bf16.msra.mxu0 %v4574_v15  ;;  %4554 = vmatpush2.bf16.msra.mxu1 %v4574_v15  ;;  %v4646_v15 = vld [vmem:[%s8339_s1 + $0xc0] sm:$0xff]  }
  0x33   :  { %1963 = vmatprep.subr.bf16.mxu0 %v4961_v1  ;;  %4539 = vmatprep.subr.bf16.mxu1 %v4961_v1 }
  0x36   :  { %1964 = vmatpush2.bf16.msra.mxu0 %v4575_v16  ;;  %4555 = vmatpush2.bf16.msra.mxu1 %v4575_v16  ;;  %v4653_v16 = vld [vmem:[%s8339_s1 + $0x1a8] sm:$0xff]  }
  0x37   :  { %1965 = vmatprep.subr.bf16.mxu0 %v4961_v1  ;;  %4540 = vmatprep.subr.bf16.mxu1 %v4961_v1 }
  0x3a   :  { %1966 = vmatpush2.bf16.msra.mxu0 %v4576_v17  ;;  %4556 = vmatpush2.bf16.msra.mxu1 %v4576_v17  ;;  %v4722_v17 = vld [vmem:[%s8339_s1 + $0x158] sm:$0xff]  }
  0x3b   :  { %1967 = vmatprep.subr.bf16.mxu0 %v4961_v1  ;;  %4541 = vmatprep.subr.bf16.mxu1 %v4961_v1 }
  0x3e   :  { %1968 = vmatpush2.bf16.msra.mxu0 %v4577_v18  ;;  %4557 = vmatpush2.bf16.msra.mxu1 %v4577_v18  ;;  %v4649_v18 = vld [vmem:[%s8338_s0 + $0x8] ss:$28 sps:$4 sm:$0xff]  }
  0x3f   :  { %2226 = vmatprep.subr.bf16.mxu1 %v4961_v1  ;;  %2515 = vmatprep.subr.bf16.mxu0 %v4961_v1 }
  0x41   :  { %1970 = vmatmul.mubr.bf16.vlgmr.msra.gmra.mxu0 %v4578_v19  ;;  %2162 = vmatmul.mubr.bf16.vlgmr.msra.gmra.mxu1 %v4581_v20  ;;  %v4652_v19 = vld [vmem:[%s8338_s0 + $0x1c0] ss:$28 sps:$4 sm:$0xff]  }
  0x42   :  { %2227 = vmatpush1.bf16.msra.mxu1 %v4584_v21  ;;  %2516 = vmatpush1.bf16.msra.mxu0 %v4586_v22  ;;  %v4655_v20 = vld [vmem:[%s8338_s0 + $0x1fc] ss:$28 sps:$4 sm:$0xff]   ;;  %v4657_v21 = vld [vmem:[%s8338_s0 + $0x44] ss:$28 sps:$4 sm:$0xff]  }
  0x43   :  { %2228 = vmatprep.subr.bf16.mxu1 %v4961_v1  ;;  %1977 = vmatprep.mubr.bf16.mxu0 %v4587_v23  ;;  %v4688_v22 = vld [vmem:[%s8339_s1 + $0x1a0] sm:$0xff]   ;;  %v4736_v23 = vld [vmem:[%s8339_s1 + $0x150] sm:$0xff]  }
  0x44   :  { %2169 = vmatprep.mubr.bf16.mxu1 %v4589_v24  ;;  %2517 = vmatprep.subr.bf16.mxu0 %v4961_v1  ;;  %v4723_v24 = vld [vmem:[%s8339_s1 + $0x198] sm:$0xff]  }
  0x46   :  { %2229 = vmatpush1.bf16.msra.mxu1 %v4585_v25  ;;  %2518 = vmatpush1.bf16.msra.mxu0 %v4602_v26  ;;  %v4659_v25 = vld [vmem:[%s8338_s0 + $0x1f8] ss:$28 sps:$4 sm:$0xff]   ;;  %v4660_v26 = vld [vmem:[%s8338_s0 + $0x40] ss:$28 sps:$4 sm:$0xff]  }
  0x47   :  { %2230 = vmatprep.subr.bf16.mxu1 %v4961_v1  ;;  %2519 = vmatprep.subr.bf16.mxu0 %v4961_v1 }
  0x49   :  { %1978 = vmatmul.mubr.bf16.gmra.mxu0 %v4591_v27  ;;  %2170 = vmatmul.mubr.bf16.gmra.mxu1 %v4592_v28  ;;  %v4662_v27 = vld [vmem:[%s8338_s0 + $0x234] ss:$28 sps:$4 sm:$0xff]   ;;  %v4664_v28 = vld [vmem:[%s8338_s0 + $0x7c] ss:$28 sps:$4 sm:$0xff]  }
  0x4a   :  { %2231 = vmatpush1.bf16.msra.mxu1 %v4593_v29  ;;  %1985 = vmatprep.mubr.bf16.mxu0 %v4595_v30  ;;  %v4743_v29 = vld [vmem:[%s8339_s1 + $0x148] sm:$0xff]   ;;  %v4763_v30 = vld [vmem:[%s8339_s1 + $0x190] sm:$0xff]  }
  0x4b   :  { %2232 = vmatprep.subr.bf16.mxu1 %v4961_v1  ;;  %2177 = vmatprep.mubr.bf16.mxu1 %v4597_v31  ;;  %v4756_v31 = vld [vmem:[%s8339_s1 + $0x140] sm:$0xff]  }
  0x4c   :  { %2520 = vmatpush1.bf16.msra.mxu0 %v4612_v32  ;;  %v4666_v32 = vld [vmem:[%s8338_s0 + $0x230] ss:$28 sps:$4 sm:$0xff]  }
  0x4d   :  { %2521 = vmatprep.subr.bf16.mxu0 %v4961_v1 }
  0x4e   :  { %2233 = vmatpush1.bf16.msra.mxu1 %v4594_v33  ;;  %v4667_v33 = vld [vmem:[%s8338_s0 + $0x78] ss:$28 sps:$4 sm:$0xff]  }
  0x4f   :  { %2234 = vmatprep.subr.bf16.mxu1 %v4961_v1 }
  0x50   :  { %2522 = vmatpush1.bf16.msra.mxu0 %v4628_v35  ;;  %v4670_v35 = vld [vmem:[%s8338_s0 + $0xb4] ss:$28 sps:$4 sm:$0xff]  }
  0x51   :  { %1986 = vmatmul.mubr.bf16.gmra.mxu0 %v4599_v34  ;;  %2178 = vmatmul.mubr.bf16.gmra.mxu1 %v4600_v36  ;;  %v4668_v34 = vld [vmem:[%s8338_s0 + $0x26c] ss:$28 sps:$4 sm:$0xff]  }
  0x52   :  { %2235 = vmatpush1.bf16.msra.mxu1 %v4601_v37  ;;  %1993 = vmatprep.mubr.bf16.mxu0 %v4604_v38  ;;  %v4672_v36 = vld [vmem:[%s8338_s0 + $0x268] ss:$28 sps:$4 sm:$0xff]  }
  0x53   :  { %2236 = vmatprep.subr.bf16.mxu1 %v4961_v1  ;;  %2185 = vmatprep.mubr.bf16.mxu1 %v4606_v39  ;;  %v4675_v37 = vld [vmem:[%s8338_s0 + $0x2a4] ss:$28 sps:$4 sm:$0xff]   ;;  %v4677_v38 = vld [vmem:[%s8338_s0 + $0xec] ss:$28 sps:$4 sm:$0xff]  }
  0x54   :  { %2523 = vmatprep.subr.bf16.mxu0 %v4961_v1  ;;  %v4679_v39 = vld [vmem:[%s8338_s0 + $0x2a0] ss:$28 sps:$4 sm:$0xff]  }
  0x55   :  { %2524 = vmatpush1.bf16.msra.mxu0 %v4638_v40  ;;  %v4680_v40 = vld [vmem:[%s8338_s0 + $0xe8] ss:$28 sps:$4 sm:$0xff]  }
  0x56   :  { %2237 = vmatpush1.bf16.msra.mxu1 %v4603_v41  ;;  %2525 = vmatprep.subr.bf16.mxu0 %v4961_v1  ;;  %v4682_v41 = vld [vmem:[%s8338_s0 + $0x2dc] ss:$28 sps:$4 sm:$0xff]  }
  0x57   :  { %2238 = vmatprep.subr.bf16.mxu1 %v4961_v1 }
  0x59   :  { %1994 = vmatmul.mubr.bf16.gmra.mxu0 %v4608_v42  ;;  %2186 = vmatmul.mubr.bf16.gmra.mxu1 %v4609_v43  ;;  %v4684_v42 = vld [vmem:[%s8338_s0 + $0x124] ss:$28 sps:$4 sm:$0xff]   ;;  %v4686_v43 = vld [vmem:[%s8338_s0 + $0x2d8] ss:$28 sps:$4 sm:$0xff]  }
  0x5a   :  { %2239 = vmatpush1.bf16.msra.mxu1 %v4610_v44  ;;  %2001 = vmatprep.mubr.bf16.mxu0 %v4613_v45  ;;  %v4687_v44 = vld [vmem:[%s8338_s0 + $0x120] ss:$28 sps:$4 sm:$0xff]   ;;  %v4689_v45 = vld [vmem:[%s8338_s0 + $0x314] ss:$28 sps:$4 sm:$0xff]  }
  0x5b   :  { %2240 = vmatprep.subr.bf16.mxu1 %v4961_v1  ;;  %2193 = vmatprep.mubr.bf16.mxu1 %v4615_v46  ;;  %v4691_v46 = vld [vmem:[%s8338_s0 + $0x15c] ss:$28 sps:$4 sm:$0xff]  }
  0x5c   :  { %2526 = vmatpush1.bf16.msra.mxu0 %v4654_v47  ;;  %v4693_v47 = vld [vmem:[%s8338_s0 + $0x310] ss:$28 sps:$4 sm:$0xff]  }
  0x5d   :  { %2527 = vmatprep.subr.bf16.mxu0 %v4961_v1 }
  0x5e   :  { %2241 = vmatpush1.bf16.msra.mxu1 %v4611_v48  ;;  %v4694_v48 = vld [vmem:[%s8338_s0 + $0x158] ss:$28 sps:$4 sm:$0xff]  }
  0x5f   :  { %2242 = vmatprep.subr.bf16.mxu1 %v4961_v1 }
  0x60   :  { %2528 = vmatpush1.bf16.msra.mxu0 %v4661_v51  ;;  %v4698_v51 = vld [vmem:[%s8338_s0 + $0x194] ss:$28 sps:$4 sm:$0xff]  }
  0x61   :  { %2002 = vmatmul.mubr.bf16.gmra.mxu0 %v4617_v49  ;;  %2194 = vmatmul.mubr.bf16.gmra.mxu1 %v4618_v50  ;;  %v4794_v49 = vld [vmem:[%s8339_s1 + $0x188] sm:$0xff]  }
  0x62   :  { %2243 = vmatpush2.bf16.msra.mxu1 %v4619_v52  ;;  %2009 = vmatprep.mubr.bf16.mxu0 %v4621_v53  ;;  %v4696_v50 = vld [vmem:[%s8338_s0 + $0x34c] ss:$28 sps:$4 sm:$0xff]  }
  0x63   :  { %2244 = vmatprep.subr.bf16.mxu1 %v4961_v1  ;;  %2201 = vmatprep.mubr.bf16.mxu1 %v4623_v54 }
  0x64   :  { %2529 = vmatprep.subr.bf16.mxu0 %v4961_v1 }
  0x65   :  { %2530 = vmatpush1.bf16.msra.mxu0 %v4674_v55 }
  0x66   :  { %2245 = vmatpush2.bf16.msra.mxu1 %v4620_v56  ;;  %2531 = vmatprep.subr.bf16.mxu0 %v4961_v1 }
  0x67   :  { %2246 = vmatprep.subr.bf16.mxu1 %v4961_v1 }
  0x69   :  { %2010 = vmatmul.mubr.bf16.gmra.mxu0 %v4625_v57  ;;  %2202 = vmatmul.mubr.bf16.gmra.mxu1 %v4626_v58 }
  0x6a   :  { %2247 = vmatpush2.bf16.msra.mxu1 %v4627_v59  ;;  %2017 = vmatprep.mubr.bf16.mxu0 %v4630_v60 }
  0x6b   :  { %2248 = vmatprep.subr.bf16.mxu1 %v4961_v1  ;;  %2209 = vmatprep.mubr.bf16.mxu1 %v4632_v61 }
  0x6c   :  { %2532 = vmatpush2.bf16.msra.mxu0 %v4681_v62 }
  0x6d   :  { %2533 = vmatprep.subr.bf16.mxu0 %v4961_v1 }
  0x6e   :  { %2249 = vmatpush2.bf16.msra.mxu1 %v4629_v63 }
  0x6f   :  { %2250 = vmatprep.subr.bf16.mxu1 %v4961_v1 }
  0x70   :  { %2534 = vmatpush2.bf16.msra.mxu0 %v4695_v2 }
  0x71   :  { %2018 = vmatmul.mubr.bf16.gmra.mxu0 %v4634_v0  ;;  %2210 = vmatmul.mubr.bf16.gmra.mxu1 %v4635_v3 }
  0x72   :  { %2251 = vmatpush2.bf16.msra.mxu1 %v4636_v4  ;;  %2025 = vmatprep.mubr.bf16.mxu0 %v4639_v5 }
  0x73   :  { %2252 = vmatprep.subr.bf16.mxu1 %v4961_v1  ;;  %2217 = vmatprep.mubr.bf16.mxu1 %v4641_v6 }
  0x74   :  { %2535 = vmatprep.subr.bf16.mxu0 %v4961_v1 }
  0x75   :  { %2536 = vmatpush2.bf16.msra.mxu0 %v4702_v7 }
  0x76   :  { %2253 = vmatpush2.bf16.msra.mxu1 %v4637_v8  ;;  %2537 = vmatprep.subr.bf16.mxu0 %v4961_v1 }
  0x77   :  { %2254 = vmatprep.subr.bf16.mxu1 %v4961_v1 }
  0x79   :  { %2026 = vmatmul.mubr.bf16.gmra.mxu0 %v4643_v9  ;;  %2218 = vmatmul.mubr.bf16.gmra.mxu1 %v4644_v10 }
  0x7a   :  { %2255 = vmatpush2.bf16.msra.mxu1 %v4645_v11  ;;  %2033 = vmatprep.mubr.bf16.mxu0 %v4647_v12 }
  0x7b   :  { %2256 = vmatprep.subr.bf16.mxu1 %v4961_v1  ;;  %2258 = vmatprep.mubr.bf16.mxu1 %v4651_v13 }
  0x7c   :  { %2538 = vmatpush2.bf16.msra.mxu0 %v4715_v14 }
  0x7d   :  { %2539 = vmatprep.subr.bf16.mxu0 %v4961_v1 }
  0x7e   :  { %2257 = vmatpush2.bf16.msra.mxu1 %v4646_v15 }
  0x7f   :  { %4450 = vmatprep.subr.bf16.mxu1 %v4653_v16 }
  0x80   :  { %2540 = vmatpush2.bf16.msra.mxu0 %v4722_v17 }
  0x81   :  { %2034 = vmatmul.mubr.bf16.gmra.mxu0 %v4652_v19  ;;  %2259 = vmatmul.mubr.bf16.vlgmr.msra.gmra.mxu1 %v4649_v18 }
  0x82   :  { %4451 = vmatpush3.bf16.msra.mxu1 %v4653_v16  ;;  %2041 = vmatprep.mubr.bf16.mxu0 %v4655_v20 }
  0x83   :  { %2266 = vmatprep.mubr.bf16.mxu1 %v4657_v21  ;;  %4452 = vmatprep.subr.bf16.mxu1 %v4688_v22 }
  0x84   :  { %2541 = vmatprep.subr.bf16.mxu0 %v4961_v1 }
  0x85   :  { %2542 = vmatpush2.bf16.msra.mxu0 %v4736_v23 }
  0x86   :  { %4453 = vmatpush3.bf16.msra.mxu1 %v4688_v22  ;;  %2543 = vmatprep.subr.bf16.mxu0 %v4961_v1 }
  0x87   :  { %4454 = vmatprep.subr.bf16.mxu1 %v4723_v24 }
  0x89   :  { %2042 = vmatmul.mubr.bf16.gmra.mxu0 %v4659_v25  ;;  %2267 = vmatmul.mubr.bf16.gmra.mxu1 %v4660_v26 }
  0x8a   :  { %2049 = vmatprep.mubr.bf16.mxu0 %v4662_v27  ;;  %2274 = vmatprep.mubr.bf16.mxu1 %v4664_v28 }
  0x8b   :  { %4455 = vmatpush3.bf16.msra.mxu1 %v4723_v24  ;;  %2544 = vmatpush2.bf16.msra.mxu0 %v4743_v29 }
  0x8c   :  { %2545 = vmatprep.subr.bf16.mxu0 %v4961_v1  ;;  %4456 = vmatprep.subr.bf16.mxu1 %v4763_v30  ;;  %v4673_v1 = vld [vmem:[%s8338_s0 + $0xb0] ss:$28 sps:$4 sm:$0xff]  }
  0x8f   :  { %2546 = vmatpush2.bf16.msra.mxu0 %v4756_v31  ;;  %4457 = vmatpush3.bf16.msra.mxu1 %v4763_v30 }
  0x90   :  { %4458 = vmatprep.subr.bf16.mxu1 %v4794_v49 }
  0x91   :  { %2050 = vmatmul.mubr.bf16.gmra.mxu0 %v4666_v32  ;;  %2275 = vmatmul.mubr.bf16.gmra.mxu1 %v4667_v33 }
  0x92   :  { %2057 = vmatprep.mubr.bf16.mxu0 %v4668_v34  ;;  %2282 = vmatprep.mubr.bf16.mxu1 %v4670_v35 }
  0x93   :  { %4459 = vmatpush3.bf16.msra.mxu1 %v4794_v49 }
  0x99   :  { %2058 = vmatmul.mubr.bf16.gmra.mxu0 %v4672_v36  ;;  %2283 = vmatmul.mubr.bf16.gmra.mxu1 %v4673_v1 }
  0x9a   :  { %2065 = vmatprep.mubr.bf16.mxu0 %v4675_v37  ;;  %2290 = vmatprep.mubr.bf16.mxu1 %v4677_v38 }
  0xa1   :  { %2066 = vmatmul.mubr.bf16.gmra.mxu0 %v4679_v39  ;;  %2291 = vmatmul.mubr.bf16.gmra.mxu1 %v4680_v40 }
  0xa2   :  { %2073 = vmatprep.mubr.bf16.mxu0 %v4682_v41  ;;  %2298 = vmatprep.mubr.bf16.mxu1 %v4684_v42 }
  0xa9   :  { %2074 = vmatmul.mubr.bf16.gmra.mxu0 %v4686_v43  ;;  %2299 = vmatmul.mubr.bf16.gmra.mxu1 %v4687_v44 }
  0xaa   :  { %2081 = vmatprep.mubr.bf16.mxu0 %v4689_v45  ;;  %2306 = vmatprep.mubr.bf16.mxu1 %v4691_v46 }
  0xb1   :  { %2082 = vmatmul.mubr.bf16.gmra.mxu0 %v4693_v47  ;;  %2307 = vmatmul.mubr.bf16.gmra.mxu1 %v4694_v48 }
  0xb2   :  { %2089 = vmatprep.mubr.bf16.mxu0 %v4696_v50  ;;  %2314 = vmatprep.mubr.bf16.mxu1 %v4698_v51 }
  0xb3   :  { %11 = vsyncpa [#allocation3], 0  ;;  %v4700_v52 = vld [vmem:[%s8338_s0 + $0x348] ss:$28 sps:$4 sm:$0xff]   ;;  %v4701_v53 = vld [vmem:[%s8338_s0 + $0x190] ss:$28 sps:$4 sm:$0xff]  }
  0xb4   :  { %v4703_v54 = vld [vmem:[%s8338_s0 + $0x384] ss:$28 sps:$4 sm:$0xff]   ;;  %v4705_v55 = vld [vmem:[%s8338_s0 + $0x1cc] ss:$28 sps:$4 sm:$0xff]   ;;  %v4709_v58 = vld [vmem:[%s8338_s0 + $0x3bc] ss:$28 sps:$4 sm:$0xff]  }
  0xb5   :  { %v4707_v56 = vld [vmem:[%s8338_s0 + $0x380] ss:$28 sps:$4 sm:$0xff]   ;;  %v4708_v57 = vld [vmem:[%s8338_s0 + $0x1c8] ss:$28 sps:$4 sm:$0xff]   ;;  %v4713_v60 = vld [vmem:[%s8338_s0 + $0x3b8] ss:$28 sps:$4 sm:$0xff]  }
  0xb6   :  { %v4711_v59 = vld [vmem:[%s8338_s0 + $0x204] ss:$28 sps:$4 sm:$0xff]   ;;  %v4716_v62 = vld [vmem:[%s8338_s0 + $0x3f4] ss:$28 sps:$4 sm:$0xff]   ;;  %v4718_v63 = vld [vmem:[%s8338_s0 + $0x23c] ss:$28 sps:$4 sm:$0xff]  }
  0xb7   :  { %v4714_v61 = vld [vmem:[%s8338_s0 + $0x200] ss:$28 sps:$4 sm:$0xff]   ;;  %v4720_v0 = vld [vmem:[%s8338_s0 + $0x3f0] ss:$28 sps:$4 sm:$0xff]   ;;  %v4721_v2 = vld [vmem:[%s8338_s0 + $0x238] ss:$28 sps:$4 sm:$0xff]  }
  0xb8   :  { %v4724_v3 = vld [vmem:[%s8338_s0 + $0x42c] ss:$28 sps:$4 sm:$0xff]   ;;  %v4726_v4 = vld [vmem:[%s8338_s0 + $0x274] ss:$28 sps:$4 sm:$0xff]   ;;  %v4730_v7 = vld [vmem:[%s8338_s0 + $0x464] ss:$28 sps:$4 sm:$0xff]  }
  0xb9   :  { %2090 = vmatmul.mubr.bf16.gmra.mxu0 %v4700_v52  ;;  %2315 = vmatmul.mubr.bf16.gmra.mxu1 %v4701_v53  ;;  %v4728_v5 = vld [vmem:[%s8338_s0 + $0x428] ss:$28 sps:$4 sm:$0xff]   ;;  %v4729_v6 = vld [vmem:[%s8338_s0 + $0x270] ss:$28 sps:$4 sm:$0xff]   ;;  %v4734_v10 = vld [vmem:[%s8338_s0 + $0x460] ss:$28 sps:$4 sm:$0xff]  }
  0xba   :  { %2097 = vmatprep.mubr.bf16.mxu0 %v4703_v54  ;;  %2322 = vmatprep.mubr.bf16.mxu1 %v4705_v55  ;;  %v4732_v8 = vld [vmem:[%s8338_s0 + $0x2ac] ss:$28 sps:$4 sm:$0xff]   ;;  %v4825_v9 = vld [vmem:[%s8339_s1 + $0x180] sm:$0xff]   ;;  %v4737_v12 = vld [vmem:[%s8338_s0 + $0x49c] ss:$28 sps:$4 sm:$0xff]   ;;  %vm1840_vm0 = vcmask 785408  }
  0xbb   :  { %4460 = vmatprep.subr.bf16.mxu1 %v4825_v9  ;;  %v4735_v11 = vld [vmem:[%s8338_s0 + $0x2a8] ss:$28 sps:$4 sm:$0xff]   ;;  %v4741_v14 = vld [vmem:[%s8338_s0 + $0x498] ss:$28 sps:$4 sm:$0xff]   ;;  %v4742_v15 = vld [vmem:[%s8338_s0 + $0x2e0] ss:$28 sps:$4 sm:$0xff]  }
  0xbc   :  { %4461 = vmatpush3.bf16.msra.mxu1 %v4825_v9  ;;  %v4739_v13 = vld [vmem:[%s8338_s0 + $0x2e4] ss:$28 sps:$4 sm:$0xff]   ;;  %v4744_v16 = vld [vmem:[%s8338_s0 + $0x4d4] ss:$28 sps:$4 sm:$0xff]   ;;  %v4746_v17 = vld [vmem:[%s8338_s0 + $0x31c] ss:$28 sps:$4 sm:$0xff]  }
  0xbd   :  { %v4748_v18 = vld [vmem:[%s8338_s0 + $0x4d0] ss:$28 sps:$4 sm:$0xff]   ;;  %v4749_v19 = vld [vmem:[%s8338_s0 + $0x318] ss:$28 sps:$4 sm:$0xff]   ;;  %v4754_v22 = vld [vmem:[%s8338_s0 + $0x508] ss:$28 sps:$4 sm:$0xff]  }
  0xbe   :  { %v4750_v20 = vld [vmem:[%s8338_s0 + $0x50c] ss:$28 sps:$4 sm:$0xff]   ;;  %v4752_v21 = vld [vmem:[%s8338_s0 + $0x354] ss:$28 sps:$4 sm:$0xff]   ;;  %v4764_v28 = vld [vmem:[%s8338_s0 + $0x3c4] ss:$28 sps:$4 sm:$0xff]  }
  0xbf   :  { %v4755_v23 = vld [vmem:[%s8338_s0 + $0x350] ss:$28 sps:$4 sm:$0xff]   ;;  %v4762_v27 = vld [vmem:[%s8338_s0 + $0x388] ss:$28 sps:$4 sm:$0xff]   ;;  %v4768_v36 = vld [vmem:[%s8338_s0 + $0x3c0] ss:$28 sps:$4 sm:$0xff]  }
  0xc0   :  { %v4757_v24 = vld [vmem:[%s8338_s0 + $0x38c] ss:$28 sps:$4 sm:$0xff]   ;;  %v4761_v25 = vld [vmem:[%s8338_s0 + $0x14] ss:$28 sps:$4 sm:$0xff]   ;;  %v4770_v37 = vld [vmem:[%s8338_s0 + $0x3fc] ss:$28 sps:$4 sm:$0xff]  }
  0xc1   :  { %2098 = vmatmul.mubr.bf16.gmra.mxu0 %v4707_v56  ;;  %2323 = vmatmul.mubr.bf16.gmra.mxu1 %v4708_v57  ;;  %v4759_v26 = vld [vmem:[%s8338_s0 + $0x10] ss:$28 sps:$4 sm:$0xff]   ;;  %v4769_v1 = vld [vmem:[%s8338_s0 + $0x48] ss:$28 sps:$4 sm:$0xff]   ;;  %v4774_v47 = vld [vmem:[%s8338_s0 + $0x3f8] ss:$28 sps:$4 sm:$0xff]  }
  0xc2   :  { %2105 = vmatprep.mubr.bf16.mxu0 %v4709_v58  ;;  %2330 = vmatprep.mubr.bf16.mxu1 %v4711_v59  ;;  %v4766_v29 = vld [vmem:[%s8338_s0 + $0x4c] ss:$28 sps:$4 sm:$0xff]   ;;  %v4772_v38 = vld [vmem:[%s8338_s0 + $0x84] ss:$28 sps:$4 sm:$0xff]   ;;  %v4776_v49 = vld [vmem:[%s8338_s0 + $0x434] ss:$28 sps:$4 sm:$0xff]  }
  0xc3   :  { %v4775_v48 = vld [vmem:[%s8338_s0 + $0x80] ss:$28 sps:$4 sm:$0xff]   ;;  %v4780_v59 = vld [vmem:[%s8338_s0 + $0x430] ss:$28 sps:$4 sm:$0xff]   ;;  %vm3285_vm5 = vcmask 261120   ;;  %s4962_s23 = smov [#allocation2]  }
  0xc4   :  { %v4778_v50 = vld [vmem:[%s8338_s0 + $0xbc] ss:$28 sps:$4 sm:$0xff]   ;;  %v4785_v9 = vld [vmem:[%s8338_s0 + $0xf0] ss:$28 sps:$4 sm:$0xff]   ;;  %s4088_s24 = sshll.u32 %s4962_s23, 4  ;;  %s8312_s24 = int_to_ptr.vmem [resolvable:$true] %s4088_s24 }
  0xc5   :  { %p4944_p1 = scmp.lt.s32.totalorder %s8312_s24, %s8312_s24 }
  0xc9   :  { %2106 = vmatmul.mubr.bf16.gmra.mxu0 %v4713_v60  ;;  %2331 = vmatmul.mubr.bf16.gmra.mxu1 %v4714_v61  ;;  %v4781_v60 = vld [vmem:[%s8338_s0 + $0xb8] ss:$28 sps:$4 sm:$0xff]   ;;  %v4784_v61 = vld [vmem:[%s8338_s0 + $0x46c] ss:$28 sps:$4 sm:$0xff]  }
  0xca   :  { %2113 = vmatprep.mubr.bf16.mxu0 %v4716_v62  ;;  %2338 = vmatprep.mubr.bf16.mxu1 %v4718_v63  ;;  %v4787_v62 = vld [vmem:[%s8338_s0 + $0xf4] ss:$28 sps:$4 sm:$0xff]  }
  0xd1   :  { %2114 = vmatmul.mubr.bf16.gmra.mxu0 %v4720_v0  ;;  %2339 = vmatmul.mubr.bf16.gmra.mxu1 %v4721_v2 }
  0xd2   :  { %2121 = vmatprep.mubr.bf16.mxu0 %v4724_v3  ;;  %2346 = vmatprep.mubr.bf16.mxu1 %v4726_v4 }
  0xd9   :  { %2122 = vmatmul.mubr.bf16.gmra.mxu0 %v4728_v5  ;;  %2347 = vmatmul.mubr.bf16.gmra.mxu1 %v4729_v6 }
  0xda   :  { %2129 = vmatprep.mubr.bf16.mxu0 %v4730_v7  ;;  %2354 = vmatprep.mubr.bf16.mxu1 %v4732_v8  ;;  %v4782_v8 = vld [vmem:[%s8338_s0 + $0x468] ss:$28 sps:$4 sm:$0xff]  }
  0xe1   :  { %2130 = vmatmul.mubr.bf16.gmra.mxu0 %v4734_v10  ;;  %2355 = vmatmul.mubr.bf16.gmra.mxu1 %v4735_v11  ;;  %v4790_v10 = vld [vmem:[%s8338_s0 + $0x4a4] ss:$28 sps:$4 sm:$0xff]   ;;  %v4793_v11 = vld [vmem:[%s8338_s0 + $0x12c] ss:$28 sps:$4 sm:$0xff]  }
  0xe2   :  { %2137 = vmatprep.mubr.bf16.mxu0 %v4737_v12  ;;  %2362 = vmatprep.mubr.bf16.mxu1 %v4739_v13 }
  0xe9   :  { %2138 = vmatmul.mubr.bf16.gmra.mxu0 %v4741_v14  ;;  %2363 = vmatmul.mubr.bf16.gmra.mxu1 %v4742_v15 }
  0xea   :  { %2145 = vmatprep.mubr.bf16.mxu0 %v4744_v16  ;;  %2370 = vmatprep.mubr.bf16.mxu1 %v4746_v17 }
  0xf1   :  { %2146 = vmatmul.mubr.bf16.gmra.mxu0 %v4748_v18  ;;  %2371 = vmatmul.mubr.bf16.gmra.mxu1 %v4749_v19 }
  0xf2   :  { %2153 = vmatprep.mubr.bf16.mxu0 %v4750_v20  ;;  %2378 = vmatprep.mubr.bf16.mxu1 %v4752_v21  ;;  %v4788_v20 = vld [vmem:[%s8338_s0 + $0x4a0] ss:$28 sps:$4 sm:$0xff]   ;;  %v4791_v21 = vld [vmem:[%s8338_s0 + $0x128] ss:$28 sps:$4 sm:$0xff]  }
  0xf9   :  { %2154 = vmatmul.mubr.bf16.gmra.mxu0 %v4754_v22  ;;  %2379 = vmatmul.mubr.bf16.gmra.mxu1 %v4755_v23  ;;  %v4797_v22 = vld [vmem:[%s8338_s0 + $0x4dc] ss:$28 sps:$4 sm:$0xff]   ;;  %v4800_v23 = vld [vmem:[%s8338_s0 + $0x164] ss:$28 sps:$4 sm:$0xff]  }
  0xfa   :  { %2386 = vmatprep.mubr.bf16.mxu1 %v4757_v24  ;;  %2547 = vmatprep.mubr.bf16.mxu0 %v4761_v25 }
 0x101   :  { %v5532_v30 = vpop.f32.mrf.mxu0  ;;  %v5534_v31 = vpop.f32.mrf.mxu1  ;;  %2387 = vmatmul.mubr.bf16.gmra.mxu1 %v4762_v27  ;;  %2548 = vmatmul.mubr.bf16.vlgmr.msra.gmra.mxu0 %v4759_v26 }
 0x102   :  { %2394 = vmatprep.mubr.bf16.mxu1 %v4764_v28  ;;  %2555 = vmatprep.mubr.bf16.mxu0 %v4766_v29 }
 0x103   :  { %v1973_v32 = vpop.f32.mrf.mxu0  ;;  %v2165_v33 = vpop.f32.mrf.mxu1 }
 0x105   :  { %v5536_v34 = vpop.f32.mrf.mxu0  ;;  %v5538_v35 = vpop.f32.mrf.mxu1 }
 0x107   :  { %v1976_v39 = vpop.f32.mrf.mxu0  ;;  %v2168_v40 = vpop.f32.mrf.mxu1 }
 0x109   :  { %v5552_v41 = vpop.f32.mrf.mxu0  ;;  %v5554_v42 = vpop.f32.mrf.mxu1  ;;  %2395 = vmatmul.mubr.bf16.gmra.mxu1 %v4768_v36  ;;  %2556 = vmatmul.mubr.bf16.gmra.mxu0 %v4769_v1  ;;  %v4795_v36 = vld [vmem:[%s8338_s0 + $0x4d8] ss:$28 sps:$4 sm:$0xff]   ;;  %v4798_v1 = vld [vmem:[%s8338_s0 + $0x160] ss:$28 sps:$4 sm:$0xff]  }
 0x10a   :  { %2402 = vmatprep.mubr.bf16.mxu1 %v4770_v37  ;;  %2563 = vmatprep.mubr.bf16.mxu0 %v4772_v38  ;;  %v4803_v37 = vld [vmem:[%s8338_s0 + $0x514] ss:$28 sps:$4 sm:$0xff]   ;;  %v4806_v38 = vld [vmem:[%s8338_s0 + $0x19c] ss:$28 sps:$4 sm:$0xff]  }
 0x10b   :  { %v1981_v43 = vpop.f32.mrf.mxu0  ;;  %v2173_v44 = vpop.f32.mrf.mxu1 }
 0x10d   :  { %v5556_v45 = vpop.f32.mrf.mxu0  ;;  %v5558_v46 = vpop.f32.mrf.mxu1 }
 0x10f   :  { %v1984_v51 = vpop.f32.mrf.mxu0  ;;  %v2176_v52 = vpop.f32.mrf.mxu1 }
 0x110   :  { %v4801_v51 = vld [vmem:[%s8338_s0 + $0x510] ss:$28 sps:$4 sm:$0xff]   ;;  %v4804_v52 = vld [vmem:[%s8338_s0 + $0x198] ss:$28 sps:$4 sm:$0xff]  }
 0x111   :  { %v5572_v53 = vpop.f32.mrf.mxu0  ;;  %v5574_v54 = vpop.f32.mrf.mxu1  ;;  %2403 = vmatmul.mubr.bf16.gmra.mxu1 %v4774_v47  ;;  %2564 = vmatmul.mubr.bf16.gmra.mxu0 %v4775_v48 }
 0x112   :  { %2410 = vmatprep.mubr.bf16.mxu1 %v4776_v49  ;;  %2571 = vmatprep.mubr.bf16.mxu0 %v4778_v50 }
 0x113   :  { %v1989_v55 = vpop.f32.mrf.mxu0  ;;  %v2181_v56 = vpop.f32.mrf.mxu1 }
 0x114   :  { %v4809_v55 = vld [vmem:[%s8338_s0 + $0x54c] ss:$28 sps:$4 sm:$0xff]   ;;  %v4812_v56 = vld [vmem:[%s8338_s0 + $0x1d4] ss:$28 sps:$4 sm:$0xff]  }
 0x115   :  { %v5576_v57 = vpop.f32.mrf.mxu0  ;;  %v5578_v58 = vpop.f32.mrf.mxu1 }
 0x117   :  { %v1992_v63 = vpop.f32.mrf.mxu0  ;;  %v2184_v0 = vpop.f32.mrf.mxu1 }
 0x119   :  { %v5592_v2 = vpop.f32.mrf.mxu0  ;;  %v5594_v3 = vpop.f32.mrf.mxu1  ;;  %2411 = vmatmul.mubr.bf16.gmra.mxu1 %v4780_v59  ;;  %2572 = vmatmul.mubr.bf16.gmra.mxu0 %v4781_v60 }
 0x11a   :  { %2418 = vmatprep.mubr.bf16.mxu1 %v4784_v61  ;;  %2579 = vmatprep.mubr.bf16.mxu0 %v4787_v62 }
 0x11b   :  { %v1997_v4 = vpop.f32.mrf.mxu0  ;;  %v2189_v5 = vpop.f32.mrf.mxu1 }
 0x11d   :  { %v5596_v6 = vpop.f32.mrf.mxu0  ;;  %v5598_v7 = vpop.f32.mrf.mxu1 }
 0x11f   :  { %v2000_v12 = vpop.f32.mrf.mxu0  ;;  %v2192_v13 = vpop.f32.mrf.mxu1 }
 0x120   :  { %v5695_v12 = vld [vmem:[%s8340_s2] ss:$0 sm:$0xff] }
 0x121   :  { %v5612_v14 = vpop.f32.mrf.mxu0  ;;  %v5614_v15 = vpop.f32.mrf.mxu1  ;;  %2419 = vmatmul.mubr.bf16.gmra.mxu1 %v4782_v8  ;;  %2580 = vmatmul.mubr.bf16.gmra.mxu0 %v4785_v9  ;;  %v4807_v8 = vld [vmem:[%s8338_s0 + $0x548] ss:$28 sps:$4 sm:$0xff]   ;;  %v4810_v9 = vld [vmem:[%s8338_s0 + $0x1d0] ss:$28 sps:$4 sm:$0xff]  }
 0x122   :  { %2426 = vmatprep.mubr.bf16.mxu1 %v4790_v10  ;;  %2587 = vmatprep.mubr.bf16.mxu0 %v4793_v11  ;;  %v4815_v10 = vld [vmem:[%s8338_s0 + $0x584] ss:$28 sps:$4 sm:$0xff]   ;;  %v4818_v11 = vld [vmem:[%s8338_s0 + $0x20c] ss:$28 sps:$4 sm:$0xff]  }
 0x123   :  { %v2005_v16 = vpop.f32.mrf.mxu0  ;;  %v2197_v17 = vpop.f32.mrf.mxu1 }
 0x124   :  { %v1972_v17 = vadd.f32 %v5695_v12, %v5532_v30  ;;  %v4813_v30 = vld [vmem:[%s8338_s0 + $0x580] ss:$28 sps:$4 sm:$0xff]  }
 0x125   :  { %v5616_v18 = vpop.f32.mrf.mxu0  ;;  %v5618_v19 = vpop.f32.mrf.mxu1 }
 0x126   :  { %8389 = vst [vmem:[#allocation5_spill] sm:$0xff] %v5618_v19 }
 0x127   :  { %v2008_v24 = vpop.f32.mrf.mxu0  ;;  %v2200_v25 = vpop.f32.mrf.mxu1 }
 0x128   :  { %v1975_v25 = vadd.f32 %v5695_v12, %v5536_v34  ;;  %v4824_v34 = vld [vmem:[%s8338_s0 + $0x244] ss:$28 sps:$4 sm:$0xff]  }
 0x129   :  { %v5632_v26 = vpop.f32.mrf.mxu0  ;;  %v5634_v27 = vpop.f32.mrf.mxu1  ;;  %2427 = vmatmul.mubr.bf16.gmra.mxu1 %v4788_v20  ;;  %2588 = vmatmul.mubr.bf16.gmra.mxu0 %v4791_v21 }
 0x12a   :  { %8390 = vst [vmem:[#allocation6_spill] sm:$0xff] %v5634_v27  ;;  %2434 = vmatprep.mubr.bf16.mxu1 %v4797_v22  ;;  %2595 = vmatprep.mubr.bf16.mxu0 %v4800_v23 }
 0x12b   :  { %v2013_v28 = vpop.f32.mrf.mxu0  ;;  %v2205_v29 = vpop.f32.mrf.mxu1 }
 0x12d   :  { %v5636_v32 = vpop.f32.mrf.mxu0  ;;  %v5638_v33 = vpop.f32.mrf.mxu1 }
 0x12e   :  { %8391 = vst [vmem:[#allocation7_spill] sm:$0xff] %v5638_v33 }
 0x12f   :  { %v2016_v39 = vpop.f32.mrf.mxu0  ;;  %v2208_v40 = vpop.f32.mrf.mxu1 }
 0x130   :  { %v1980_v40 = vadd.f32 %v5695_v12, %v5552_v41  ;;  %v4819_v41 = vld [vmem:[%s8338_s0 + $0x5b8] ss:$28 sps:$4 sm:$0xff]  }
 0x131   :  { %v5652_v43 = vpop.f32.mrf.mxu0  ;;  %v5654_v44 = vpop.f32.mrf.mxu1  ;;  %2435 = vmatmul.mubr.bf16.gmra.mxu1 %v4795_v36  ;;  %2596 = vmatmul.mubr.bf16.gmra.mxu0 %v4798_v1  ;;  %v4816_v36 = vld [vmem:[%s8338_s0 + $0x208] ss:$28 sps:$4 sm:$0xff]  }
 0x132   :  { %8392 = vst [vmem:[#allocation8_spill] sm:$0xff] %v5654_v44  ;;  %2442 = vmatprep.mubr.bf16.mxu1 %v4803_v37  ;;  %2603 = vmatprep.mubr.bf16.mxu0 %v4806_v38  ;;  %v4821_v37 = vld [vmem:[%s8338_s0 + $0x5bc] ss:$28 sps:$4 sm:$0xff]  }
 0x133   :  { %v2021_v47 = vpop.f32.mrf.mxu0  ;;  %v2213_v48 = vpop.f32.mrf.mxu1 }
 0x135   :  { %v5656_v49 = vpop.f32.mrf.mxu0  ;;  %v5658_v50 = vpop.f32.mrf.mxu1 }
 0x136   :  { %8393 = vst [vmem:[#allocation9_spill] sm:$0xff] %v5658_v50 }
 0x137   :  { %v2024_v59 = vpop.f32.mrf.mxu0  ;;  %v2216_v60 = vpop.f32.mrf.mxu1 }
 0x139   :  { %v5672_v61 = vpop.f32.mrf.mxu0  ;;  %v5674_v62 = vpop.f32.mrf.mxu1  ;;  %2443 = vmatmul.mubr.bf16.gmra.mxu1 %v4801_v51  ;;  %2604 = vmatmul.mubr.bf16.gmra.mxu0 %v4804_v52 }
 0x13a   :  { %8394 = vst [vmem:[#allocation10_spill] sm:$0xff] %v5674_v62  ;;  %2450 = vmatprep.mubr.bf16.mxu1 %v4809_v55  ;;  %2611 = vmatprep.mubr.bf16.mxu0 %v4812_v56  ;;  %v1983_v56 = vadd.f32 %v5695_v12, %v5556_v45  ;;  %v4831_v45 = vld [vmem:[%s8338_s0 + $0x27c] ss:$28 sps:$4 sm:$0xff]  }
 0x13b   :  { %v2029_v63 = vpop.f32.mrf.mxu0  ;;  %v2221_v0 = vpop.f32.mrf.mxu1 }
 0x13c   :  { %v4822_v63 = vld [vmem:[%s8338_s0 + $0x240] ss:$28 sps:$4 sm:$0xff]  }
 0x13d   :  { %v5676_v4 = vpop.f32.mrf.mxu0  ;;  %v5678_v5 = vpop.f32.mrf.mxu1 }
 0x13e   :  { %8395 = vst [vmem:[#allocation11_spill] sm:$0xff] %v5678_v5 }
 0x13f   :  { %v2032_v13 = vpop.f32.mrf.mxu0  ;;  %v2224_v16 = vpop.f32.mrf.mxu1 }
 0x141   :  { %v5699_v20 = vpop.f32.mrf.mxu0  ;;  %v2260_v21 = vpop.f32.mrf.mxu1  ;;  %2451 = vmatmul.mubr.bf16.gmra.mxu1 %v4807_v8  ;;  %2612 = vmatmul.mubr.bf16.gmra.mxu0 %v4810_v9  ;;  %v4828_v8 = vld [vmem:[%s8338_s0 + $0x5f4] ss:$28 sps:$4 sm:$0xff]  }
 0x142   :  { %v5701_v22 = vadd.f32 %v2260_v21, %v1972_v17  ;;  %2458 = vmatprep.mubr.bf16.mxu1 %v4815_v10  ;;  %2619 = vmatprep.mubr.bf16.mxu0 %v4818_v11  ;;  %v1988_v11 = vadd.f32 %v5695_v12, %v5572_v53  ;;  %v4826_v53 = vld [vmem:[%s8338_s0 + $0x5f0] ss:$28 sps:$4 sm:$0xff]  }
 0x143   :  { %v2037_v23 = vpop.f32.mrf.mxu0  ;;  %v2262_v24 = vpop.f32.mrf.mxu1 }
 0x144   :  { %v1991_v24 = vadd.f32 %v5695_v12, %v5576_v57  ;;  %v4837_v57 = vld [vmem:[%s8338_s0 + $0x2b4] ss:$28 sps:$4 sm:$0xff]  }
 0x145   :  { %v5705_v28 = vpop.f32.mrf.mxu0  ;;  %v2263_v29 = vpop.f32.mrf.mxu1 }
 0x146   :  { %v5713_v1 = vadd.f32 %v2263_v29, %v1975_v25 }
 0x147   :  { %v2040_v38 = vpop.f32.mrf.mxu0  ;;  %v2265_v39 = vpop.f32.mrf.mxu1 }
 0x148   :  { %v1996_v39 = vadd.f32 %v5695_v12, %v5592_v2  ;;  %v4832_v2 = vld [vmem:[%s8338_s0 + $0x628] ss:$28 sps:$4 sm:$0xff]  }
 0x149   :  { %v5723_v47 = vpop.f32.mrf.mxu0  ;;  %v2268_v48 = vpop.f32.mrf.mxu1  ;;  %2459 = vmatmul.mubr.bf16.gmra.mxu1 %v4813_v30  ;;  %2620 = vmatmul.mubr.bf16.gmra.mxu0 %v4816_v36  ;;  %v4829_v30 = vld [vmem:[%s8338_s0 + $0x278] ss:$28 sps:$4 sm:$0xff]  }
 0x14a   :  { %v5725_v51 = vadd.f32 %v2268_v48, %v1980_v40  ;;  %2466 = vmatprep.mubr.bf16.mxu1 %v4821_v37  ;;  %2627 = vmatprep.mubr.bf16.mxu0 %v4824_v34  ;;  %v4834_v37 = vld [vmem:[%s8338_s0 + $0x62c] ss:$28 sps:$4 sm:$0xff]  }
 0x14b   :  { %v2045_v52 = vpop.f32.mrf.mxu0  ;;  %v2270_v55 = vpop.f32.mrf.mxu1 }
 0x14d   :  { %v5729_v59 = vpop.f32.mrf.mxu0  ;;  %v2271_v60 = vpop.f32.mrf.mxu1 }
 0x14e   :  { %v5737_v0 = vadd.f32 %v2271_v60, %v1983_v56  ;;  %v1999_v60 = vadd.f32 %v5695_v12, %v5596_v6  ;;  %v4843_v6 = vld [vmem:[%s8338_s0 + $0x2ec] ss:$28 sps:$4 sm:$0xff]  }
 0x14f   :  { %v2048_v9 = vpop.f32.mrf.mxu0  ;;  %v2273_v10 = vpop.f32.mrf.mxu1 }
 0x150   :  { %v4840_v9 = vld [vmem:[%s8338_s0 + $0x664] ss:$28 sps:$4 sm:$0xff]  }
 0x151   :  { %v5747_v13 = vpop.f32.mrf.mxu0  ;;  %v2276_v16 = vpop.f32.mrf.mxu1  ;;  %2467 = vmatmul.mubr.bf16.gmra.mxu1 %v4819_v41  ;;  %2628 = vmatmul.mubr.bf16.gmra.mxu0 %v4822_v63 }
 0x152   :  { %v5749_v17 = vadd.f32 %v2276_v16, %v1988_v11  ;;  %2474 = vmatprep.mubr.bf16.mxu1 %v4828_v8  ;;  %2635 = vmatprep.mubr.bf16.mxu0 %v4831_v45  ;;  %v4835_v8 = vld [vmem:[%s8338_s0 + $0x2b0] ss:$28 sps:$4 sm:$0xff]   ;;  %v2004_v16 = vadd.f32 %v5695_v12, %v5612_v14  ;;  %v4838_v14 = vld [vmem:[%s8338_s0 + $0x660] ss:$28 sps:$4 sm:$0xff]  }
 0x153   :  { %v2053_v21 = vpop.f32.mrf.mxu0  ;;  %v2278_v23 = vpop.f32.mrf.mxu1 }
 0x155   :  { %v5753_v25 = vpop.f32.mrf.mxu0  ;;  %v2279_v29 = vpop.f32.mrf.mxu1 }
 0x156   :  { %v5761_v36 = vadd.f32 %v2279_v29, %v1991_v24 }
 0x157   :  { %v2056_v34 = vpop.f32.mrf.mxu0  ;;  %v2281_v38 = vpop.f32.mrf.mxu1 }
 0x158   :  { %v4841_v34 = vld [vmem:[%s8338_s0 + $0x2e8] ss:$28 sps:$4 sm:$0xff]  }
 0x159   :  { %v5771_v40 = vpop.f32.mrf.mxu0  ;;  %v2284_v48 = vpop.f32.mrf.mxu1  ;;  %2475 = vmatmul.mubr.bf16.gmra.mxu1 %v4826_v53  ;;  %2636 = vmatmul.mubr.bf16.gmra.mxu0 %v4829_v30  ;;  %v2007_v30 = vadd.f32 %v5695_v12, %v5616_v18  ;;  %v4849_v18 = vld [vmem:[%s8338_s0 + $0x324] ss:$28 sps:$4 sm:$0xff]  }
 0x15a   :  { %v5773_v52 = vadd.f32 %v2284_v48, %v1996_v39  ;;  %2482 = vmatprep.mubr.bf16.mxu1 %v4834_v37  ;;  %2643 = vmatprep.mubr.bf16.mxu0 %v4837_v57  ;;  %v4846_v39 = vld [vmem:[%s8338_s0 + $0x69c] ss:$28 sps:$4 sm:$0xff]  }
 0x15b   :  { %v2061_v55 = vpop.f32.mrf.mxu0  ;;  %v2286_v56 = vpop.f32.mrf.mxu1 }
 0x15c   :  { %v2012_v56 = vadd.f32 %v5695_v12, %v5632_v26  ;;  %v4844_v26 = vld [vmem:[%s8338_s0 + $0x698] ss:$28 sps:$4 sm:$0xff]  }
 0x15d   :  { %v5777_v41 = vpop.f32.mrf.mxu0  ;;  %v2287_v63 = vpop.f32.mrf.mxu1 }
 0x15e   :  { %v5785_v45 = vadd.f32 %v2287_v63, %v1999_v60 }
 0x15f   :  { %v2064_v10 = vpop.f32.mrf.mxu0  ;;  %v2289_v11 = vpop.f32.mrf.mxu1 }
 0x161   :  { %v5795_v21 = vpop.f32.mrf.mxu0  ;;  %v2292_v23 = vpop.f32.mrf.mxu1  ;;  %2483 = vmatmul.mubr.bf16.gmra.mxu1 %v4832_v2  ;;  %2644 = vmatmul.mubr.bf16.gmra.mxu0 %v4835_v8 }
 0x162   :  { %v5797_v24 = vadd.f32 %v2292_v23, %v2004_v16  ;;  %2490 = vmatprep.mubr.bf16.mxu1 %v4840_v9  ;;  %2651 = vmatprep.mubr.bf16.mxu0 %v4843_v6  ;;  %v2015_v6 = vadd.f32 %v5695_v12, %v5636_v32  ;;  %v4847_v16 = vld [vmem:[%s8338_s0 + $0x320] ss:$28 sps:$4 sm:$0xff]  }
 0x163   :  { %v2069_v29 = vpop.f32.mrf.mxu0  ;;  %v2294_v53 = vpop.f32.mrf.mxu1  ;;  %v4855_v32 = vld [vmem:[%s8338_s0 + $0x35c] ss:$28 sps:$4 sm:$0xff]  }
 0x164   :  { %v4852_v29 = vld [vmem:[%s8338_s0 + $0x6d4] ss:$28 sps:$4 sm:$0xff]  }
 0x165   :  { %v5801_v37 = vpop.f32.mrf.mxu0  ;;  %v2295_v57 = vpop.f32.mrf.mxu1 }
 0x166   :  { %v5809_v38 = vadd.f32 %v2295_v57, %v2007_v30  ;;  %v2020_v57 = vadd.f32 %v5695_v12, %v5652_v43  ;;  %v4850_v43 = vld [vmem:[%s8338_s0 + $0x6d0] ss:$28 sps:$4 sm:$0xff]  }
 0x167   :  { %v2072_v48 = vpop.f32.mrf.mxu0  ;;  %v2297_v55 = vpop.f32.mrf.mxu1 }
 0x168   :  { %v2023_v55 = vadd.f32 %v5695_v12, %v5656_v49  ;;  %v4859_v49 = vld [vmem:[%s8338_s0 + $0x18] ss:$28 sps:$4 sm:$0xff]  }
 0x169   :  { %v5819_v60 = vpop.f32.mrf.mxu0  ;;  %v2300_v63 = vpop.f32.mrf.mxu1  ;;  %2491 = vmatmul.mubr.bf16.gmra.mxu1 %v4838_v14  ;;  %2652 = vmatmul.mubr.bf16.gmra.mxu0 %v4841_v34 }
 0x16a   :  { %v5821_v2 = vadd.f32 %v2300_v63, %v2012_v56  ;;  %2498 = vmatprep.mubr.bf16.mxu1 %v4846_v39  ;;  %2659 = vmatprep.mubr.bf16.mxu0 %v4849_v18 }
 0x16b   :  { %v2077_v8 = vpop.f32.mrf.mxu0  ;;  %v2302_v9 = vpop.f32.mrf.mxu1 }
 0x16c   :  { %v4853_v8 = vld [vmem:[%s8338_s0 + $0x358] ss:$28 sps:$4 sm:$0xff]  }
 0x16d   :  { %v5825_v10 = vpop.f32.mrf.mxu0  ;;  %v2303_v11 = vpop.f32.mrf.mxu1 }
 0x16e   :  { %v5833_v23 = vadd.f32 %v2303_v11, %v2015_v6  ;;  %v4858_v6 = vld [vmem:[%s8338_s0 + $0x394] ss:$28 sps:$4 sm:$0xff]  }
 0x16f   :  { %v2080_v53 = vpop.f32.mrf.mxu0  ;;  %v2305_v30 = vpop.f32.mrf.mxu1 }
 0x171   :  { %v5843_v14 = vpop.f32.mrf.mxu0  ;;  %v2308_v34 = vpop.f32.mrf.mxu1  ;;  %2499 = vmatmul.mubr.bf16.gmra.mxu1 %v4844_v26  ;;  %2660 = vmatmul.mubr.bf16.gmra.mxu0 %v4847_v16  ;;  %v2028_v16 = vadd.f32 %v5695_v12, %v5672_v61  ;;  %v4856_v61 = vld [vmem:[%s8338_s0 + $0x390] ss:$28 sps:$4 sm:$0xff]  }
 0x172   :  { %v5845_v39 = vadd.f32 %v2308_v34, %v2020_v57  ;;  %2506 = vmatprep.mubr.bf16.mxu1 %v4852_v29  ;;  %2667 = vmatprep.mubr.bf16.mxu0 %v4855_v32  ;;  %v2031_v34 = vadd.f32 %v5695_v12, %v5676_v4  ;;  %v4864_v4 = vld [vmem:[%s8338_s0 + $0x88] ss:$28 sps:$4 sm:$0xff]  }
 0x173   :  { %v2085_v18 = vpop.f32.mrf.mxu0  ;;  %v2310_v48 = vpop.f32.mrf.mxu1 }
 0x175   :  { %v5849_v56 = vpop.f32.mrf.mxu0  ;;  %v2311_v63 = vpop.f32.mrf.mxu1 }
 0x176   :  { %v5857_v9 = vadd.f32 %v2311_v63, %v2023_v55  ;;  %v4860_v55 = vld [vmem:[%s8338_s0 + $0x50] ss:$28 sps:$4 sm:$0xff]  }
 0x177   :  { %v2088_v11 = vpop.f32.mrf.mxu0  ;;  %v2313_v26 = vpop.f32.mrf.mxu1 }
 0x179   :  { %v5867_v29 = vpop.f32.mrf.mxu0  ;;  %v2316_v32 = vpop.f32.mrf.mxu1  ;;  %2507 = vmatmul.mubr.bf16.gmra.mxu1 %v4850_v43  ;;  %2668 = vmatmul.mubr.bf16.gmra.mxu0 %v4853_v8  ;;  %v4863_v43 = vld [vmem:[%s8338_s0 + $0x3cc] ss:$28 sps:$4 sm:$0xff]  }
 0x17a   :  { %v5869_v53 = vadd.f32 %v2316_v32, %v2028_v16  ;;  %2675 = vmatprep.mubr.bf16.mxu0 %v4858_v6  ;;  %4462 = vmatprep.mubr.msk.bf16.mxu1 %vm1840_vm0, %v4859_v49  ;;  %v2036_v49 = vadd.f32 %v5695_v12, %v5699_v20  ;;  %v4861_v20 = vld [vmem:[%s8338_s0 + $0x3c8] ss:$28 sps:$4 sm:$0xff]  }
 0x17b   :  { %v2093_v30 = vpop.f32.mrf.mxu0  ;;  %v2318_v57 = vpop.f32.mrf.mxu1 }
 0x17c   :  { %v2039_v57 = vadd.f32 %v5695_v12, %v5705_v28  ;;  %v4869_v28 = vld [vmem:[%s8338_s0 + $0xf8] ss:$28 sps:$4 sm:$0xff]  }
 0x17d   :  { %v5874_v18 = vpop.f32.mrf.mxu0  ;;  %v2319_v48 = vpop.f32.mrf.mxu1 }
 0x17e   :  { %v5882_v63 = vadd.f32 %v2319_v48, %v2031_v34 }
 0x17f   :  { %v2096_v8 = vpop.f32.mrf.mxu0  ;;  %v2321_v6 = vpop.f32.mrf.mxu1 }
 0x180   :  { %v2044_v6 = vadd.f32 %v5695_v12, %v5723_v47  ;;  %v4866_v47 = vld [vmem:[%s8338_s0 + $0x400] ss:$28 sps:$4 sm:$0xff]  }
 0x181   :  { %v5892_v11 = vpop.f32.mrf.mxu0  ;;  %v2324_v26 = vpop.f32.mrf.mxu1  ;;  %2676 = vmatmul.mubr.bf16.gmra.mxu0 %v4856_v61  ;;  %4463 = vmatmul.mubr.msk.bf16.vlgmr.msra.gmra.mxu1 %vm1840_vm0, %v4860_v55  ;;  %v4865_v61 = vld [vmem:[%s8338_s0 + $0xc0] ss:$28 sps:$4 sm:$0xff]  }
 0x182   :  { %v5895_v16 = vadd.f32 %v2324_v26, %v2036_v49  ;;  %2683 = vmatprep.mubr.bf16.mxu0 %v4863_v43  ;;  %4466 = vmatprep.mubr.msk.bf16.mxu1 %vm1840_vm0, %v4864_v4  ;;  %v4868_v43 = vld [vmem:[%s8338_s0 + $0x404] ss:$28 sps:$4 sm:$0xff]  }
 0x183   :  { %v2101_v32 = vpop.f32.mrf.mxu0  ;;  %v2326_v30 = vpop.f32.mrf.mxu1 }
 0x185   :  { %v5900_v34 = vpop.f32.mrf.mxu0  ;;  %v2327_v48 = vpop.f32.mrf.mxu1 }
 0x186   :  { %v5908_v55 = vadd.f32 %v2327_v48, %v2039_v57  ;;  %v2047_v48 = vadd.f32 %v5695_v12, %v5729_v59  ;;  %v4874_v59 = vld [vmem:[%s8338_s0 + $0x168] ss:$28 sps:$4 sm:$0xff]  }
 0x187   :  { %v2104_v4 = vpop.f32.mrf.mxu0  ;;  %v2329_v8 = vpop.f32.mrf.mxu1 }
 0x189   :  { %v5918_v49 = vpop.f32.mrf.mxu0  ;;  %v2332_v26 = vpop.f32.mrf.mxu1  ;;  %2684 = vmatmul.mubr.bf16.gmra.mxu0 %v4861_v20  ;;  %4467 = vmatmul.mubr.msk.bf16.gmra.mxu1 %vm1840_vm0, %v4865_v61  ;;  %v4870_v20 = vld [vmem:[%s8338_s0 + $0x130] ss:$28 sps:$4 sm:$0xff]  }
 0x18a   :  { %v5921_v32 = vadd.f32 %v2332_v26, %v2044_v6  ;;  %2691 = vmatprep.mubr.bf16.mxu0 %v4868_v43  ;;  %4470 = vmatprep.mubr.msk.bf16.mxu1 %vm1840_vm0, %v4869_v28  ;;  %v4873_v43 = vld [vmem:[%s8338_s0 + $0x43c] ss:$28 sps:$4 sm:$0xff]   ;;  %v2052_v26 = vadd.f32 %v5695_v12, %v5747_v13 }
 0x18b   :  { %v2109_v30 = vpop.f32.mrf.mxu0  ;;  %v2334_v57 = vpop.f32.mrf.mxu1  ;;  %v4871_v13 = vld [vmem:[%s8338_s0 + $0x438] ss:$28 sps:$4 sm:$0xff]  }
 0x18d   :  { %v5926_v4 = vpop.f32.mrf.mxu0  ;;  %v2335_v8 = vpop.f32.mrf.mxu1 }
 0x18e   :  { %v5934_v61 = vadd.f32 %v2335_v8, %v2047_v48 }
 0x18f   :  { %v2112_v28 = vpop.f32.mrf.mxu0  ;;  %v2337_v6 = vpop.f32.mrf.mxu1 }
 0x190   :  { %v2055_v28 = vadd.f32 %v5695_v12, %v5753_v25  ;;  %v4879_v25 = vld [vmem:[%s8338_s0 + $0x1d8] ss:$28 sps:$4 sm:$0xff]  }
 0x191   :  { %v5944_v30 = vpop.f32.mrf.mxu0  ;;  %v2340_v57 = vpop.f32.mrf.mxu1  ;;  %2692 = vmatmul.mubr.bf16.gmra.mxu0 %v4866_v47  ;;  %4471 = vmatmul.mubr.msk.bf16.gmra.mxu1 %vm1840_vm0, %v4870_v20  ;;  %v4875_v47 = vld [vmem:[%s8338_s0 + $0x1a0] ss:$28 sps:$4 sm:$0xff]  }
 0x192   :  { %v5947_v48 = vadd.f32 %v2340_v57, %v2052_v26  ;;  %2699 = vmatprep.mubr.bf16.mxu0 %v4873_v43  ;;  %4474 = vmatprep.mubr.msk.bf16.mxu1 %vm1840_vm0, %v4874_v59  ;;  %v2060_v26 = vadd.f32 %v5695_v12, %v5771_v40  ;;  %v4876_v40 = vld [vmem:[%s8338_s0 + $0x470] ss:$28 sps:$4 sm:$0xff]  }
 0x193   :  { %v2117_v8 = vpop.f32.mrf.mxu0  ;;  %v2342_v5 = vpop.f32.mrf.mxu1 }
 0x194   :  { %v4878_v5 = vld [vmem:[%s8338_s0 + $0x474] ss:$28 sps:$4 sm:$0xff]  }
 0x195   :  { %v5952_v6 = vpop.f32.mrf.mxu0  ;;  %v2343_v62 = vpop.f32.mrf.mxu1 }
 0x196   :  { %v5960_v20 = vadd.f32 %v2343_v62, %v2055_v28 }
 0x197   :  { %v2120_v43 = vpop.f32.mrf.mxu0  ;;  %v2345_v59 = vpop.f32.mrf.mxu1 }
 0x198   :  { %v2063_v43 = vadd.f32 %v5695_v12, %v5777_v41  ;;  %v4884_v41 = vld [vmem:[%s8338_s0 + $0x248] ss:$28 sps:$4 sm:$0xff]  }
 0x199   :  { %v5970_v57 = vpop.f32.mrf.mxu0  ;;  %v2348_v8 = vpop.f32.mrf.mxu1  ;;  %2700 = vmatmul.mubr.bf16.gmra.mxu0 %v4871_v13  ;;  %4475 = vmatmul.mubr.msk.bf16.gmra.mxu1 %vm1840_vm0, %v4875_v47  ;;  %v4880_v13 = vld [vmem:[%s8338_s0 + $0x210] ss:$28 sps:$4 sm:$0xff]  }
 0x19a   :  { %v5973_v62 = vadd.f32 %v2348_v8, %v2060_v26  ;;  %2707 = vmatprep.mubr.bf16.mxu0 %v4878_v5  ;;  %4478 = vmatprep.mubr.msk.bf16.mxu1 %vm1840_vm0, %v4879_v25  ;;  %v2068_v26 = vadd.f32 %v5695_v12, %v5795_v21  ;;  %v4881_v21 = vld [vmem:[%s8338_s0 + $0x4a8] ss:$28 sps:$4 sm:$0xff]  }
 0x19b   :  { %v2125_v28 = vpop.f32.mrf.mxu0  ;;  %v2350_v50 = vpop.f32.mrf.mxu1 }
 0x19c   :  { %v4883_v50 = vld [vmem:[%s8338_s0 + $0x4ac] ss:$28 sps:$4 sm:$0xff]  }
 0x19d   :  { %v5978_v59 = vpop.f32.mrf.mxu0  ;;  %v2351_v44 = vpop.f32.mrf.mxu1 }
 0x19e   :  { %v5986_v47 = vadd.f32 %v2351_v44, %v2063_v43 }
 0x19f   :  { %v2128_v5 = vpop.f32.mrf.mxu0  ;;  %v2353_v25 = vpop.f32.mrf.mxu1 }
 0x1a0   :  { %v2071_v5 = vadd.f32 %v5695_v12, %v5801_v37  ;;  %v4889_v37 = vld [vmem:[%s8338_s0 + $0x2b8] ss:$28 sps:$4 sm:$0xff]  }
 0x1a1   :  { %v5996_v8 = vpop.f32.mrf.mxu0  ;;  %v2356_v28 = vpop.f32.mrf.mxu1  ;;  %2708 = vmatmul.mubr.bf16.gmra.mxu0 %v4876_v40  ;;  %4479 = vmatmul.mubr.msk.bf16.gmra.mxu1 %vm1840_vm0, %v4880_v13  ;;  %v4885_v40 = vld [vmem:[%s8338_s0 + $0x280] ss:$28 sps:$4 sm:$0xff]  }
 0x1a2   :  { %v5999_v44 = vadd.f32 %v2356_v28, %v2068_v26  ;;  %2715 = vmatprep.mubr.bf16.mxu0 %v4883_v50  ;;  %4482 = vmatprep.mubr.msk.bf16.mxu1 %vm1840_vm0, %v4884_v41  ;;  %v2076_v26 = vadd.f32 %v5695_v12, %v5819_v60  ;;  %v4886_v60 = vld [vmem:[%s8338_s0 + $0x4e0] ss:$28 sps:$4 sm:$0xff]  }
 0x1a3   :  { %v2133_v43 = vpop.f32.mrf.mxu0  ;;  %v2358_v33 = vpop.f32.mrf.mxu1 }
 0x1a4   :  { %v4888_v33 = vld [vmem:[%s8338_s0 + $0x4e4] ss:$28 sps:$4 sm:$0xff]  }
 0x1a5   :  { %v6004_v25 = vpop.f32.mrf.mxu0  ;;  %v2359_v27 = vpop.f32.mrf.mxu1 }
 0x1a6   :  { %v6012_v13 = vadd.f32 %v2359_v27, %v2071_v5 }
 0x1a7   :  { %v2136_v50 = vpop.f32.mrf.mxu0  ;;  %v2361_v41 = vpop.f32.mrf.mxu1 }
 0x1a8   :  { %8396 = vst [vmem:[#allocation12_spill] sm:$0xff] %v6012_v13  ;;  %v2079_v50 = vadd.f32 %v5695_v12, %v5825_v10  ;;  %v4894_v10 = vld [vmem:[%s8338_s0 + $0x328] ss:$28 sps:$4 sm:$0xff]  }
 0x1a9   :  { %v6022_v28 = vpop.f32.mrf.mxu0  ;;  %v2364_v43 = vpop.f32.mrf.mxu1  ;;  %2716 = vmatmul.mubr.bf16.gmra.mxu0 %v4881_v21  ;;  %4483 = vmatmul.mubr.msk.bf16.gmra.mxu1 %vm1840_vm0, %v4885_v40  ;;  %v4890_v21 = vld [vmem:[%s8338_s0 + $0x2f0] ss:$28 sps:$4 sm:$0xff]  }
 0x1aa   :  { %v6025_v27 = vadd.f32 %v2364_v43, %v2076_v26  ;;  %2723 = vmatprep.mubr.bf16.mxu0 %v4888_v33  ;;  %4486 = vmatprep.mubr.msk.bf16.mxu1 %vm1840_vm0, %v4889_v37  ;;  %v2084_v26 = vadd.f32 %v5695_v12, %v5843_v14  ;;  %v4891_v14 = vld [vmem:[%s8338_s0 + $0x518] ss:$28 sps:$4 sm:$0xff]  }
 0x1ab   :  { %v2141_v5 = vpop.f32.mrf.mxu0  ;;  %v2366_v13 = vpop.f32.mrf.mxu1 }
 0x1ac   :  { %8397 = vst [vmem:[#allocation13_spill] sm:$0xff] %v6025_v27  ;;  %v4893_v13 = vld [vmem:[%s8338_s0 + $0x51c] ss:$28 sps:$4 sm:$0xff]  }
 0x1ad   :  { %v6030_v41 = vpop.f32.mrf.mxu0  ;;  %v2367_v19 = vpop.f32.mrf.mxu1 }
 0x1ae   :  { %v6038_v40 = vadd.f32 %v2367_v19, %v2079_v50 }
 0x1af   :  { %v2144_v33 = vpop.f32.mrf.mxu0  ;;  %v2369_v37 = vpop.f32.mrf.mxu1 }
 0x1b0   :  { %8398 = vst [vmem:[#allocation14_spill] sm:$0xff] %v6038_v40  ;;  %v2087_v33 = vadd.f32 %v5695_v12, %v5849_v56  ;;  %v4899_v56 = vld [vmem:[%s8338_s0 + $0x398] ss:$28 sps:$4 sm:$0xff]  }
 0x1b1   :  { %v6048_v43 = vpop.f32.mrf.mxu0  ;;  %v2372_v5 = vpop.f32.mrf.mxu1  ;;  %2724 = vmatmul.mubr.bf16.gmra.mxu0 %v4886_v60  ;;  %4487 = vmatmul.mubr.msk.bf16.gmra.mxu1 %vm1840_vm0, %v4890_v21  ;;  %v4895_v60 = vld [vmem:[%s8338_s0 + $0x360] ss:$28 sps:$4 sm:$0xff]  }
 0x1b2   :  { %v6051_v19 = vadd.f32 %v2372_v5, %v2084_v26  ;;  %2731 = vmatprep.mubr.bf16.mxu0 %v4893_v13  ;;  %4490 = vmatprep.mubr.msk.bf16.mxu1 %vm1840_vm0, %v4894_v10  ;;  %v2092_v26 = vadd.f32 %v5695_v12, %v5867_v29  ;;  %v4896_v29 = vld [vmem:[%s8338_s0 + $0x550] ss:$28 sps:$4 sm:$0xff]  }
 0x1b3   :  { %v2149_v50 = vpop.f32.mrf.mxu0  ;;  %v2374_v40 = vpop.f32.mrf.mxu1 }
 0x1b4   :  { %8399 = vst [vmem:[#allocation15_spill] sm:$0xff] %v6051_v19  ;;  %v4898_v40 = vld [vmem:[%s8338_s0 + $0x554] ss:$28 sps:$4 sm:$0xff]  }
 0x1b5   :  { %v6056_v37 = vpop.f32.mrf.mxu0  ;;  %v2375_v27 = vpop.f32.mrf.mxu1 }
 0x1b6   :  { %v6064_v21 = vadd.f32 %v2375_v27, %v2087_v33 }
 0x1b7   :  { %v2152_v13 = vpop.f32.mrf.mxu0  ;;  %v2377_v10 = vpop.f32.mrf.mxu1 }
 0x1b8   :  { %8400 = vst [vmem:[#allocation16_spill] sm:$0xff] %v6064_v21  ;;  %v2095_v13 = vadd.f32 %v5695_v12, %v5874_v18  ;;  %v4904_v18 = vld [vmem:[%s8338_s0 + $0x408] ss:$28 sps:$4 sm:$0xff]  }
 0x1b9   :  { %v6074_v5 = vpop.f32.mrf.mxu0  ;;  %v2380_v50 = vpop.f32.mrf.mxu1  ;;  %2732 = vmatmul.mubr.bf16.gmra.mxu0 %v4891_v14  ;;  %4491 = vmatmul.mubr.msk.bf16.gmra.mxu1 %vm1840_vm0, %v4895_v60  ;;  %v4900_v14 = vld [vmem:[%s8338_s0 + $0x3d0] ss:$28 sps:$4 sm:$0xff]  }
 0x1ba   :  { %v6077_v27 = vadd.f32 %v2380_v50, %v2092_v26  ;;  %2739 = vmatprep.mubr.bf16.mxu0 %v4898_v40  ;;  %4494 = vmatprep.mubr.msk.bf16.mxu1 %vm1840_vm0, %v4899_v56  ;;  %v2100_v26 = vadd.f32 %v5695_v12, %v5892_v11 }
 0x1bb   :  { %v2157_v33 = vpop.f32.mrf.mxu0  ;;  %v2382_v21 = vpop.f32.mrf.mxu1 }
 0x1bc   :  { %8401 = vst [vmem:[#allocation17_spill] sm:$0xff] %v6077_v27  ;;  %v4903_v21 = vld [vmem:[%s8338_s0 + $0x58c] ss:$28 sps:$4 sm:$0xff]  }
 0x1bd   :  { %v6082_v10 = vpop.f32.mrf.mxu0  ;;  %v2383_v19 = vpop.f32.mrf.mxu1 }
 0x1be   :  { %v6090_v60 = vadd.f32 %v2383_v19, %v2095_v13 }
 0x1bf   :  { %v2160_v40 = vpop.f32.mrf.mxu0  ;;  %v2385_v56 = vpop.f32.mrf.mxu1 }
 0x1c0   :  { %8402 = vst [vmem:[#allocation18_spill] sm:$0xff] %v6090_v60  ;;  %v2103_v40 = vadd.f32 %v5695_v12, %v5900_v34  ;;  %v4909_v34 = vld [vmem:[%s8338_s0 + $0x478] ss:$28 sps:$4 sm:$0xff]  }
 0x1c1   :  { %v2388_v50 = vpop.f32.mrf.mxu1  ;;  %v2549_v33 = vpop.f32.mrf.mxu0  ;;  %2740 = vmatmul.mubr.bf16.gmra.mxu0 %v4896_v29  ;;  %4495 = vmatmul.mubr.msk.bf16.gmra.mxu1 %vm1840_vm0, %v4900_v14  ;;  %v4901_v29 = vld [vmem:[%s8338_s0 + $0x588] ss:$28 sps:$4 sm:$0xff]   ;;  %v4905_v14 = vld [vmem:[%s8338_s0 + $0x440] ss:$28 sps:$4 sm:$0xff]  }
 0x1c2   :  { %v6101_v19 = vadd.f32 %v2388_v50, %v2100_v26  ;;  %v6104_v13 = vadd.f32 %v2549_v33, %v5701_v22  ;;  %2747 = vmatprep.mubr.bf16.mxu0 %v4903_v21  ;;  %4498 = vmatprep.mubr.msk.bf16.mxu1 %vm1840_vm0, %v4904_v18  ;;  %v2108_v26 = vadd.f32 %v5695_v12, %v5918_v49 }
 0x1c3   :  { %v2390_v60 = vpop.f32.mrf.mxu1  ;;  %v2551_v27 = vpop.f32.mrf.mxu0 }
 0x1c4   :  { %v4908_v27 = vld [vmem:[%s8338_s0 + $0x5c4] ss:$28 sps:$4 sm:$0xff]  }
 0x1c5   :  { %v2391_v56 = vpop.f32.mrf.mxu1  ;;  %v2552_v11 = vpop.f32.mrf.mxu0 }
 0x1c6   :  { %v6115_v22 = vadd.f32 %v2391_v56, %v2103_v40  ;;  %v6118_v21 = vadd.f32 %v2552_v11, %v5713_v1 }
 0x1c7   :  { %v2393_v60 = vpop.f32.mrf.mxu1  ;;  %v2554_v18 = vpop.f32.mrf.mxu0 }
 0x1c8   :  { %v2111_v60 = vadd.f32 %v5695_v12, %v5926_v4  ;;  %v4914_v4 = vld [vmem:[%s8338_s0 + $0x4e8] ss:$28 sps:$4 sm:$0xff]  }
 0x1c9   :  { %v2396_v50 = vpop.f32.mrf.mxu1  ;;  %v2557_v33 = vpop.f32.mrf.mxu0  ;;  %2748 = vmatmul.mubr.bf16.gmra.mxu0 %v4901_v29  ;;  %4499 = vmatmul.mubr.msk.bf16.gmra.mxu1 %vm1840_vm0, %v4905_v14  ;;  %v4906_v29 = vld [vmem:[%s8338_s0 + $0x5c0] ss:$28 sps:$4 sm:$0xff]   ;;  %v4910_v14 = vld [vmem:[%s8338_s0 + $0x4b0] ss:$28 sps:$4 sm:$0xff]  }
 0x1ca   :  { %v6129_v1 = vadd.f32 %v2396_v50, %v2108_v26  ;;  %v6132_v40 = vadd.f32 %v2557_v33, %v5725_v51  ;;  %2755 = vmatprep.mubr.bf16.mxu0 %v4908_v27  ;;  %4502 = vmatprep.mubr.msk.bf16.mxu1 %vm1840_vm0, %v4909_v34  ;;  %v4913_v34 = vld [vmem:[%s8338_s0 + $0x5fc] ss:$28 sps:$4 sm:$0xff]   ;;  %v2116_v33 = vadd.f32 %v5695_v12, %v5944_v30 }
 0x1cb   :  { %v2398_v56 = vpop.f32.mrf.mxu1  ;;  %v2559_v11 = vpop.f32.mrf.mxu0 }
 0x1cd   :  { %v2399_v18 = vpop.f32.mrf.mxu1  ;;  %v2560_v49 = vpop.f32.mrf.mxu0 }
 0x1ce   :  { %v6143_v51 = vadd.f32 %v2399_v18, %v2111_v60  ;;  %v6146_v27 = vadd.f32 %v2560_v49, %v5737_v0 }
 0x1cf   :  { %v2401_v26 = vpop.f32.mrf.mxu1  ;;  %v2562_v50 = vpop.f32.mrf.mxu0 }
 0x1d0   :  { %v2119_v26 = vadd.f32 %v5695_v12, %v5952_v6  ;;  %v4919_v6 = vld [vmem:[%s8338_s0 + $0x558] ss:$28 sps:$4 sm:$0xff]  }
 0x1d1   :  { %v2404_v56 = vpop.f32.mrf.mxu1  ;;  %v2565_v11 = vpop.f32.mrf.mxu0  ;;  %2756 = vmatmul.mubr.bf16.gmra.mxu0 %v4906_v29  ;;  %4503 = vmatmul.mubr.msk.bf16.gmra.mxu1 %vm1840_vm0, %v4910_v14  ;;  %v4911_v29 = vld [vmem:[%s8338_s0 + $0x5f8] ss:$28 sps:$4 sm:$0xff]   ;;  %v4915_v14 = vld [vmem:[%s8338_s0 + $0x520] ss:$28 sps:$4 sm:$0xff]  }
 0x1d2   :  { %v6157_v0 = vadd.f32 %v2404_v56, %v2116_v33  ;;  %v6160_v60 = vadd.f32 %v2565_v11, %v5749_v17  ;;  %2763 = vmatprep.mubr.bf16.mxu0 %v4913_v34  ;;  %4506 = vmatprep.mubr.msk.bf16.mxu1 %vm1840_vm0, %v4914_v4  ;;  %v4918_v4 = vld [vmem:[%s8338_s0 + $0x634] ss:$28 sps:$4 sm:$0xff]   ;;  %v2124_v11 = vadd.f32 %v5695_v12, %v5970_v57 }
 0x1d3   :  { %v2406_v18 = vpop.f32.mrf.mxu1  ;;  %v2567_v49 = vpop.f32.mrf.mxu0 }
 0x1d5   :  { %v2407_v50 = vpop.f32.mrf.mxu1  ;;  %v2568_v30 = vpop.f32.mrf.mxu0 }
 0x1d6   :  { %v6171_v17 = vadd.f32 %v2407_v50, %v2119_v26  ;;  %v6174_v34 = vadd.f32 %v2568_v30, %v5761_v36 }
 0x1d7   :  { %v2409_v33 = vpop.f32.mrf.mxu1  ;;  %v2570_v56 = vpop.f32.mrf.mxu0 }
 0x1d8   :  { %v2127_v33 = vadd.f32 %v5695_v12, %v5978_v59  ;;  %v4924_v59 = vld [vmem:[%s8338_s0 + $0x5c8] ss:$28 sps:$4 sm:$0xff]  }
 0x1d9   :  { %v2412_v18 = vpop.f32.mrf.mxu1  ;;  %v2573_v49 = vpop.f32.mrf.mxu0  ;;  %2764 = vmatmul.mubr.bf16.gmra.mxu0 %v4911_v29  ;;  %4507 = vmatmul.mubr.msk.bf16.gmra.mxu1 %vm1840_vm0, %v4915_v14  ;;  %v4916_v29 = vld [vmem:[%s8338_s0 + $0x630] ss:$28 sps:$4 sm:$0xff]  }
 0x1da   :  { %v6185_v36 = vadd.f32 %v2412_v18, %v2124_v11  ;;  %v6188_v26 = vadd.f32 %v2573_v49, %v5773_v52  ;;  %2771 = vmatprep.mubr.bf16.mxu0 %v4918_v4  ;;  %4510 = vmatprep.mubr.msk.bf16.mxu1 %vm1840_vm0, %v4919_v6  ;;  %v4920_v14 = vld [vmem:[%s8338_s0 + $0x590] ss:$28 sps:$4 sm:$0xff]   ;;  %v2132_v49 = vadd.f32 %v5695_v12, %v5996_v8 }
 0x1db   :  { %v2414_v50 = vpop.f32.mrf.mxu1  ;;  %v2575_v30 = vpop.f32.mrf.mxu0  ;;  %v4923_v6 = vld [vmem:[%s8338_s0 + $0x66c] ss:$28 sps:$4 sm:$0xff]  }
 0x1dd   :  { %v2415_v56 = vpop.f32.mrf.mxu1  ;;  %v2576_v57 = vpop.f32.mrf.mxu0 }
 0x1de   :  { %v6199_v52 = vadd.f32 %v2415_v56, %v2127_v33  ;;  %v6202_v4 = vadd.f32 %v2576_v57, %v5785_v45 }
 0x1df   :  { %v2417_v11 = vpop.f32.mrf.mxu1  ;;  %v2578_v18 = vpop.f32.mrf.mxu0 }
 0x1e0   :  { %v2135_v11 = vadd.f32 %v5695_v12, %v6004_v25  ;;  %v4929_v25 = vld [vmem:[%s8338_s0 + $0x638] ss:$28 sps:$4 sm:$0xff]  }
 0x1e1   :  { %v2420_v50 = vpop.f32.mrf.mxu1  ;;  %v2581_v30 = vpop.f32.mrf.mxu0  ;;  %2772 = vmatmul.mubr.bf16.gmra.mxu0 %v4916_v29  ;;  %4511 = vmatmul.mubr.msk.bf16.gmra.mxu1 %vm1840_vm0, %v4920_v14  ;;  %v4921_v29 = vld [vmem:[%s8338_s0 + $0x668] ss:$28 sps:$4 sm:$0xff]   ;;  %v4925_v14 = vld [vmem:[%s8338_s0 + $0x600] ss:$28 sps:$4 sm:$0xff]  }
 0x1e2   :  { %v6213_v45 = vadd.f32 %v2420_v50, %v2132_v49  ;;  %v6216_v33 = vadd.f32 %v2581_v30, %v5797_v24  ;;  %2779 = vmatprep.mubr.bf16.mxu0 %v4923_v6  ;;  %4514 = vmatprep.mubr.msk.bf16.mxu1 %vm1840_vm0, %v4924_v59  ;;  %v4928_v59 = vld [vmem:[%s8338_s0 + $0x6a4] ss:$28 sps:$4 sm:$0xff]   ;;  %v2140_v30 = vadd.f32 %v5695_v12, %v6022_v28 }
 0x1e3   :  { %v2422_v56 = vpop.f32.mrf.mxu1  ;;  %v2583_v57 = vpop.f32.mrf.mxu0 }
 0x1e5   :  { %v2423_v18 = vpop.f32.mrf.mxu1  ;;  %v2584_v8 = vpop.f32.mrf.mxu0 }
 0x1e6   :  { %v6227_v24 = vadd.f32 %v2423_v18, %v2135_v11  ;;  %v6230_v6 = vadd.f32 %v2584_v8, %v5809_v38 }
 0x1e7   :  { %v2425_v49 = vpop.f32.mrf.mxu1  ;;  %v2586_v50 = vpop.f32.mrf.mxu0 }
 0x1e8   :  { %v2143_v49 = vadd.f32 %v5695_v12, %v6030_v41  ;;  %v4934_v41 = vld [vmem:[%s8338_s0 + $0x6a8] ss:$28 sps:$4 sm:$0xff]  }
 0x1e9   :  { %v2428_v56 = vpop.f32.mrf.mxu1  ;;  %v2589_v57 = vpop.f32.mrf.mxu0  ;;  %2780 = vmatmul.mubr.bf16.gmra.mxu0 %v4921_v29  ;;  %4515 = vmatmul.mubr.msk.bf16.gmra.mxu1 %vm1840_vm0, %v4925_v14  ;;  %v4926_v29 = vld [vmem:[%s8338_s0 + $0x6a0] ss:$28 sps:$4 sm:$0xff]   ;;  %v4930_v14 = vld [vmem:[%s8338_s0 + $0x670] ss:$28 sps:$4 sm:$0xff]  }
 0x1ea   :  { %v6241_v38 = vadd.f32 %v2428_v56, %v2140_v30  ;;  %v6244_v11 = vadd.f32 %v2589_v57, %v5821_v2  ;;  %2787 = vmatprep.mubr.bf16.mxu0 %v4928_v59  ;;  %4518 = vmatprep.mubr.msk.bf16.mxu1 %vm1840_vm0, %v4929_v25  ;;  %v4933_v25 = vld [vmem:[%s8338_s0 + $0x6dc] ss:$28 sps:$4 sm:$0xff]   ;;  %v2148_v57 = vadd.f32 %v5695_v12, %v6048_v43 }
 0x1eb   :  { %v2430_v18 = vpop.f32.mrf.mxu1  ;;  %v2591_v8 = vpop.f32.mrf.mxu0 }
 0x1ed   :  { %v2431_v50 = vpop.f32.mrf.mxu1  ;;  %v2592_v28 = vpop.f32.mrf.mxu0 }
 0x1ee   :  { %v6255_v2 = vadd.f32 %v2431_v50, %v2143_v49  ;;  %v6258_v59 = vadd.f32 %v2592_v28, %v5833_v23 }
 0x1ef   :  { %v2433_v30 = vpop.f32.mrf.mxu1  ;;  %v2594_v56 = vpop.f32.mrf.mxu0 }
 0x1f0   :  { %v2151_v30 = vadd.f32 %v5695_v12, %v6056_v37  ;;  %v2156_v37 = vadd.f32 %v5695_v12, %v6074_v5 }
 0x1f1   :  { %v2436_v18 = vpop.f32.mrf.mxu1  ;;  %v2597_v8 = vpop.f32.mrf.mxu0  ;;  %2788 = vmatmul.mubr.bf16.gmra.mxu0 %v4926_v29  ;;  %4519 = vmatmul.mubr.msk.bf16.gmra.mxu1 %vm1840_vm0, %v4930_v14  ;;  %v4931_v29 = vld [vmem:[%s8338_s0 + $0x6d8] ss:$28 sps:$4 sm:$0xff]   ;;  %v4935_v14 = vld [vmem:[%s8338_s0 + $0x6e0] ss:$28 sps:$4 sm:$0xff]  }
 0x1f2   :  { %v6269_v23 = vadd.f32 %v2436_v18, %v2148_v57  ;;  %v6272_v49 = vadd.f32 %v2597_v8, %v5845_v39  ;;  %2795 = vmatprep.mubr.bf16.mxu0 %v4933_v25  ;;  %4522 = vmatprep.mubr.msk.bf16.mxu1 %vm1840_vm0, %v4934_v41 }
 0x1f3   :  { %v2438_v50 = vpop.f32.mrf.mxu1  ;;  %v2599_v28 = vpop.f32.mrf.mxu0 }
 0x1f5   :  { %v2439_v56 = vpop.f32.mrf.mxu1  ;;  %v2600_v43 = vpop.f32.mrf.mxu0 }
 0x1f6   :  { %v6283_v39 = vadd.f32 %v2439_v56, %v2151_v30  ;;  %v6286_v25 = vadd.f32 %v2600_v43, %v5857_v9  ;;  %v2159_v9 = vadd.f32 %v5695_v12, %v6082_v10 }
 0x1f7   :  { %v2441_v41 = vpop.f32.mrf.mxu1  ;;  %v2602_v57 = vpop.f32.mrf.mxu0 }
 0x1f8   :  { %8403 = vst [vmem:[#allocation19_spill] sm:$0xff] %v6283_v39 }
 0x1f9   :  { %v2444_v18 = vpop.f32.mrf.mxu1  ;;  %v2605_v8 = vpop.f32.mrf.mxu0  ;;  %2796 = vmatmul.mubr.bf16.gmra.mxu0 %v4931_v29  ;;  %4523 = vmatmul.mubr.msk.bf16.gmra.mxu1 %vm1840_vm0, %v4935_v14  ;;  %v2164_v14 = vadd.f32 %v5695_v12, %v5534_v31 }
 0x1fa   :  { %v6291_v50 = vadd.f32 %v2444_v18, %v2156_v37  ;;  %v6294_v28 = vadd.f32 %v2605_v8, %v5869_v53 }
 0x1fb   :  { %v2446_v30 = vpop.f32.mrf.mxu1  ;;  %v2607_v56 = vpop.f32.mrf.mxu0 }
 0x1fc   :  { %v2167_v56 = vadd.f32 %v5695_v12, %v5538_v35 }
 0x1fd   :  { %v2447_v43 = vpop.f32.mrf.mxu1  ;;  %v2608_v41 = vpop.f32.mrf.mxu0 }
 0x1fe   :  { %v6298_v57 = vadd.f32 %v2447_v43, %v2159_v9  ;;  %v6301_v5 = vadd.f32 %v2608_v41, %v5882_v63 }
 0x1ff   :  { %v2449_v29 = vpop.f32.mrf.mxu1  ;;  %v2610_v39 = vpop.f32.mrf.mxu0 }
 0x200   :  { %v2172_v29 = vadd.f32 %v5695_v12, %v5554_v42 }
 0x201   :  { %v2452_v37 = vpop.f32.mrf.mxu1  ;;  %v2613_v53 = vpop.f32.mrf.mxu0 }
 0x202   :  { %v6305_v18 = vadd.f32 %v2452_v37, %v2164_v14  ;;  %v6308_v8 = vadd.f32 %v2613_v53, %v5895_v16 }
 0x203   :  { %v2454_v10 = vpop.f32.mrf.mxu1  ;;  %v2615_v30 = vpop.f32.mrf.mxu0 }
 0x204   :  { %8404 = vst [vmem:[#allocation20_spill] sm:$0xff] %v6305_v18  ;;  %v6327_v30 = vld [vmem:[%s8340_s2] ss:$0 sm:$0xff] }
 0x205   :  { %v2455_v9 = vpop.f32.mrf.mxu1  ;;  %v2616_v63 = vpop.f32.mrf.mxu0 }
 0x206   :  { %v6312_v43 = vadd.f32 %v2455_v9, %v2167_v56  ;;  %v6315_v39 = vadd.f32 %v2616_v63, %v5908_v55  ;;  %v2175_v55 = vadd.f32 %v6327_v30, %v5558_v46 }
 0x207   :  { %v2457_v31 = vpop.f32.mrf.mxu1  ;;  %v2618_v41 = vpop.f32.mrf.mxu0 }
 0x208   :  { %8405 = vst [vmem:[#allocation21_spill] sm:$0xff] %v6312_v43  ;;  %v2180_v31 = vadd.f32 %v6327_v30, %v5574_v54  ;;  %v8425_v43 = vld [vmem:[#allocation9_spill] sm:$0xff] }
 0x209   :  { %v2460_v14 = vpop.f32.mrf.mxu1  ;;  %v2621_v16 = vpop.f32.mrf.mxu0 }
 0x20a   :  { %v6319_v37 = vadd.f32 %v2460_v14, %v2172_v29  ;;  %v6322_v53 = vadd.f32 %v2621_v16, %v5921_v32 }
 0x20b   :  { %v2462_v35 = vpop.f32.mrf.mxu1  ;;  %v2623_v10 = vpop.f32.mrf.mxu0 }
 0x20c   :  { %8406 = vst [vmem:[#allocation22_spill] sm:$0xff] %v6319_v37  ;;  %v2183_v10 = vadd.f32 %v6327_v30, %v5578_v58  ;;  %v8430_v37 = vld [vmem:[#allocation11_spill] sm:$0xff] }
 0x20d   :  { %v2463_v56 = vpop.f32.mrf.mxu1  ;;  %v2624_v9 = vpop.f32.mrf.mxu0 }
 0x20e   :  { %v6331_v42 = vadd.f32 %v2463_v56, %v2175_v55  ;;  %v6334_v12 = vadd.f32 %v2624_v9, %v5934_v61 }
 0x20f   :  { %v2465_v63 = vpop.f32.mrf.mxu1  ;;  %v2626_v32 = vpop.f32.mrf.mxu0 }
 0x210   :  { %8407 = vst [vmem:[#allocation23_spill] sm:$0xff] %v6331_v42  ;;  %v2188_v32 = vadd.f32 %v6327_v30, %v5594_v3  ;;  %v8428_v42 = vld [vmem:[#allocation10_spill] sm:$0xff] }
 0x211   :  { %v2468_v41 = vpop.f32.mrf.mxu1  ;;  %v2629_v29 = vpop.f32.mrf.mxu0 }
 0x212   :  { %v6338_v14 = vadd.f32 %v2468_v41, %v2180_v31  ;;  %v6341_v16 = vadd.f32 %v2629_v29, %v5947_v48 }
 0x213   :  { %v2470_v46 = vpop.f32.mrf.mxu1  ;;  %v2631_v35 = vpop.f32.mrf.mxu0 }
 0x214   :  { %8408 = vst [vmem:[#allocation24_spill] sm:$0xff] %v6338_v14  ;;  %v2191_v35 = vadd.f32 %v6327_v30, %v5598_v7  ;;  %v8422_v14 = vld [vmem:[#allocation8_spill] sm:$0xff] }
 0x215   :  { %v2471_v55 = vpop.f32.mrf.mxu1  ;;  %v2632_v61 = vpop.f32.mrf.mxu0 }
 0x216   :  { %v6345_v56 = vadd.f32 %v2471_v55, %v2183_v10  ;;  %v6348_v9 = vadd.f32 %v2632_v61, %v5960_v20 }
 0x217   :  { %v2473_v54 = vpop.f32.mrf.mxu1  ;;  %v2634_v63 = vpop.f32.mrf.mxu0 }
 0x218   :  { %8409 = vst [vmem:[#allocation25_spill] sm:$0xff] %v6345_v56  ;;  %v2196_v63 = vadd.f32 %v6327_v30, %v5614_v15 }
 0x219   :  { %v2476_v31 = vpop.f32.mrf.mxu1  ;;  %v2637_v48 = vpop.f32.mrf.mxu0 }
 0x21a   :  { %v6352_v41 = vadd.f32 %v2476_v31, %v2188_v32  ;;  %v6355_v29 = vadd.f32 %v2637_v48, %v5973_v62 }
 0x21b   :  { %v2478_v58 = vpop.f32.mrf.mxu1  ;;  %v2639_v46 = vpop.f32.mrf.mxu0 }
 0x21c   :  { %8410 = vst [vmem:[#allocation26_spill] sm:$0xff] %v6352_v41  ;;  %v8413_v46 = vld [vmem:[#allocation5_spill] sm:$0xff]  ;;  %v8419_v41 = vld [vmem:[#allocation7_spill] sm:$0xff] }
 0x21d   :  { %v2479_v10 = vpop.f32.mrf.mxu1  ;;  %v2640_v20 = vpop.f32.mrf.mxu0 }
 0x21e   :  { %v6359_v55 = vadd.f32 %v2479_v10, %v2191_v35  ;;  %v6362_v61 = vadd.f32 %v2640_v20, %v5986_v47  ;;  %v2199_v35 = vadd.f32 %v6327_v30, %v8413_v46 }
 0x21f   :  { %v2481_v3 = vpop.f32.mrf.mxu1  ;;  %v2642_v54 = vpop.f32.mrf.mxu0 }
 0x220   :  { %8411 = vst [vmem:[#allocation27_spill] sm:$0xff] %v6359_v55  ;;  %v8415_v3 = vld [vmem:[#allocation12_spill] sm:$0xff]  ;;  %v8416_v55 = vld [vmem:[#allocation6_spill] sm:$0xff] }
 0x221   :  { %v2484_v32 = vpop.f32.mrf.mxu1  ;;  %v2645_v62 = vpop.f32.mrf.mxu0 }
 0x222   :  { %v6366_v31 = vadd.f32 %v2484_v32, %v2196_v63  ;;  %v6369_v48 = vadd.f32 %v2645_v62, %v5999_v44  ;;  %v2204_v63 = vadd.f32 %v6327_v30, %v8416_v55 }
 0x223   :  { %v2486_v7 = vpop.f32.mrf.mxu1  ;;  %v2647_v58 = vpop.f32.mrf.mxu0 }
 0x224   :  { %8412 = vst [vmem:[#allocation28_spill] sm:$0xff] %v6366_v31  ;;  %v8418_v7 = vld [vmem:[#allocation13_spill] sm:$0xff] }
 0x225   :  { %v2487_v10 = vpop.f32.mrf.mxu1  ;;  %v2648_v47 = vpop.f32.mrf.mxu0 }
 0x226   :  { %v6373_v20 = vadd.f32 %v2487_v10, %v2199_v35  ;;  %v6376_v54 = vadd.f32 %v2648_v47, %v8415_v3  ;;  %v2207_v35 = vadd.f32 %v6327_v30, %v8419_v41 }
 0x227   :  { %v2489_v15 = vpop.f32.mrf.mxu1  ;;  %v2650_v56 = vpop.f32.mrf.mxu0 }
 0x228   :  { %8414 = vst [vmem:[#allocation5_spill] sm:$0xff] %v6373_v20  ;;  %v8421_v56 = vld [vmem:[#allocation14_spill] sm:$0xff] }
 0x229   :  { %v2492_v32 = vpop.f32.mrf.mxu1  ;;  %v2653_v44 = vpop.f32.mrf.mxu0 }
 0x22a   :  { %v6380_v62 = vadd.f32 %v2492_v32, %v2204_v63  ;;  %v6383_v58 = vadd.f32 %v2653_v44, %v8418_v7  ;;  %v2212_v63 = vadd.f32 %v6327_v30, %v8422_v14 }
 0x22b   :  { %v2494_v46 = vpop.f32.mrf.mxu1  ;;  %v2655_v31 = vpop.f32.mrf.mxu0 }
 0x22c   :  { %8417 = vst [vmem:[#allocation12_spill] sm:$0xff] %v6380_v62  ;;  %v8424_v31 = vld [vmem:[#allocation15_spill] sm:$0xff] }
 0x22d   :  { %v2495_v10 = vpop.f32.mrf.mxu1  ;;  %v2656_v47 = vpop.f32.mrf.mxu0 }
 0x22e   :  { %v6387_v3 = vadd.f32 %v2495_v10, %v2207_v35  ;;  %v6390_v15 = vadd.f32 %v2656_v47, %v8421_v56  ;;  %v2215_v35 = vadd.f32 %v6327_v30, %v8425_v43 }
 0x22f   :  { %v2497_v55 = vpop.f32.mrf.mxu1  ;;  %v2658_v20 = vpop.f32.mrf.mxu0 }
 0x230   :  { %8420 = vst [vmem:[#allocation6_spill] sm:$0xff] %v6387_v3  ;;  %v8427_v20 = vld [vmem:[#allocation16_spill] sm:$0xff] }
 0x231   :  { %v2500_v32 = vpop.f32.mrf.mxu1  ;;  %v2661_v44 = vpop.f32.mrf.mxu0 }
 0x232   :  { %v6394_v7 = vadd.f32 %v2500_v32, %v2212_v63  ;;  %v6397_v46 = vadd.f32 %v2661_v44, %v8424_v31  ;;  %v2220_v63 = vadd.f32 %v6327_v30, %v8428_v42 }
 0x233   :  { %v2502_v41 = vpop.f32.mrf.mxu1  ;;  %v2663_v62 = vpop.f32.mrf.mxu0 }
 0x234   :  { %8423 = vst [vmem:[#allocation13_spill] sm:$0xff] %v6394_v7  ;;  %v8429_v62 = vld [vmem:[#allocation17_spill] sm:$0xff] }
 0x235   :  { %v2503_v10 = vpop.f32.mrf.mxu1  ;;  %v2664_v47 = vpop.f32.mrf.mxu0 }
 0x236   :  { %v6401_v56 = vadd.f32 %v2503_v10, %v2215_v35  ;;  %v6404_v55 = vadd.f32 %v2664_v47, %v8427_v20  ;;  %v2223_v35 = vadd.f32 %v6327_v30, %v8430_v37 }
 0x237   :  { %v2505_v14 = vpop.f32.mrf.mxu1  ;;  %v2666_v3 = vpop.f32.mrf.mxu0 }
 0x238   :  { %8426 = vst [vmem:[#allocation7_spill] sm:$0xff] %v6401_v56  ;;  %v8431_v3 = vld [vmem:[#allocation18_spill] sm:$0xff] }
 0x239   :  { %v2508_v32 = vpop.f32.mrf.mxu1  ;;  %v2669_v44 = vpop.f32.mrf.mxu0 }
 0x23a   :  { %v6408_v31 = vadd.f32 %v2508_v32, %v2220_v63  ;;  %v6411_v41 = vadd.f32 %v2669_v44, %v8429_v62 }
 0x23b   :  { %v2510_v43 = vpop.f32.mrf.mxu1  ;;  %v2671_v7 = vpop.f32.mrf.mxu0 }
 0x23d   :  { %v2511_v10 = vpop.f32.mrf.mxu1  ;;  %v2672_v47 = vpop.f32.mrf.mxu0 }
 0x23e   :  { %v6415_v20 = vadd.f32 %v2511_v10, %v2223_v35  ;;  %v6418_v14 = vadd.f32 %v2672_v47, %v8431_v3 }
 0x23f   :  { %v2513_v42 = vpop.f32.mrf.mxu1  ;;  %v2674_v56 = vpop.f32.mrf.mxu0 }
 0x241   :  { %v2677_v18 = vpop.f32.mrf.mxu0  ;;  %v4464_v63 = vpop.f32.mrf.mxu1 }
 0x242   :  { %v6421_v32 = vadd.f32 %v2677_v18, %v6101_v19  ;;  %v2847_v7 = vadd.f32 %v4464_v63, %v6132_v40 }
 0x243   :  { %v2679_v44 = vpop.f32.mrf.mxu0  ;;  %v2838_v62 = vpop.f32.mrf.mxu1 }
 0x244   :  { %v2839_v37 = vadd.f32 %v2838_v62, %v6104_v13  ;;  %v3159_v42 = vmul.f32 0.01, %v2847_v7  ;;  %vm3095_vm2 = vcmp.ge.f32.partialorder %v2847_v7, 0.0 }
 0x245   :  { %v2680_v30 = vpop.f32.mrf.mxu0  ;;  %v4465_v43 = vpop.f32.mrf.mxu1 }
 0x246   :  { %vm3093_vm1 = vcmp.ge.f32.partialorder %v2839_v37, 0.0  ;;  %v3157_v35 = vmul.f32 0.01, %v2839_v37  ;;  %v6426_v10 = vadd.f32 %v2680_v30, %v6115_v22  ;;  %v2850_v56 = vadd.f32 %v4465_v43, %v6146_v27 }
 0x247   :  { %v2682_v47 = vpop.f32.mrf.mxu0  ;;  %v2841_v3 = vpop.f32.mrf.mxu1  ;;  %v6435_v27 = vsel %vm3095_vm2, %v2847_v7, %v3159_v42 }
 0x248   :  { %v2842_v19 = vadd.f32 %v2841_v3, %v6118_v21  ;;  %v6430_v18 = vsel %vm3093_vm1, %v2839_v37, %v3157_v35  ;;  %v3160_v13 = vmul.f32 0.01, %v2850_v56  ;;  %vm3096_vm4 = vcmp.ge.f32.partialorder %v2850_v56, 0.0 }
 0x249   :  { %8432 = vst [vmem:[#allocation14_spill] sm:$0xff] %v6430_v18  ;;  %v2685_v40 = vpop.f32.mrf.mxu0  ;;  %v4468_v63 = vpop.f32.mrf.mxu1  ;;  %v3286_v21 = vsel %vm3285_vm5, %v6430_v18, 0.0 }
 0x24a   :  { %vm3094_vm3 = vcmp.ge.f32.partialorder %v2842_v19, 0.0  ;;  %v3158_v44 = vmul.f32 0.01, %v2842_v19  ;;  %v6433_v62 = vadd.f32 %v2685_v40, %v6129_v1  ;;  %v2863_v35 = vadd.f32 %v4468_v63, %v6188_v26 }
 0x24b   :  { %v2687_v22 = vpop.f32.mrf.mxu0  ;;  %v2854_v30 = vpop.f32.mrf.mxu1  ;;  %v6445_v40 = vsel %vm3096_vm4, %v2850_v56, %v3160_v13 }
 0x24c   :  { %v6437_v43 = vsel %vm3094_vm3, %v2842_v19, %v3158_v44  ;;  %v2855_v47 = vadd.f32 %v2854_v30, %v6160_v60  ;;  %8434 = vst [vmem:[#allocation15_spill] sm:$0xff] %v6445_v40  ;;  %v3289_v19 = vsel %vm3285_vm5, %v6435_v27, 0.0  ;;  %v3291_v56 = vsel %vm3285_vm5, %v6445_v40, 0.0 }
 0x24d   :  { %8433 = vst [vmem:[#allocation8_spill] sm:$0xff] %v6437_v43  ;;  %v3287_v37 = vsel %vm3285_vm5, %v6437_v43, 0.0  ;;  %v2688_v1 = vpop.f32.mrf.mxu0  ;;  %v4469_v3 = vpop.f32.mrf.mxu1  ;;  %v3163_v63 = vmul.f32 0.01, %v2863_v35  ;;  %vm3099_vm7 = vcmp.ge.f32.partialorder %v2863_v35, 0.0 }
 0x24e   :  { %v3288_v22 = vadd.f32 %v3287_v37, %v3286_v21  ;;  %v6448_v7 = vadd.f32 %v2688_v1, %v6143_v51  ;;  %v2866_v42 = vadd.f32 %v4469_v3, %v6202_v4  ;;  %vm3097_vm6 = vcmp.ge.f32.partialorder %v2855_v47, 0.0 }
 0x24f   :  { %v3161_v44 = vmul.f32 0.01, %v2855_v47  ;;  %v2690_v43 = vpop.f32.mrf.mxu0  ;;  %v2857_v18 = vpop.f32.mrf.mxu1 }
 0x250   :  { %v3290_v26 = vadd.f32 %v3289_v19, %v3288_v22  ;;  %v2858_v60 = vadd.f32 %v2857_v18, %v6174_v34  ;;  %v3164_v51 = vmul.f32 0.01, %v2866_v42  ;;  %vm3100_vm8 = vcmp.ge.f32.partialorder %v2866_v42, 0.0 }
 0x251   :  { %v6456_v13 = vsel %vm3097_vm6, %v2855_v47, %v3161_v44  ;;  %v2693_v30 = vpop.f32.mrf.mxu0  ;;  %v4472_v21 = vpop.f32.mrf.mxu1  ;;  %v6465_v19 = vsel %vm3099_vm7, %v2863_v35, %v3163_v63 }
 0x252   :  { %8435 = vst [vmem:[#allocation9_spill] sm:$0xff] %v6456_v13  ;;  %v3292_v4 = vadd.f32 %v3291_v56, %v3290_v26  ;;  %vm3098_vm9 = vcmp.ge.f32.partialorder %v2858_v60, 0.0  ;;  %v3293_v43 = vsel %vm3285_vm5, %v6456_v13, 0.0  ;;  %v3162_v37 = vmul.f32 0.01, %v2858_v60 }
 0x253   :  { %v6461_v1 = vadd.f32 %v2693_v30, %v6157_v0  ;;  %v2695_v34 = vpop.f32.mrf.mxu0  ;;  %v2870_v18 = vpop.f32.mrf.mxu1  ;;  %v2879_v47 = vadd.f32 %v4472_v21, %v6244_v11  ;;  %v6467_v44 = vsel %vm3100_vm8, %v2866_v42, %v3164_v51  ;;  %v3297_v42 = vsel %vm3285_vm5, %v6465_v19, 0.0 }
 0x254   :  { %v3294_v3 = vadd.f32 %v3293_v43, %v3292_v4  ;;  %v2871_v22 = vadd.f32 %v2870_v18, %v6216_v33  ;;  %v6469_v26 = vsel %vm3098_vm9, %v2858_v60, %v3162_v37  ;;  %v3299_v51 = vsel %vm3285_vm5, %v6467_v44, 0.0 }
 0x255   :  { %v2696_v56 = vpop.f32.mrf.mxu0  ;;  %v4473_v40 = vpop.f32.mrf.mxu1  ;;  %v3295_v13 = vsel %vm3285_vm5, %v6469_v26, 0.0  ;;  %v3167_v60 = vmul.f32 0.01, %v2879_v47  ;;  %vm3103_vm11 = vcmp.ge.f32.partialorder %v2879_v47, 0.0 }
 0x256   :  { %vm3101_vm10 = vcmp.ge.f32.partialorder %v2871_v22, 0.0  ;;  %v3165_v0 = vmul.f32 0.01, %v2871_v22  ;;  %v6474_v30 = vadd.f32 %v2696_v56, %v6171_v17  ;;  %v3296_v4 = vadd.f32 %v3295_v13, %v3294_v3 }
 0x257   :  { %v2882_v11 = vadd.f32 %v4473_v40, %v6258_v59  ;;  %v2698_v33 = vpop.f32.mrf.mxu0  ;;  %v2873_v35 = vpop.f32.mrf.mxu1 }
 0x258   :  { %v2874_v63 = vadd.f32 %v2873_v35, %v6230_v6  ;;  %v3298_v21 = vadd.f32 %v3297_v42, %v3296_v4  ;;  %v6482_v43 = vsel %vm3101_vm10, %v2871_v22, %v3165_v0  ;;  %v6487_v6 = vsel %vm3103_vm11, %v2879_v47, %v3167_v60 }
 0x259   :  { %v2701_v17 = vpop.f32.mrf.mxu0  ;;  %v4476_v37 = vpop.f32.mrf.mxu1  ;;  %v3168_v13 = vmul.f32 0.01, %v2882_v11  ;;  %vm3104_vm13 = vcmp.ge.f32.partialorder %v2882_v11, 0.0  ;;  %v3301_v56 = vsel %vm3285_vm5, %v6482_v43, 0.0 }
 0x25a   :  { %vm3102_vm12 = vcmp.ge.f32.partialorder %v2874_v63, 0.0  ;;  %v3166_v59 = vmul.f32 0.01, %v2874_v63  ;;  %v6485_v40 = vadd.f32 %v2701_v17, %v6185_v36  ;;  %v3300_v34 = vadd.f32 %v3299_v51, %v3298_v21 }
 0x25b   :  { %v2703_v18 = vpop.f32.mrf.mxu0  ;;  %v2886_v3 = vpop.f32.mrf.mxu1  ;;  %v2895_v33 = vadd.f32 %v4476_v37, %v6294_v28  ;;  %v6497_v51 = vsel %vm3104_vm13, %v2882_v11, %v3168_v13 }
 0x25c   :  { %v6491_v4 = vsel %vm3102_vm12, %v2874_v63, %v3166_v59  ;;  %v3302_v22 = vadd.f32 %v3301_v56, %v3300_v34  ;;  %v2887_v36 = vadd.f32 %v2886_v3, %v6272_v49  ;;  %v3305_v34 = vsel %vm3285_vm5, %v6487_v6, 0.0 }
 0x25d   :  { %v3303_v0 = vsel %vm3285_vm5, %v6491_v4, 0.0  ;;  %v2704_v35 = vpop.f32.mrf.mxu0  ;;  %v4477_v42 = vpop.f32.mrf.mxu1  ;;  %v3171_v37 = vmul.f32 0.01, %v2895_v33  ;;  %vm3107_vm15 = vcmp.ge.f32.partialorder %v2895_v33, 0.0 }
 0x25e   :  { %v6500_v47 = vadd.f32 %v2704_v35, %v6199_v52  ;;  %v3304_v60 = vadd.f32 %v3303_v0, %v3302_v22  ;;  %vm3105_vm14 = vcmp.ge.f32.partialorder %v2887_v36, 0.0  ;;  %v3169_v21 = vmul.f32 0.01, %v2887_v36 }
 0x25f   :  { %v2898_v63 = vadd.f32 %v4477_v42, %v6301_v5  ;;  %v2706_v17 = vpop.f32.mrf.mxu0  ;;  %v2889_v59 = vpop.f32.mrf.mxu1  ;;  %v3307_v52 = vsel %vm3285_vm5, %v6497_v51, 0.0 }
 0x260   :  { %v2890_v28 = vadd.f32 %v2889_v59, %v6286_v25  ;;  %v3306_v49 = vadd.f32 %v3305_v34, %v3304_v60  ;;  %v6506_v18 = vsel %vm3105_vm14, %v2887_v36, %v3169_v21  ;;  %v6518_v60 = vsel %vm3107_vm15, %v2895_v33, %v3171_v37 }
 0x261   :  { %v2709_v11 = vpop.f32.mrf.mxu0  ;;  %v4480_v13 = vpop.f32.mrf.mxu1  ;;  %v3172_v56 = vmul.f32 0.01, %v2898_v63  ;;  %v3309_v25 = vsel %vm3285_vm5, %v6506_v18, 0.0  ;;  %vm3108_vm1 = vcmp.ge.f32.partialorder %v2898_v63, 0.0 }
 0x262   :  { %vm3106_vm0 = vcmp.ge.f32.partialorder %v2890_v28, 0.0  ;;  %v3170_v3 = vmul.f32 0.01, %v2890_v28  ;;  %v3308_v5 = vadd.f32 %v3307_v52, %v3306_v49  ;;  %v6511_v22 = vadd.f32 %v2709_v11, %v6213_v45 }
 0x263   :  { %v2711_v0 = vpop.f32.mrf.mxu0  ;;  %v2902_v35 = vpop.f32.mrf.mxu1  ;;  %v2911_v59 = vadd.f32 %v4480_v13, %v6322_v53  ;;  %v6527_v52 = vsel %vm3108_vm1, %v2898_v63, %v3172_v56 }
 0x264   :  { %v6515_v36 = vsel %vm3106_vm0, %v2890_v28, %v3170_v3  ;;  %v2903_v42 = vadd.f32 %v2902_v35, %v6308_v8  ;;  %v3310_v21 = vadd.f32 %v3309_v25, %v3308_v5  ;;  %v3313_v3 = vsel %vm3285_vm5, %v6518_v60, 0.0 }
 0x265   :  { %v3311_v17 = vsel %vm3285_vm5, %v6515_v36, 0.0  ;;  %v2712_v45 = vpop.f32.mrf.mxu0  ;;  %v4481_v34 = vpop.f32.mrf.mxu1  ;;  %v3175_v0 = vmul.f32 0.01, %v2911_v59  ;;  %vm3111_vm3 = vcmp.ge.f32.partialorder %v2911_v59, 0.0 }
 0x266   :  { %vm3109_vm2 = vcmp.ge.f32.partialorder %v2903_v42, 0.0  ;;  %v3173_v49 = vmul.f32 0.01, %v2903_v42  ;;  %v6524_v11 = vadd.f32 %v2712_v45, %v6227_v24  ;;  %v2914_v28 = vadd.f32 %v4481_v34, %v6334_v12 }
 0x267   :  { %v3312_v8 = vadd.f32 %v3311_v17, %v3310_v21  ;;  %v2714_v33 = vpop.f32.mrf.mxu0  ;;  %v2905_v37 = vpop.f32.mrf.mxu1  ;;  %v3315_v24 = vsel %vm3285_vm5, %v6527_v52, 0.0 }
 0x268   :  { %v6531_v53 = vsel %vm3109_vm2, %v2903_v42, %v3173_v49  ;;  %v2906_v13 = vadd.f32 %v2905_v37, %v6315_v39  ;;  %v3176_v12 = vmul.f32 0.01, %v2914_v28  ;;  %vm3112_vm4 = vcmp.ge.f32.partialorder %v2914_v28, 0.0 }
 0x269   :  { %v3314_v5 = vadd.f32 %v3313_v3, %v3312_v8  ;;  %v2717_v35 = vpop.f32.mrf.mxu0  ;;  %v4484_v25 = vpop.f32.mrf.mxu1  ;;  %v3317_v42 = vsel %vm3285_vm5, %v6531_v53, 0.0  ;;  %v6543_v49 = vsel %vm3111_vm3, %v2911_v59, %v3175_v0 }
 0x26a   :  { %v6537_v63 = vadd.f32 %v2717_v35, %v6241_v38  ;;  %vm3110_vm6 = vcmp.ge.f32.partialorder %v2906_v13, 0.0  ;;  %v3174_v21 = vmul.f32 0.01, %v2906_v13  ;;  %v2927_v39 = vadd.f32 %v4484_v25, %v6355_v29 }
 0x26b   :  { %v3316_v56 = vadd.f32 %v3315_v24, %v3314_v5  ;;  %v2719_v17 = vpop.f32.mrf.mxu0  ;;  %v2918_v45 = vpop.f32.mrf.mxu1  ;;  %v6547_v3 = vsel %vm3112_vm4, %v2914_v28, %v3176_v12  ;;  %v3321_v0 = vsel %vm3285_vm5, %v6543_v49, 0.0 }
 0x26c   :  { %v2919_v34 = vadd.f32 %v2918_v45, %v6341_v16  ;;  %v6545_v33 = vsel %vm3110_vm6, %v2906_v13, %v3174_v21  ;;  %v3179_v13 = vmul.f32 0.01, %v2927_v39  ;;  %v3323_v25 = vsel %vm3285_vm5, %v6547_v3, 0.0 }
 0x26d   :  { %v3318_v8 = vadd.f32 %v3317_v42, %v3316_v56  ;;  %v2720_v38 = vpop.f32.mrf.mxu0  ;;  %v4485_v37 = vpop.f32.mrf.mxu1  ;;  %v3319_v5 = vsel %vm3285_vm5, %v6545_v33, 0.0  ;;  %vm3115_vm8 = vcmp.ge.f32.partialorder %v2927_v39, 0.0 }
 0x26e   :  { %vm3113_vm7 = vcmp.ge.f32.partialorder %v2919_v34, 0.0  ;;  %v3177_v35 = vmul.f32 0.01, %v2919_v34  ;;  %v6552_v17 = vadd.f32 %v2720_v38, %v6255_v2  ;;  %v2930_v16 = vadd.f32 %v4485_v37, %v6362_v61 }
 0x26f   :  { %v3320_v24 = vadd.f32 %v3319_v5, %v3318_v8  ;;  %v2722_v29 = vpop.f32.mrf.mxu0  ;;  %v2921_v59 = vpop.f32.mrf.mxu1 }
 0x270   :  { %v2922_v28 = vadd.f32 %v2921_v59, %v6348_v9  ;;  %v6560_v56 = vsel %vm3113_vm7, %v2919_v34, %v3177_v35  ;;  %v3180_v45 = vmul.f32 0.01, %v2930_v16  ;;  %vm3116_vm10 = vcmp.ge.f32.partialorder %v2930_v16, 0.0 }
 0x271   :  { %v3322_v12 = vadd.f32 %v3321_v0, %v3320_v24  ;;  %v2725_v21 = vpop.f32.mrf.mxu0  ;;  %v4488_v2 = vpop.f32.mrf.mxu1  ;;  %v6565_v9 = vsel %vm3115_vm8, %v2927_v39, %v3179_v13  ;;  %v3325_v5 = vsel %vm3285_vm5, %v6560_v56, 0.0 }
 0x272   :  { %vm3114_vm9 = vcmp.ge.f32.partialorder %v2922_v28, 0.0  ;;  %v3178_v61 = vmul.f32 0.01, %v2922_v28  ;;  %v6563_v42 = vadd.f32 %v2725_v21, %v6269_v23  ;;  %v2943_v29 = vadd.f32 %v4488_v2, %v6383_v58 }
 0x273   :  { %v3324_v8 = vadd.f32 %v3323_v25, %v3322_v12  ;;  %v2727_v38 = vpop.f32.mrf.mxu0  ;;  %v2934_v37 = vpop.f32.mrf.mxu1  ;;  %v6575_v25 = vsel %vm3116_vm10, %v2930_v16, %v3180_v45  ;;  %v8436_v12 = vld [vmem:[#allocation19_spill] sm:$0xff] }
 0x274   :  { %v6569_v24 = vsel %vm3114_vm9, %v2922_v28, %v3178_v61  ;;  %v2935_v23 = vadd.f32 %v2934_v37, %v6369_v48  ;;  %v3329_v38 = vsel %vm3285_vm5, %v6565_v9, 0.0  ;;  %v3183_v2 = vmul.f32 0.01, %v2943_v29 }
 0x275   :  { %v3326_v34 = vadd.f32 %v3325_v5, %v3324_v8  ;;  %v3327_v35 = vsel %vm3285_vm5, %v6569_v24, 0.0  ;;  %v2728_v59 = vpop.f32.mrf.mxu0  ;;  %v4489_v0 = vpop.f32.mrf.mxu1  ;;  %v3331_v5 = vsel %vm3285_vm5, %v6575_v25, 0.0  ;;  %vm3119_vm12 = vcmp.ge.f32.partialorder %v2943_v29, 0.0 }
 0x276   :  { %v6578_v39 = vadd.f32 %v2728_v59, %v8436_v12  ;;  %vm3117_vm11 = vcmp.ge.f32.partialorder %v2935_v23, 0.0  ;;  %v3181_v21 = vmul.f32 0.01, %v2935_v23  ;;  %v2946_v28 = vadd.f32 %v4489_v0, %v6390_v15 }
 0x277   :  { %v3328_v13 = vadd.f32 %v3327_v35, %v3326_v34  ;;  %v2730_v61 = vpop.f32.mrf.mxu0  ;;  %v2937_v8 = vpop.f32.mrf.mxu1 }
 0x278   :  { %v2938_v58 = vadd.f32 %v2937_v8, %v6376_v54  ;;  %v6584_v37 = vsel %vm3117_vm11, %v2935_v23, %v3181_v21  ;;  %v3184_v35 = vmul.f32 0.01, %v2946_v28  ;;  %vm3120_vm14 = vcmp.ge.f32.partialorder %v2946_v28, 0.0 }
 0x279   :  { %v3330_v48 = vadd.f32 %v3329_v38, %v3328_v13  ;;  %v2733_v16 = vpop.f32.mrf.mxu0  ;;  %v4492_v45 = vpop.f32.mrf.mxu1  ;;  %v3333_v54 = vsel %vm3285_vm5, %v6584_v37, 0.0  ;;  %v6596_v21 = vsel %vm3119_vm12, %v2943_v29, %v3183_v2 }
 0x27a   :  { %vm3118_vm13 = vcmp.ge.f32.partialorder %v2938_v58, 0.0  ;;  %v3182_v34 = vmul.f32 0.01, %v2938_v58  ;;  %v6589_v59 = vadd.f32 %v2733_v16, %v6291_v50  ;;  %v2959_v38 = vadd.f32 %v4492_v45, %v6411_v41 }
 0x27b   :  { %v3332_v15 = vadd.f32 %v3331_v5, %v3330_v48  ;;  %v2735_v0 = vpop.f32.mrf.mxu0  ;;  %v2950_v12 = vpop.f32.mrf.mxu1 }
 0x27c   :  { %v6593_v23 = vsel %vm3118_vm13, %v2938_v58, %v3182_v34  ;;  %v2951_v13 = vadd.f32 %v2950_v12, %v6397_v46  ;;  %v6604_v0 = vsel %vm3120_vm14, %v2946_v28, %v3184_v35  ;;  %v3337_v34 = vsel %vm3285_vm5, %v6596_v21, 0.0 }
 0x27d   :  { %v3334_v61 = vadd.f32 %v3333_v54, %v3332_v15  ;;  %v3335_v8 = vsel %vm3285_vm5, %v6593_v23, 0.0  ;;  %v2736_v50 = vpop.f32.mrf.mxu0  ;;  %v4493_v48 = vpop.f32.mrf.mxu1  ;;  %v3187_v12 = vmul.f32 0.01, %v2959_v38  ;;  %v3339_v28 = vsel %vm3285_vm5, %v6604_v0, 0.0 }
 0x27e   :  { %vm3121_vm15 = vcmp.ge.f32.partialorder %v2951_v13, 0.0  ;;  %v3185_v16 = vmul.f32 0.01, %v2951_v13  ;;  %v6602_v5 = vadd.f32 %v2736_v50, %v6298_v57  ;;  %v2962_v46 = vadd.f32 %v4493_v48, %v6418_v14 }
 0x27f   :  { %v3336_v58 = vadd.f32 %v3335_v8, %v3334_v61  ;;  %v2738_v29 = vpop.f32.mrf.mxu0  ;;  %v2953_v2 = vpop.f32.mrf.mxu1  ;;  %vm3123_vm0 = vcmp.ge.f32.partialorder %v2959_v38, 0.0 }
 0x280   :  { %v6609_v41 = vsel %vm3121_vm15, %v2951_v13, %v3185_v16  ;;  %v2954_v45 = vadd.f32 %v2953_v2, %v6404_v55  ;;  %v3188_v14 = vmul.f32 0.01, %v2962_v46  ;;  %vm3124_vm2 = vcmp.ge.f32.partialorder %v2962_v46, 0.0 }
 0x281   :  { %v3338_v15 = vadd.f32 %v3337_v34, %v3336_v58  ;;  %8437 = vst [vmem:[#allocation16_spill] sm:$0xff] %v6609_v41  ;;  %v6612_v54 = vpop.f32.mrf.mxu0  ;;  %v4496_v57 = vpop.f32.mrf.mxu1  ;;  %v3341_v48 = vsel %vm3285_vm5, %v6609_v41, 0.0  ;;  %v6620_v16 = vsel %vm3123_vm0, %v2959_v38, %v3187_v12 }
 0x282   :  { %vm3122_vm1 = vcmp.ge.f32.partialorder %v2954_v45, 0.0  ;;  %v3186_v61 = vmul.f32 0.01, %v2954_v45  ;;  %v2975_v13 = vadd.f32 %v4496_v57, %v6433_v62  ;;  %8438 = vst [vmem:[#allocation10_spill] sm:$0xff] %v6620_v16  ;;  %v3345_v38 = vsel %vm3285_vm5, %v6620_v16, 0.0 }
 0x283   :  { %v3340_v35 = vadd.f32 %v3339_v28, %v3338_v15  ;;  %v2743_v8 = vpop.f32.mrf.mxu0  ;;  %v2966_v50 = vpop.f32.mrf.mxu1 }
 0x284   :  { %v2967_v55 = vadd.f32 %v2966_v50, %v6421_v32  ;;  %v6622_v29 = vsel %vm3122_vm1, %v2954_v45, %v3186_v61  ;;  %v6628_v8 = vsel %vm3124_vm2, %v2962_v46, %v3188_v14  ;;  %v3191_v12 = vmul.f32 0.01, %v2975_v13 }
 0x285   :  { %v3342_v58 = vadd.f32 %v3341_v48, %v3340_v35  ;;  %v6624_v2 = vpop.f32.mrf.mxu0  ;;  %v4497_v34 = vpop.f32.mrf.mxu1  ;;  %v3343_v15 = vsel %vm3285_vm5, %v6622_v29, 0.0  ;;  %8439 = vst [vmem:[#allocation17_spill] sm:$0xff] %v6628_v8  ;;  %vm3127_vm4 = vcmp.ge.f32.partialorder %v2975_v13, 0.0  ;;  %v3347_v46 = vsel %vm3285_vm5, %v6628_v8, 0.0 }
 0x286   :  { %vm3125_vm3 = vcmp.ge.f32.partialorder %v2967_v55, 0.0  ;;  %v3189_v28 = vmul.f32 0.01, %v2967_v55  ;;  %v2978_v62 = vadd.f32 %v4497_v34, %v6448_v7 }
 0x287   :  { %v3344_v41 = vadd.f32 %v3343_v15, %v3342_v58  ;;  %v2746_v57 = vpop.f32.mrf.mxu0  ;;  %v2969_v32 = vpop.f32.mrf.mxu1 }
 0x288   :  { %v2970_v45 = vadd.f32 %v2969_v32, %v6426_v10  ;;  %v6634_v61 = vsel %vm3125_vm3, %v2967_v55, %v3189_v28  ;;  %v3192_v14 = vmul.f32 0.01, %v2978_v62  ;;  %vm3128_vm7 = vcmp.ge.f32.partialorder %v2978_v62, 0.0 }
 0x289   :  { %v3346_v35 = vadd.f32 %v3345_v38, %v3344_v41  ;;  %8440 = vst [vmem:[#allocation11_spill] sm:$0xff] %v6634_v61  ;;  %v6636_v50 = vpop.f32.mrf.mxu0  ;;  %v4500_v48 = vpop.f32.mrf.mxu1  ;;  %v6640_v57 = vsel %vm3127_vm4, %v2975_v13, %v3191_v12  ;;  %v3349_v10 = vsel %vm3285_vm5, %v6634_v61, 0.0 }
 0x28a   :  { %vm3126_vm6 = vcmp.ge.f32.partialorder %v2970_v45, 0.0  ;;  %v3190_v7 = vmul.f32 0.01, %v2970_v45  ;;  %8441 = vst [vmem:[#allocation18_spill] sm:$0xff] %v6640_v57  ;;  %v2991_v32 = vadd.f32 %v4500_v48, %v6485_v40 }
 0x28b   :  { %v3348_v58 = vadd.f32 %v3347_v46, %v3346_v35  ;;  %v2751_v34 = vpop.f32.mrf.mxu0  ;;  %v2982_v15 = vpop.f32.mrf.mxu1  ;;  %v6652_v46 = vsel %vm3128_vm7, %v2978_v62, %v3192_v14 }
 0x28c   :  { %v6644_v41 = vsel %vm3126_vm6, %v2970_v45, %v3190_v7  ;;  %v2983_v38 = vadd.f32 %v2982_v15, %v6461_v1  ;;  %8443 = vst [vmem:[#allocation29_spill] sm:$0xff] %v6652_v46  ;;  %v3195_v48 = vmul.f32 0.01, %v2991_v32  ;;  %v3355_v14 = vsel %vm3285_vm5, %v6652_v46, 0.0 }
 0x28d   :  { %8442 = vst [vmem:[#allocation19_spill] sm:$0xff] %v6644_v41  ;;  %v3350_v55 = vadd.f32 %v3349_v10, %v3348_v58  ;;  %v3351_v28 = vsel %vm3285_vm5, %v6644_v41, 0.0  ;;  %v6650_v8 = vpop.f32.mrf.mxu0  ;;  %v4501_v35 = vpop.f32.mrf.mxu1  ;;  %v3353_v58 = vsel %vm3285_vm5, %v6640_v57, 0.0  ;;  %vm3131_vm9 = vcmp.ge.f32.partialorder %v2991_v32, 0.0 }
 0x28e   :  { %vm3129_vm8 = vcmp.ge.f32.partialorder %v2983_v38, 0.0  ;;  %v3193_v12 = vmul.f32 0.01, %v2983_v38  ;;  %v2994_v34 = vadd.f32 %v4501_v35, %v6500_v47 }
 0x28f   :  { %v3352_v13 = vadd.f32 %v3351_v28, %v3350_v55  ;;  %v2754_v45 = vpop.f32.mrf.mxu0  ;;  %v2985_v7 = vpop.f32.mrf.mxu1 }
 0x290   :  { %v2986_v10 = vadd.f32 %v2985_v7, %v6474_v30  ;;  %v6658_v1 = vsel %vm3129_vm8, %v2983_v38, %v3193_v12  ;;  %v3196_v28 = vmul.f32 0.01, %v2994_v34  ;;  %vm3132_vm11 = vcmp.ge.f32.partialorder %v2994_v34, 0.0 }
 0x291   :  { %v3354_v40 = vadd.f32 %v3353_v58, %v3352_v13  ;;  %8444 = vst [vmem:[#allocation30_spill] sm:$0xff] %v6658_v1  ;;  %v6660_v15 = vpop.f32.mrf.mxu0  ;;  %v4504_v62 = vpop.f32.mrf.mxu1  ;;  %v3357_v30 = vsel %vm3285_vm5, %v6658_v1, 0.0  ;;  %v6669_v12 = vsel %vm3131_vm9, %v2991_v32, %v3195_v48 }
 0x292   :  { %vm3130_vm10 = vcmp.ge.f32.partialorder %v2986_v10, 0.0  ;;  %v3194_v47 = vmul.f32 0.01, %v2986_v10  ;;  %8446 = vst [vmem:[#allocation32_spill] sm:$0xff] %v6669_v12  ;;  %v3007_v46 = vadd.f32 %v4504_v62, %v6537_v63  ;;  %v6676_v57 = vsel %vm3132_vm11, %v2994_v34, %v3196_v28 }
 0x293   :  { %v3356_v55 = vadd.f32 %v3355_v14, %v3354_v40  ;;  %v2759_v35 = vpop.f32.mrf.mxu0  ;;  %v2998_v45 = vpop.f32.mrf.mxu1  ;;  %8447 = vst [vmem:[#allocation33_spill] sm:$0xff] %v6676_v57  ;;  %v3361_v32 = vsel %vm3285_vm5, %v6669_v12, 0.0  ;;  %v3363_v34 = vsel %vm3285_vm5, %v6676_v57, 0.0 }
 0x294   :  { %v6666_v13 = vsel %vm3130_vm10, %v2986_v10, %v3194_v47  ;;  %v2999_v38 = vadd.f32 %v2998_v45, %v6511_v22  ;;  %vm3135_vm13 = vcmp.ge.f32.partialorder %v3007_v46, 0.0 }
 0x295   :  { %8445 = vst [vmem:[#allocation31_spill] sm:$0xff] %v6666_v13  ;;  %v3358_v7 = vadd.f32 %v3357_v30, %v3356_v55  ;;  %v3359_v58 = vsel %vm3285_vm5, %v6666_v13, 0.0  ;;  %v6674_v40 = vpop.f32.mrf.mxu0  ;;  %v4505_v14 = vpop.f32.mrf.mxu1  ;;  %v3199_v55 = vmul.f32 0.01, %v3007_v46 }
 0x296   :  { %vm3133_vm12 = vcmp.ge.f32.partialorder %v2999_v38, 0.0  ;;  %v3197_v35 = vmul.f32 0.01, %v2999_v38  ;;  %v3010_v10 = vadd.f32 %v4505_v14, %v6552_v17 }
 0x297   :  { %v3360_v1 = vadd.f32 %v3359_v58, %v3358_v7  ;;  %v2762_v47 = vpop.f32.mrf.mxu0  ;;  %v3001_v22 = vpop.f32.mrf.mxu1 }
 0x298   :  { %v6681_v45 = vsel %vm3133_vm12, %v2999_v38, %v3197_v35  ;;  %v3002_v63 = vadd.f32 %v3001_v22, %v6524_v11  ;;  %v3200_v17 = vmul.f32 0.01, %v3010_v10  ;;  %vm3136_vm15 = vcmp.ge.f32.partialorder %v3010_v10, 0.0 }
 0x299   :  { %v3362_v48 = vadd.f32 %v3361_v32, %v3360_v1  ;;  %8448 = vst [vmem:[#allocation34_spill] sm:$0xff] %v6681_v45  ;;  %v6684_v62 = vpop.f32.mrf.mxu0  ;;  %v4508_v30 = vpop.f32.mrf.mxu1  ;;  %v3365_v1 = vsel %vm3285_vm5, %v6681_v45, 0.0  ;;  %v6692_v35 = vsel %vm3135_vm13, %v3007_v46, %v3199_v55 }
 0x29a   :  { %vm3134_vm14 = vcmp.ge.f32.partialorder %v3002_v63, 0.0  ;;  %v3198_v7 = vmul.f32 0.01, %v3002_v63  ;;  %v3023_v38 = vadd.f32 %v4508_v30, %v6589_v59  ;;  %8449 = vst [vmem:[#allocation35_spill] sm:$0xff] %v6692_v35  ;;  %v6698_v57 = vsel %vm3136_vm15, %v3010_v10, %v3200_v17 }
 0x29b   :  { %v3364_v28 = vadd.f32 %v3363_v34, %v3362_v48  ;;  %v2767_v58 = vpop.f32.mrf.mxu0  ;;  %v3014_v14 = vpop.f32.mrf.mxu1  ;;  %8451 = vst [vmem:[#allocation37_spill] sm:$0xff] %v6698_v57  ;;  %v3371_v10 = vsel %vm3285_vm5, %v6698_v57, 0.0 }
 0x29c   :  { %v3015_v11 = vadd.f32 %v3014_v14, %v6563_v42  ;;  %v6694_v22 = vsel %vm3134_vm14, %v3002_v63, %v3198_v7  ;;  %v3369_v42 = vsel %vm3285_vm5, %v6692_v35, 0.0  ;;  %v3203_v46 = vmul.f32 0.01, %v3023_v38 }
 0x29d   :  { %v3366_v47 = vadd.f32 %v3365_v1, %v3364_v28  ;;  %8450 = vst [vmem:[#allocation36_spill] sm:$0xff] %v6694_v22  ;;  %v2768_v32 = vpop.f32.mrf.mxu0  ;;  %v4509_v48 = vpop.f32.mrf.mxu1  ;;  %v3367_v34 = vsel %vm3285_vm5, %v6694_v22, 0.0  ;;  %vm3139_vm1 = vcmp.ge.f32.partialorder %v3023_v38, 0.0  ;;  %v8453_v1 = vld [vmem:[#allocation20_spill] sm:$0xff] }
 0x29e   :  { %vm3137_vm0 = vcmp.ge.f32.partialorder %v3015_v11, 0.0  ;;  %v3201_v58 = vmul.f32 0.01, %v3015_v11  ;;  %v3026_v12 = vadd.f32 %v4509_v48, %v6602_v5  ;;  %v8454_v48 = vld [vmem:[#allocation22_spill] sm:$0xff] }
 0x29f   :  { %v3368_v45 = vadd.f32 %v3367_v34, %v3366_v47  ;;  %v2770_v59 = vpop.f32.mrf.mxu0  ;;  %v3017_v30 = vpop.f32.mrf.mxu1  ;;  %v2742_v47 = vadd.f32 %v6612_v54, %v8453_v1  ;;  %v2750_v34 = vadd.f32 %v6636_v50, %v8454_v48  ;;  %v8458_v48 = vld [vmem:[#allocation21_spill] sm:$0xff] }
 0x2a0   :  { %v3018_v55 = vadd.f32 %v3017_v30, %v6578_v39  ;;  %v6704_v28 = vsel %vm3137_vm0, %v3015_v11, %v3201_v58  ;;  %v3204_v17 = vmul.f32 0.01, %v3026_v12  ;;  %vm3140_vm3 = vcmp.ge.f32.partialorder %v3026_v12, 0.0  ;;  %v8455_v58 = vld [vmem:[#allocation23_spill] sm:$0xff] }
 0x2a1   :  { %v3370_v63 = vadd.f32 %v3369_v42, %v3368_v45  ;;  %8452 = vst [vmem:[#allocation38_spill] sm:$0xff] %v6704_v28  ;;  %v6706_v7 = vpop.f32.mrf.mxu0  ;;  %v4512_v14 = vpop.f32.mrf.mxu1  ;;  %v2753_v59 = vadd.f32 %v6650_v8, %v8455_v58  ;;  %v6716_v30 = vsel %vm3139_vm1, %v3023_v38, %v3203_v46  ;;  %v3373_v42 = vsel %vm3285_vm5, %v6704_v28, 0.0 }
 0x2a2   :  { %vm3138_vm2 = vcmp.ge.f32.partialorder %v3018_v55, 0.0  ;;  %v3202_v5 = vmul.f32 0.01, %v3018_v55  ;;  %8456 = vst [vmem:[#allocation20_spill] sm:$0xff] %v6716_v30  ;;  %v3039_v1 = vadd.f32 %v4512_v14, %v2750_v34  ;;  %v6728_v8 = vsel %vm3140_vm3, %v3026_v12, %v3204_v17  ;;  %v8460_v14 = vld [vmem:[#allocation24_spill] sm:$0xff] }
 0x2a3   :  { %v3372_v39 = vadd.f32 %v3371_v10, %v3370_v63  ;;  %v2775_v45 = vpop.f32.mrf.mxu0  ;;  %v3030_v11 = vpop.f32.mrf.mxu1  ;;  %8459 = vst [vmem:[#allocation23_spill] sm:$0xff] %v6728_v8 }
 0x2a4   :  { %v6720_v57 = vsel %vm3138_vm2, %v3018_v55, %v3202_v5  ;;  %v3031_v50 = vadd.f32 %v3030_v11, %v2742_v47  ;;  %v2745_v45 = vadd.f32 %v6624_v2, %v8458_v48  ;;  %v2758_v47 = vadd.f32 %v6660_v15, %v8460_v14 }
 0x2a5   :  { %8457 = vst [vmem:[#allocation22_spill] sm:$0xff] %v6720_v57  ;;  %v3374_v35 = vadd.f32 %v3373_v42, %v3372_v39  ;;  %v3375_v54 = vsel %vm3285_vm5, %v6720_v57, 0.0  ;;  %v6724_v63 = vpop.f32.mrf.mxu0  ;;  %v4513_v10 = vpop.f32.mrf.mxu1  ;;  %v3377_v39 = vsel %vm3285_vm5, %v6716_v30, 0.0  ;;  %v3207_v11 = vmul.f32 0.01, %v3039_v1 }
 0x2a6   :  { %vm3141_vm4 = vcmp.ge.f32.partialorder %v3031_v50, 0.0  ;;  %v3205_v46 = vmul.f32 0.01, %v3031_v50  ;;  %v3042_v58 = vadd.f32 %v4513_v10, %v2753_v59  ;;  %vm3143_vm6 = vcmp.ge.f32.partialorder %v3039_v1, 0.0  ;;  %v8461_v59 = vld [vmem:[#allocation26_spill] sm:$0xff]  ;;  %v8462_v10 = vld [vmem:[#allocation27_spill] sm:$0xff] }
 0x2a7   :  { %v3376_v38 = vadd.f32 %v3375_v54, %v3374_v35  ;;  %v2778_v55 = vpop.f32.mrf.mxu0  ;;  %v3033_v5 = vpop.f32.mrf.mxu1  ;;  %v3379_v35 = vsel %vm3285_vm5, %v6728_v8, 0.0  ;;  %v2766_v54 = vadd.f32 %v6684_v62, %v8461_v59  ;;  %v2769_v48 = vadd.f32 %v2768_v32, %v8462_v10  ;;  %v8463_v10 = vld [vmem:[#allocation25_spill] sm:$0xff] }
 0x2a8   :  { %v3034_v42 = vadd.f32 %v3033_v5, %v2745_v45  ;;  %v6734_v57 = vsel %vm3141_vm4, %v3031_v50, %v3205_v46  ;;  %v3208_v55 = vmul.f32 0.01, %v3042_v58  ;;  %vm3144_vm8 = vcmp.ge.f32.partialorder %v3042_v58, 0.0 }
 0x2a9   :  { %v3378_v34 = vadd.f32 %v3377_v39, %v3376_v38  ;;  %v2781_v2 = vpop.f32.mrf.mxu0  ;;  %v4516_v12 = vpop.f32.mrf.mxu1  ;;  %v3381_v50 = vsel %vm3285_vm5, %v6734_v57, 0.0  ;;  %v6745_v39 = vsel %vm3143_vm6, %v3039_v1, %v3207_v11  ;;  %v8464_v1 = vld [vmem:[#allocation28_spill] sm:$0xff] }
 0x2aa   :  { %vm3142_vm7 = vcmp.ge.f32.partialorder %v3034_v42, 0.0  ;;  %v3206_v17 = vmul.f32 0.01, %v3034_v42  ;;  %v3055_v62 = vadd.f32 %v4516_v12, %v2766_v54  ;;  %v6751_v30 = vsel %vm3144_vm8, %v3042_v58, %v3208_v55  ;;  %v8465_v58 = vld [vmem:[#allocation12_spill] sm:$0xff] }
 0x2ab   :  { %v3380_v45 = vadd.f32 %v3379_v35, %v3378_v34  ;;  %v2783_v15 = vpop.f32.mrf.mxu0  ;;  %v3046_v38 = vpop.f32.mrf.mxu1  ;;  %v2774_v11 = vadd.f32 %v6706_v7, %v8464_v1 }
 0x2ac   :  { %v6743_v46 = vsel %vm3142_vm7, %v3034_v42, %v3206_v17  ;;  %v3047_v5 = vadd.f32 %v3046_v38, %v2758_v47  ;;  %v2761_v15 = vadd.f32 %v6674_v40, %v8463_v10  ;;  %v3211_v54 = vmul.f32 0.01, %v3055_v62 }
 0x2ad   :  { %v3382_v14 = vadd.f32 %v3381_v50, %v3380_v45  ;;  %v3383_v8 = vsel %vm3285_vm5, %v6743_v46, 0.0  ;;  %v2784_v59 = vpop.f32.mrf.mxu0  ;;  %v4517_v32 = vpop.f32.mrf.mxu1  ;;  %v3385_v45 = vsel %vm3285_vm5, %v6745_v39, 0.0  ;;  %v3387_v40 = vsel %vm3285_vm5, %v6751_v30, 0.0 }
 0x2ae   :  { %vm3145_vm9 = vcmp.ge.f32.partialorder %v3047_v5, 0.0  ;;  %v3209_v34 = vmul.f32 0.01, %v3047_v5  ;;  %v3058_v35 = vadd.f32 %v4517_v32, %v2769_v48  ;;  %vm3147_vm10 = vcmp.ge.f32.partialorder %v3055_v62, 0.0 }
 0x2af   :  { %v3384_v42 = vadd.f32 %v3383_v8, %v3382_v14  ;;  %v2786_v17 = vpop.f32.mrf.mxu0  ;;  %v3049_v47 = vpop.f32.mrf.mxu1  ;;  %v2782_v8 = vadd.f32 %v2781_v2, %v8465_v58 }
 0x2b0   :  { %v6757_v38 = vsel %vm3145_vm9, %v3047_v5, %v3209_v34  ;;  %v3050_v50 = vadd.f32 %v3049_v47, %v2761_v15  ;;  %v3212_v55 = vmul.f32 0.01, %v3058_v35  ;;  %vm3148_vm11 = vcmp.ge.f32.partialorder %v3058_v35, 0.0  ;;  %v8467_v15 = vld [vmem:[#allocation6_spill] sm:$0xff] }
 0x2b1   :  { %v3386_v12 = vadd.f32 %v3385_v45, %v3384_v42  ;;  %v2789_v48 = vpop.f32.mrf.mxu0  ;;  %v4520_v32 = vpop.f32.mrf.mxu1  ;;  %v8466_v42 = vld [vmem:[#allocation5_spill] sm:$0xff]  ;;  %v3389_v34 = vsel %vm3285_vm5, %v6757_v38, 0.0  ;;  %v2785_v47 = vadd.f32 %v2784_v59, %v8467_v15  ;;  %v6767_v45 = vsel %vm3147_vm10, %v3055_v62, %v3211_v54 }
 0x2b2   :  { %vm3146_vm12 = vcmp.ge.f32.partialorder %v3050_v50, 0.0  ;;  %v3210_v7 = vmul.f32 0.01, %v3050_v50  ;;  %v2777_v5 = vadd.f32 %v6724_v63, %v8466_v42  ;;  %v6771_v22 = vsel %vm3148_vm11, %v3058_v35, %v3212_v55 }
 0x2b3   :  { %v3388_v14 = vadd.f32 %v3387_v40, %v3386_v12  ;;  %v2791_v10 = vpop.f32.mrf.mxu0  ;;  %v3062_v17 = vpop.f32.mrf.mxu1  ;;  %v3071_v12 = vadd.f32 %v4520_v32, %v2782_v8  ;;  %v3393_v62 = vsel %vm3285_vm5, %v6767_v45, 0.0  ;;  %v3395_v32 = vsel %vm3285_vm5, %v6771_v22, 0.0 }
 0x2b4   :  { %v3063_v1 = vadd.f32 %v3062_v17, %v2774_v11  ;;  %v6769_v58 = vsel %vm3146_vm12, %v3050_v50, %v3210_v7  ;;  %v8468_v11 = vld [vmem:[#allocation13_spill] sm:$0xff] }
 0x2b5   :  { %v3390_v2 = vadd.f32 %v3389_v34, %v3388_v14  ;;  %v2792_v40 = vpop.f32.mrf.mxu0  ;;  %v4521_v28 = vpop.f32.mrf.mxu1  ;;  %v3391_v10 = vsel %vm3285_vm5, %v6769_v58, 0.0  ;;  %v2790_v54 = vadd.f32 %v2789_v48, %v8468_v11  ;;  %v3215_v8 = vmul.f32 0.01, %v3071_v12  ;;  %v8469_v11 = vld [vmem:[#allocation7_spill] sm:$0xff] }
 0x2b6   :  { %vm3149_vm13 = vcmp.ge.f32.partialorder %v3063_v1, 0.0  ;;  %v3213_v63 = vmul.f32 0.01, %v3063_v1  ;;  %v3074_v13 = vadd.f32 %v4521_v28, %v2785_v47  ;;  %vm3151_vm14 = vcmp.ge.f32.partialorder %v3071_v12, 0.0 }
 0x2b7   :  { %v3392_v42 = vadd.f32 %v3391_v10, %v3390_v2  ;;  %v2794_v41 = vpop.f32.mrf.mxu0  ;;  %v3065_v59 = vpop.f32.mrf.mxu1  ;;  %v3279_v10 = vsel %vm3151_vm14, %v3071_v12, %v3215_v8  ;;  %v2793_v61 = vadd.f32 %v2792_v40, %v8469_v11 }
 0x2b8   :  { %v3066_v50 = vadd.f32 %v3065_v59, %v2777_v5  ;;  %v6780_v55 = vsel %vm3149_vm13, %v3063_v1, %v3213_v63  ;;  %v3216_v34 = vmul.f32 0.01, %v3074_v13  ;;  %vm3152_vm0 = vcmp.ge.f32.partialorder %v3074_v13, 0.0 }
 0x2b9   :  { %v3394_v35 = vadd.f32 %v3393_v62, %v3392_v42  ;;  %v2797_v14 = vpop.f32.mrf.mxu0  ;;  %v4524_v7 = vpop.f32.mrf.mxu1  ;;  %v3397_v48 = vsel %vm3285_vm5, %v6780_v55, 0.0 }
 0x2ba   :  { %vm3150_vm15 = vcmp.ge.f32.partialorder %v3066_v50, 0.0  ;;  %v3214_v28 = vmul.f32 0.01, %v3066_v50  ;;  %v2798_v41 = vadd.f32 %v2797_v14, %v6408_v31 }
 0x2bb   :  { %v3396_v17 = vadd.f32 %v3395_v32, %v3394_v35  ;;  %v2799_v15 = vpop.f32.mrf.mxu0  ;;  %v3078_v47 = vpop.f32.mrf.mxu1  ;;  %v3280_v32 = vsel %vm3152_vm0, %v3074_v13, %v3216_v34 }
 0x2bc   :  { %v3278_v5 = vsel %vm3150_vm15, %v3066_v50, %v3214_v28  ;;  %v3079_v2 = vadd.f32 %v3078_v47, %v2790_v54  ;;  %v3087_v42 = vadd.f32 %v4524_v7, %v2798_v41  ;;  %v3401_v50 = vsel %vm3285_vm5, %v3279_v10, 0.0 }
 0x2bd   :  { %v3398_v1 = vadd.f32 %v3397_v48, %v3396_v17  ;;  %v3399_v63 = vsel %vm3285_vm5, %v3278_v5, 0.0  ;;  %v2800_v59 = vpop.f32.mrf.mxu0  ;;  %v4525_v62 = vpop.f32.mrf.mxu1  ;;  %v3403_v7 = vsel %vm3285_vm5, %v3280_v32, 0.0 }
 0x2be   :  { %vm3153_vm1 = vcmp.ge.f32.partialorder %v3079_v2, 0.0  ;;  %v3217_v31 = vmul.f32 0.01, %v3079_v2  ;;  %v2801_v14 = vadd.f32 %v2800_v59, %v6415_v20  ;;  %v3219_v8 = vmul.f32 0.01, %v3087_v42 }
 0x2bf   :  { %v3400_v35 = vadd.f32 %v3399_v63, %v3398_v1  ;;  %v2802_v15 = vpop.f32.mrf.mxu0  ;;  %v3081_v16 = vpop.f32.mrf.mxu1  ;;  %vm3155_vm2 = vcmp.ge.f32.partialorder %v3087_v42, 0.0 }
 0x2c0   :  { %v3082_v54 = vadd.f32 %v3081_v16, %v2793_v61  ;;  %v3281_v28 = vsel %vm3153_vm1, %v3079_v2, %v3217_v31  ;;  %v3090_v17 = vadd.f32 %v4525_v62, %v2801_v14  ;;  %v3283_v34 = vsel %vm3155_vm2, %v3087_v42, %v3219_v8 }
 0x2c1   :  { %v3402_v12 = vadd.f32 %v3401_v50, %v3400_v35  ;;  %v3405_v13 = vsel %vm3285_vm5, %v3281_v28, 0.0  ;;  %v3409_v2 = vsel %vm3285_vm5, %v3283_v34, 0.0 }
 0x2c2   :  { %vm3154_vm3 = vcmp.ge.f32.partialorder %v3082_v54, 0.0  ;;  %v3218_v40 = vmul.f32 0.01, %v3082_v54  ;;  %v3220_v47 = vmul.f32 0.01, %v3090_v17  ;;  %vm3156_vm4 = vcmp.ge.f32.partialorder %v3090_v17, 0.0 }
 0x2c3   :  { %v3404_v41 = vadd.f32 %v3403_v7, %v3402_v12 }
 0x2c4   :  { %v3282_v20 = vsel %vm3154_vm3, %v3082_v54, %v3218_v40  ;;  %v3284_v16 = vsel %vm3156_vm4, %v3090_v17, %v3220_v47 }
 0x2c5   :  { %v3406_v48 = vadd.f32 %v3405_v13, %v3404_v41  ;;  %v3407_v1 = vsel %vm3285_vm5, %v3282_v20, 0.0  ;;  %v3411_v59 = vsel %vm3285_vm5, %v3284_v16, 0.0  ;;  %v8476_v13 = vld [vmem:[#allocation15_spill] sm:$0xff] }
 0x2c7   :  { %v3408_v61 = vadd.f32 %v3407_v1, %v3406_v48  ;;  %v8477_v1 = vld [vmem:[#allocation9_spill] sm:$0xff] }
 0x2c9   :  { %v3410_v63 = vadd.f32 %v3409_v2, %v3408_v61 }
 0x2cb   :  { %v3412_v62 = vadd.f32 %v3411_v59, %v3410_v63 }
 0x2cd   :  { %v3413_v11 = vrot.slane %v3412_v62, 4 }
 0x2cf   :  { %v3414_v31 = vadd.f32 %v3413_v11, %v3412_v62 }
 0x2d1   :  { %v3415_v35 = vrot.slane %v3414_v31, 2 }
 0x2d3   :  { %v3416_v14 = vadd.f32 %v3415_v35, %v3414_v31 }
 0x2d5   :  { %v3417_v15 = vrot.slane %v3416_v14, 1 }
 0x2d7   :  { %v3418_v50 = vadd.f32 %v3417_v15, %v3416_v14 }
 0x2d9   :  { %v6794_v12 = vmul.f32 0.001953125, %v3418_v50 }
 0x2db   :  { %v6798_v42 = vsub.f32 %v6734_v57, %v6794_v12  ;;  %v6802_v54 = vsub.f32 %v6743_v46, %v6794_v12  ;;  %v6806_v8 = vsub.f32 %v6745_v39, %v6794_v12  ;;  %v6810_v17 = vsub.f32 %v6751_v30, %v6794_v12 }
 0x2dc   :  { %v6814_v7 = vsub.f32 %v6757_v38, %v6794_v12  ;;  %v6818_v57 = vsub.f32 %v6769_v58, %v6794_v12  ;;  %v6822_v46 = vsub.f32 %v6767_v45, %v6794_v12  ;;  %v6826_v39 = vsub.f32 %v6771_v22, %v6794_v12 }
 0x2dd   :  { %v6830_v30 = vsub.f32 %v6780_v55, %v6794_v12  ;;  %v6833_v40 = vsub.f32 %v3278_v5, %v6794_v12  ;;  %v6836_v38 = vsub.f32 %v3279_v10, %v6794_v12  ;;  %v6839_v58 = vsub.f32 %v3280_v32, %v6794_v12  ;;  %v8474_v5 = vld [vmem:[#allocation14_spill] sm:$0xff]  ;;  %v8475_v10 = vld [vmem:[#allocation8_spill] sm:$0xff] }
 0x2de   :  { %v6842_v45 = vsub.f32 %v3281_v28, %v6794_v12  ;;  %v6845_v41 = vsub.f32 %v3282_v20, %v6794_v12  ;;  %v6848_v22 = vsub.f32 %v3283_v34, %v6794_v12  ;;  %v6851_v55 = vsub.f32 %v3284_v16, %v6794_v12 }
 0x2df   :  { %8470 = vst [vmem:[#allocation21_spill] sm:$0xff] %v6836_v38  ;;  %8471 = vst [vmem:[#allocation24_spill] sm:$0xff] %v6839_v58  ;;  %v6855_v47 = vsub.f32 %v8474_v5, %v6794_v12  ;;  %v6859_v32 = vsub.f32 %v8475_v10, %v6794_v12  ;;  %v6863_v28 = vsub.f32 %v6435_v27, %v6794_v12 }
 0x2e0   :  { %8472 = vst [vmem:[#allocation26_spill] sm:$0xff] %v6842_v45  ;;  %8473 = vst [vmem:[#allocation27_spill] sm:$0xff] %v6848_v22  ;;  %v6867_v20 = vsub.f32 %v8476_v13, %v6794_v12  ;;  %v6875_v16 = vsub.f32 %v8477_v1, %v6794_v12  ;;  %v6881_v27 = vsub.f32 %v6469_v26, %v6794_v12 }
 0x2e1   :  { %v3485_v34 = vmul.f32 %v6855_v47, %v6855_v47  ;;  %v3486_v48 = vmul.f32 %v6859_v32, %v6859_v32  ;;  %v3487_v61 = vmul.f32 %v6863_v28, %v6863_v28  ;;  %v6889_v11 = vsub.f32 %v6465_v19, %v6794_v12 }
 0x2e2   :  { %v3488_v2 = vmul.f32 %v6867_v20, %v6867_v20  ;;  %v3489_v31 = vmul.f32 %v6875_v16, %v6875_v16  ;;  %v6896_v26 = vsub.f32 %v6467_v44, %v6794_v12  ;;  %v3490_v15 = vmul.f32 %v6881_v27, %v6881_v27 }
 0x2e3   :  { %v3549_v63 = vsel %vm3285_vm5, %v3485_v34, 0.0  ;;  %v3550_v59 = vsel %vm3285_vm5, %v3486_v48, 0.0  ;;  %v3552_v35 = vsel %vm3285_vm5, %v3487_v61, 0.0  ;;  %v6903_v19 = vsub.f32 %v6482_v43, %v6794_v12 }
 0x2e4   :  { %v3551_v62 = vadd.f32 %v3550_v59, %v3549_v63  ;;  %v3554_v50 = vsel %vm3285_vm5, %v3488_v2, 0.0  ;;  %v3491_v10 = vmul.f32 %v6889_v11, %v6889_v11  ;;  %v3556_v13 = vsel %vm3285_vm5, %v3489_v31, 0.0 }
 0x2e5   :  { %v6910_v44 = vsub.f32 %v6491_v4, %v6794_v12  ;;  %v3492_v48 = vmul.f32 %v6896_v26, %v6896_v26  ;;  %v3558_v1 = vsel %vm3285_vm5, %v3490_v15, 0.0  ;;  %v6917_v43 = vsub.f32 %v6487_v6, %v6794_v12 }
 0x2e6   :  { %v3553_v14 = vadd.f32 %v3552_v35, %v3551_v62  ;;  %v3493_v2 = vmul.f32 %v6903_v19, %v6903_v19  ;;  %v3560_v63 = vsel %vm3285_vm5, %v3491_v10, 0.0  ;;  %v6924_v4 = vsub.f32 %v6497_v51, %v6794_v12 }
 0x2e7   :  { %v3494_v62 = vmul.f32 %v6910_v44, %v6910_v44  ;;  %v3562_v31 = vsel %vm3285_vm5, %v3492_v48, 0.0  ;;  %v6931_v6 = vsub.f32 %v6506_v18, %v6794_v12  ;;  %v6938_v51 = vsub.f32 %v6515_v36, %v6794_v12 }
 0x2e8   :  { %v3555_v5 = vadd.f32 %v3554_v50, %v3553_v14  ;;  %v3495_v14 = vmul.f32 %v6917_v43, %v6917_v43  ;;  %v3564_v15 = vsel %vm3285_vm5, %v3493_v2, 0.0  ;;  %v6945_v18 = vsub.f32 %v6518_v60, %v6794_v12 }
 0x2e9   :  { %v3566_v10 = vsel %vm3285_vm5, %v3494_v62, 0.0  ;;  %v6952_v36 = vsub.f32 %v6527_v52, %v6794_v12  ;;  %v6959_v60 = vsub.f32 %v6531_v53, %v6794_v12  ;;  %v6966_v52 = vsub.f32 %v6545_v33, %v6794_v12 }
 0x2ea   :  { %v3557_v34 = vadd.f32 %v3556_v13, %v3555_v5  ;;  %v3496_v5 = vmul.f32 %v6924_v4, %v6924_v4  ;;  %v3568_v48 = vsel %vm3285_vm5, %v3495_v14, 0.0  ;;  %v6973_v53 = vsub.f32 %v6543_v49, %v6794_v12 }
 0x2eb   :  { %v6980_v33 = vsub.f32 %v6547_v3, %v6794_v12  ;;  %v6987_v49 = vsub.f32 %v6560_v56, %v6794_v12  ;;  %v6994_v3 = vsub.f32 %v6569_v24, %v6794_v12  ;;  %v7001_v56 = vsub.f32 %v6565_v9, %v6794_v12 }
 0x2ec   :  { %v3559_v61 = vadd.f32 %v3558_v1, %v3557_v34  ;;  %v3497_v34 = vmul.f32 %v6931_v6, %v6931_v6  ;;  %v3570_v2 = vsel %vm3285_vm5, %v3496_v5, 0.0  ;;  %v7008_v24 = vsub.f32 %v6575_v25, %v6794_v12 }
 0x2ed   :  { %v7015_v9 = vsub.f32 %v6584_v37, %v6794_v12  ;;  %v7022_v25 = vsub.f32 %v6593_v23, %v6794_v12  ;;  %v7029_v37 = vsub.f32 %v6596_v21, %v6794_v12  ;;  %v7036_v23 = vsub.f32 %v6604_v0, %v6794_v12 }
 0x2ee   :  { %v3561_v59 = vadd.f32 %v3560_v63, %v3559_v61  ;;  %v3498_v61 = vmul.f32 %v6938_v51, %v6938_v51  ;;  %v3572_v62 = vsel %vm3285_vm5, %v3497_v34, 0.0  ;;  %v7050_v0 = vsub.f32 %v6622_v29, %v6794_v12 }
 0x2f0   :  { %v3563_v35 = vadd.f32 %v3562_v31, %v3561_v59  ;;  %v3499_v59 = vmul.f32 %v6945_v18, %v6945_v18  ;;  %v3574_v14 = vsel %vm3285_vm5, %v3498_v61, 0.0 }
 0x2f2   :  { %v3565_v50 = vadd.f32 %v3564_v15, %v3563_v35  ;;  %v3500_v35 = vmul.f32 %v6952_v36, %v6952_v36  ;;  %v3576_v5 = vsel %vm3285_vm5, %v3499_v59, 0.0 }
 0x2f4   :  { %v3567_v13 = vadd.f32 %v3566_v10, %v3565_v50  ;;  %v3501_v50 = vmul.f32 %v6959_v60, %v6959_v60  ;;  %v3578_v34 = vsel %vm3285_vm5, %v3500_v35, 0.0 }
 0x2f6   :  { %v3569_v1 = vadd.f32 %v3568_v48, %v3567_v13  ;;  %v3502_v13 = vmul.f32 %v6966_v52, %v6966_v52  ;;  %v3580_v61 = vsel %vm3285_vm5, %v3501_v50, 0.0 }
 0x2f8   :  { %v3571_v63 = vadd.f32 %v3570_v2, %v3569_v1  ;;  %v3503_v1 = vmul.f32 %v6973_v53, %v6973_v53  ;;  %v3582_v59 = vsel %vm3285_vm5, %v3502_v13, 0.0 }
 0x2fa   :  { %v3573_v31 = vadd.f32 %v3572_v62, %v3571_v63  ;;  %v3504_v63 = vmul.f32 %v6980_v33, %v6980_v33  ;;  %v3584_v35 = vsel %vm3285_vm5, %v3503_v1, 0.0 }
 0x2fc   :  { %v3575_v15 = vadd.f32 %v3574_v14, %v3573_v31  ;;  %v3505_v31 = vmul.f32 %v6987_v49, %v6987_v49  ;;  %v3586_v50 = vsel %vm3285_vm5, %v3504_v63, 0.0 }
 0x2fe   :  { %v3577_v10 = vadd.f32 %v3576_v5, %v3575_v15  ;;  %v3506_v15 = vmul.f32 %v6994_v3, %v6994_v3  ;;  %v3588_v13 = vsel %vm3285_vm5, %v3505_v31, 0.0 }
 0x300   :  { %v3579_v48 = vadd.f32 %v3578_v34, %v3577_v10  ;;  %v3507_v10 = vmul.f32 %v7001_v56, %v7001_v56  ;;  %v3590_v1 = vsel %vm3285_vm5, %v3506_v15, 0.0  ;;  %v3511_v15 = vmul.f32 %v7029_v37, %v7029_v37 }
 0x302   :  { %v3581_v2 = vadd.f32 %v3580_v61, %v3579_v48  ;;  %v3508_v48 = vmul.f32 %v7008_v24, %v7008_v24  ;;  %v3592_v63 = vsel %vm3285_vm5, %v3507_v10, 0.0  ;;  %v3512_v10 = vmul.f32 %v7036_v23, %v7036_v23 }
 0x304   :  { %v3583_v62 = vadd.f32 %v3582_v59, %v3581_v2  ;;  %v3509_v2 = vmul.f32 %v7015_v9, %v7015_v9  ;;  %v3594_v31 = vsel %vm3285_vm5, %v3508_v48, 0.0  ;;  %v8479_v48 = vld [vmem:[#allocation10_spill] sm:$0xff] }
 0x306   :  { %v3585_v14 = vadd.f32 %v3584_v35, %v3583_v62  ;;  %v3510_v62 = vmul.f32 %v7022_v25, %v7022_v25 }
 0x308   :  { %v3587_v5 = vadd.f32 %v3586_v50, %v3585_v14  ;;  %v8478_v14 = vld [vmem:[#allocation16_spill] sm:$0xff]  ;;  %v3596_v50 = vsel %vm3285_vm5, %v3509_v2, 0.0  ;;  %v3600_v2 = vsel %vm3285_vm5, %v3511_v15, 0.0 }
 0x309   :  { %v7043_v21 = vsub.f32 %v8478_v14, %v6794_v12  ;;  %v8483_v14 = vld [vmem:[#allocation11_spill] sm:$0xff] }
 0x30a   :  { %v3589_v34 = vadd.f32 %v3588_v13, %v3587_v5  ;;  %v3598_v13 = vsel %vm3285_vm5, %v3510_v62, 0.0  ;;  %v3602_v62 = vsel %vm3285_vm5, %v3512_v10, 0.0 }
 0x30c   :  { %v3591_v61 = vadd.f32 %v3590_v1, %v3589_v34  ;;  %v7057_v1 = vsub.f32 %v8479_v48, %v6794_v12 }
 0x30e   :  { %v3593_v59 = vadd.f32 %v3592_v63, %v3591_v61  ;;  %8480 = vst [vmem:[#allocation25_spill] sm:$0xff] %v7057_v1  ;;  %v3513_v61 = vmul.f32 %v7043_v21, %v7043_v21 }
 0x310   :  { %v3595_v35 = vadd.f32 %v3594_v31, %v3593_v59  ;;  %v8481_v59 = vld [vmem:[#allocation17_spill] sm:$0xff]  ;;  %v3514_v31 = vmul.f32 %v7050_v0, %v7050_v0  ;;  %v3604_v15 = vsel %vm3285_vm5, %v3513_v61, 0.0 }
 0x311   :  { %v7064_v29 = vsub.f32 %v8481_v59, %v6794_v12  ;;  %v8487_v59 = vld [vmem:[#allocation18_spill] sm:$0xff] }
 0x312   :  { %v3597_v5 = vadd.f32 %v3596_v50, %v3595_v35  ;;  %v7071_v50 = vsub.f32 %v8483_v14, %v6794_v12  ;;  %v3606_v10 = vsel %vm3285_vm5, %v3514_v31, 0.0 }
 0x313   :  { %8482 = vst [vmem:[#allocation28_spill] sm:$0xff] %v7064_v29 }
 0x314   :  { %v3599_v34 = vadd.f32 %v3598_v13, %v3597_v5  ;;  %8484 = vst [vmem:[#allocation12_spill] sm:$0xff] %v7071_v50  ;;  %v3515_v5 = vmul.f32 %v7057_v1, %v7057_v1  ;;  %v3517_v14 = vmul.f32 %v7071_v50, %v7071_v50 }
 0x316   :  { %v3601_v63 = vadd.f32 %v3600_v2, %v3599_v34  ;;  %v8485_v34 = vld [vmem:[#allocation19_spill] sm:$0xff]  ;;  %v3516_v2 = vmul.f32 %v7064_v29, %v7064_v29  ;;  %v3608_v61 = vsel %vm3285_vm5, %v3515_v5, 0.0  ;;  %v3612_v5 = vsel %vm3285_vm5, %v3517_v14, 0.0 }
 0x317   :  { %v7078_v48 = vsub.f32 %v8485_v34, %v6794_v12 }
 0x318   :  { %v3603_v35 = vadd.f32 %v3602_v62, %v3601_v63  ;;  %v7085_v62 = vsub.f32 %v8487_v59, %v6794_v12  ;;  %v3610_v31 = vsel %vm3285_vm5, %v3516_v2, 0.0 }
 0x319   :  { %8486 = vst [vmem:[#allocation5_spill] sm:$0xff] %v7078_v48  ;;  %v3518_v29 = vmul.f32 %v7078_v48, %v7078_v48 }
 0x31a   :  { %v3605_v13 = vadd.f32 %v3604_v15, %v3603_v35  ;;  %8488 = vst [vmem:[#allocation6_spill] sm:$0xff] %v7085_v62  ;;  %v8489_v15 = vld [vmem:[#allocation29_spill] sm:$0xff]  ;;  %v3519_v50 = vmul.f32 %v7085_v62, %v7085_v62 }
 0x31b   :  { %v7092_v34 = vsub.f32 %v8489_v15, %v6794_v12  ;;  %v3614_v2 = vsel %vm3285_vm5, %v3518_v29, 0.0 }
 0x31c   :  { %v3607_v63 = vadd.f32 %v3606_v10, %v3605_v13  ;;  %v8491_v10 = vld [vmem:[#allocation30_spill] sm:$0xff]  ;;  %v3616_v14 = vsel %vm3285_vm5, %v3519_v50, 0.0 }
 0x31d   :  { %8490 = vst [vmem:[#allocation13_spill] sm:$0xff] %v7092_v34  ;;  %v7099_v59 = vsub.f32 %v8491_v10, %v6794_v12  ;;  %v3520_v48 = vmul.f32 %v7092_v34, %v7092_v34 }
 0x31e   :  { %v3609_v35 = vadd.f32 %v3608_v61, %v3607_v63  ;;  %v8493_v61 = vld [vmem:[#allocation31_spill] sm:$0xff] }
 0x31f   :  { %8492 = vst [vmem:[#allocation7_spill] sm:$0xff] %v7099_v59  ;;  %v7106_v15 = vsub.f32 %v8493_v61, %v6794_v12  ;;  %v3521_v62 = vmul.f32 %v7099_v59, %v7099_v59  ;;  %v3618_v29 = vsel %vm3285_vm5, %v3520_v48, 0.0 }
 0x320   :  { %v3611_v13 = vadd.f32 %v3610_v31, %v3609_v35  ;;  %v8495_v31 = vld [vmem:[#allocation32_spill] sm:$0xff] }
 0x321   :  { %8494 = vst [vmem:[#allocation14_spill] sm:$0xff] %v7106_v15  ;;  %v7113_v10 = vsub.f32 %v8495_v31, %v6794_v12  ;;  %v3522_v34 = vmul.f32 %v7106_v15, %v7106_v15  ;;  %v3620_v50 = vsel %vm3285_vm5, %v3521_v62, 0.0 }
 0x322   :  { %v3613_v63 = vadd.f32 %v3612_v5, %v3611_v13  ;;  %v8497_v5 = vld [vmem:[#allocation33_spill] sm:$0xff] }
 0x323   :  { %8496 = vst [vmem:[#allocation8_spill] sm:$0xff] %v7113_v10  ;;  %v7120_v61 = vsub.f32 %v8497_v5, %v6794_v12  ;;  %v3523_v59 = vmul.f32 %v7113_v10, %v7113_v10  ;;  %v3622_v48 = vsel %vm3285_vm5, %v3522_v34, 0.0 }
 0x324   :  { %v3615_v35 = vadd.f32 %v3614_v2, %v3613_v63  ;;  %v8499_v2 = vld [vmem:[#allocation34_spill] sm:$0xff] }
 0x325   :  { %8498 = vst [vmem:[#allocation15_spill] sm:$0xff] %v7120_v61  ;;  %v7127_v31 = vsub.f32 %v8499_v2, %v6794_v12  ;;  %v3524_v15 = vmul.f32 %v7120_v61, %v7120_v61  ;;  %v3624_v62 = vsel %vm3285_vm5, %v3523_v59, 0.0 }
 0x326   :  { %v3617_v13 = vadd.f32 %v3616_v14, %v3615_v35  ;;  %v8501_v14 = vld [vmem:[#allocation36_spill] sm:$0xff] }
 0x327   :  { %8500 = vst [vmem:[#allocation9_spill] sm:$0xff] %v7127_v31  ;;  %v7134_v5 = vsub.f32 %v8501_v14, %v6794_v12  ;;  %v3525_v10 = vmul.f32 %v7127_v31, %v7127_v31  ;;  %v3626_v34 = vsel %vm3285_vm5, %v3524_v15, 0.0 }
 0x328   :  { %v3619_v63 = vadd.f32 %v3618_v29, %v3617_v13  ;;  %v8503_v29 = vld [vmem:[#allocation35_spill] sm:$0xff] }
 0x329   :  { %8502 = vst [vmem:[#allocation16_spill] sm:$0xff] %v7134_v5  ;;  %v7141_v2 = vsub.f32 %v8503_v29, %v6794_v12  ;;  %v3526_v61 = vmul.f32 %v7134_v5, %v7134_v5  ;;  %v3628_v59 = vsel %vm3285_vm5, %v3525_v10, 0.0 }
 0x32a   :  { %v3621_v35 = vadd.f32 %v3620_v50, %v3619_v63  ;;  %v8505_v50 = vld [vmem:[#allocation37_spill] sm:$0xff] }
 0x32b   :  { %8504 = vst [vmem:[#allocation10_spill] sm:$0xff] %v7141_v2  ;;  %v7148_v14 = vsub.f32 %v8505_v50, %v6794_v12  ;;  %v3527_v31 = vmul.f32 %v7141_v2, %v7141_v2  ;;  %v3630_v15 = vsel %vm3285_vm5, %v3526_v61, 0.0 }
 0x32c   :  { %v3623_v13 = vadd.f32 %v3622_v48, %v3621_v35  ;;  %v8507_v48 = vld [vmem:[#allocation38_spill] sm:$0xff] }
 0x32d   :  { %8506 = vst [vmem:[#allocation17_spill] sm:$0xff] %v7148_v14  ;;  %v7155_v29 = vsub.f32 %v8507_v48, %v6794_v12  ;;  %v3528_v5 = vmul.f32 %v7148_v14, %v7148_v14  ;;  %v3632_v10 = vsel %vm3285_vm5, %v3527_v31, 0.0 }
 0x32e   :  { %v3625_v63 = vadd.f32 %v3624_v62, %v3623_v13  ;;  %v8508_v62 = vld [vmem:[#allocation22_spill] sm:$0xff] }
 0x32f   :  { %v7162_v50 = vsub.f32 %v8508_v62, %v6794_v12  ;;  %v3529_v2 = vmul.f32 %v7155_v29, %v7155_v29  ;;  %v3634_v61 = vsel %vm3285_vm5, %v3528_v5, 0.0  ;;  %v3534_v5 = vmul.f32 %v6802_v54, %v6802_v54 }
 0x330   :  { %v3627_v35 = vadd.f32 %v3626_v34, %v3625_v63  ;;  %v8510_v34 = vld [vmem:[#allocation20_spill] sm:$0xff] }
 0x331   :  { %8509 = vst [vmem:[#allocation11_spill] sm:$0xff] %v7162_v50  ;;  %v7169_v48 = vsub.f32 %v8510_v34, %v6794_v12  ;;  %v3530_v14 = vmul.f32 %v7162_v50, %v7162_v50  ;;  %v3636_v34 = vsel %vm3285_vm5, %v3529_v2, 0.0  ;;  %v3535_v2 = vmul.f32 %v6806_v8, %v6806_v8 }
 0x332   :  { %v3629_v13 = vadd.f32 %v3628_v59, %v3627_v35  ;;  %v8511_v59 = vld [vmem:[#allocation23_spill] sm:$0xff] }
 0x333   :  { %v7176_v62 = vsub.f32 %v8511_v59, %v6794_v12  ;;  %v3533_v12 = vmul.f32 %v6798_v42, %v6798_v42 }
 0x334   :  { %v3631_v63 = vadd.f32 %v3630_v15, %v3629_v13  ;;  %v3531_v15 = vmul.f32 %v7169_v48, %v7169_v48 }
 0x335   :  { %v3532_v31 = vmul.f32 %v7176_v62, %v7176_v62 }
 0x336   :  { %v3633_v35 = vadd.f32 %v3632_v10, %v3631_v63  ;;  %v3638_v63 = vsel %vm3285_vm5, %v3530_v14, 0.0  ;;  %v3640_v59 = vsel %vm3285_vm5, %v3531_v15, 0.0  ;;  %v3646_v14 = vsel %vm3285_vm5, %v3534_v5, 0.0 }
 0x337   :  { %v3537_v15 = vmul.f32 %v6814_v7, %v6814_v7  ;;  %v3540_v5 = vmul.f32 %v6826_v39, %v6826_v39 }
 0x338   :  { %v3635_v13 = vadd.f32 %v3634_v61, %v3633_v35  ;;  %v3642_v35 = vsel %vm3285_vm5, %v3532_v31, 0.0 }
 0x33a   :  { %v3637_v1 = vadd.f32 %v3636_v34, %v3635_v13  ;;  %v3644_v13 = vsel %vm3285_vm5, %v3533_v12, 0.0  ;;  %v3539_v12 = vmul.f32 %v6822_v46, %v6822_v46 }
 0x33c   :  { %v3639_v10 = vadd.f32 %v3638_v63, %v3637_v1  ;;  %v3536_v1 = vmul.f32 %v6810_v17, %v6810_v17 }
 0x33e   :  { %v3641_v50 = vadd.f32 %v3640_v59, %v3639_v10  ;;  %v3648_v10 = vsel %vm3285_vm5, %v3535_v2, 0.0  ;;  %v3650_v31 = vsel %vm3285_vm5, %v3536_v1, 0.0  ;;  %v3541_v2 = vmul.f32 %v6830_v30, %v6830_v30 }
 0x33f   :  { %v3542_v1 = vmul.f32 %v6833_v40, %v6833_v40 }
 0x340   :  { %v3643_v61 = vadd.f32 %v3642_v35, %v3641_v50  ;;  %v3538_v50 = vmul.f32 %v6818_v57, %v6818_v57 }
 0x342   :  { %v3645_v34 = vadd.f32 %v3644_v13, %v3643_v61  ;;  %v3652_v61 = vsel %vm3285_vm5, %v3537_v15, 0.0  ;;  %v3543_v15 = vmul.f32 %v6836_v38, %v6836_v38 }
 0x344   :  { %v3647_v63 = vadd.f32 %v3646_v14, %v3645_v34  ;;  %v3654_v34 = vsel %vm3285_vm5, %v3538_v50, 0.0  ;;  %v3544_v50 = vmul.f32 %v6839_v58, %v6839_v58 }
 0x346   :  { %v3649_v59 = vadd.f32 %v3648_v10, %v3647_v63  ;;  %v3656_v63 = vsel %vm3285_vm5, %v3539_v12, 0.0  ;;  %v3545_v12 = vmul.f32 %v6842_v45, %v6842_v45 }
 0x348   :  { %v3651_v35 = vadd.f32 %v3650_v31, %v3649_v59  ;;  %v3658_v59 = vsel %vm3285_vm5, %v3540_v5, 0.0  ;;  %v3546_v5 = vmul.f32 %v6845_v41, %v6845_v41 }
 0x34a   :  { %v3653_v13 = vadd.f32 %v3652_v61, %v3651_v35  ;;  %v3660_v35 = vsel %vm3285_vm5, %v3541_v2, 0.0  ;;  %v3547_v2 = vmul.f32 %v6848_v22, %v6848_v22 }
 0x34c   :  { %v3655_v14 = vadd.f32 %v3654_v34, %v3653_v13  ;;  %v3662_v13 = vsel %vm3285_vm5, %v3542_v1, 0.0  ;;  %v3548_v1 = vmul.f32 %v6851_v55, %v6851_v55 }
 0x34e   :  { %v3657_v10 = vadd.f32 %v3656_v63, %v3655_v14  ;;  %v3664_v14 = vsel %vm3285_vm5, %v3543_v15, 0.0  ;;  %v3672_v15 = vsel %vm3285_vm5, %v3547_v2, 0.0 }
 0x350   :  { %v3659_v31 = vadd.f32 %v3658_v59, %v3657_v10  ;;  %v3666_v10 = vsel %vm3285_vm5, %v3544_v50, 0.0 }
 0x352   :  { %v3661_v61 = vadd.f32 %v3660_v35, %v3659_v31  ;;  %v3668_v31 = vsel %vm3285_vm5, %v3545_v12, 0.0 }
 0x354   :  { %v3663_v34 = vadd.f32 %v3662_v13, %v3661_v61  ;;  %v3670_v61 = vsel %vm3285_vm5, %v3546_v5, 0.0  ;;  %v7242_v5 = vld [vmem:[%s8341_s3] ss:$0 sm:$0xff] }
 0x356   :  { %v3665_v63 = vadd.f32 %v3664_v14, %v3663_v34  ;;  %v3674_v14 = vsel %vm3285_vm5, %v3548_v1, 0.0 }
 0x358   :  { %v3667_v59 = vadd.f32 %v3666_v10, %v3665_v63 }
 0x35a   :  { %v3669_v35 = vadd.f32 %v3668_v31, %v3667_v59 }
 0x35c   :  { %v3671_v13 = vadd.f32 %v3670_v61, %v3669_v35 }
 0x35e   :  { %v3673_v34 = vadd.f32 %v3672_v15, %v3671_v13 }
 0x360   :  { %v3675_v45 = vadd.f32 %v3674_v14, %v3673_v34 }
 0x362   :  { %v3676_v50 = vrot.slane %v3675_v45, 4 }
 0x364   :  { %v3677_v63 = vadd.f32 %v3676_v50, %v3675_v45 }
 0x366   :  { %v3678_v10 = vrot.slane %v3677_v63, 2 }
 0x368   :  { %v3679_v58 = vadd.f32 %v3678_v10, %v3677_v63  ;;  %v8516_v63 = vld [vmem:[#allocation5_spill] sm:$0xff]  ;;  %v8517_v10 = vld [vmem:[#allocation6_spill] sm:$0xff] }
 0x36a   :  { %v3680_v22 = vrot.slane %v3679_v58, 1 }
 0x36c   :  { %v3681_v38 = vadd.f32 %v3680_v22, %v3679_v58  ;;  %v7261_v22 = vld [vmem:[%s8342_s4] ss:$0 sm:$0xff] }
 0x36d   :  { %8512 = vst [vmem:[#allocation19_spill] sm:$0xff] %v7261_v22 }
 0x36e   :  { %v3682_v12 = vmul.f32 0.001953125, %v3681_v38 }
 0x370   :  { %v3683_v59 = vadd.f32 1e-05, %v3682_v12  ;;  %v8518_v12 = vld [vmem:[#allocation13_spill] sm:$0xff] }
 0x372   :  { %4936 = vrsqrt.f32 %v3683_v59 }
 0x37f   :  { %v7237_v31 = vpop.eup %4936 }
 0x380   :  { %v3746_v2 = vmul.f32 %v7237_v31, %v6845_v41  ;;  %v7248_v45 = vmul.f32 %v7237_v31, %v6855_v47  ;;  %v7252_v58 = vmul.f32 %v7237_v31, %v6859_v32  ;;  %v7256_v38 = vmul.f32 %v7237_v31, %v6863_v28 }
 0x381   :  { %v7265_v41 = vmul.f32 %v7237_v31, %v6867_v20  ;;  %v7269_v47 = vmul.f32 %v7237_v31, %v6875_v16  ;;  %v7273_v32 = vmul.f32 %v7237_v31, %v6881_v27  ;;  %v7277_v28 = vmul.f32 %v7237_v31, %v6889_v11  ;;  %v3952_v27 = vld [vmem:[%s8343_s5 + $0x1e8] sm:$0xff] }
 0x382   :  { %v3817_v35 = vmul.f32 %v7242_v5, %v3746_v2  ;;  %v7282_v1 = vmul.f32 %v7237_v31, %v6896_v26  ;;  %v7286_v20 = vmul.f32 %v7237_v31, %v6903_v19  ;;  %v7290_v16 = vmul.f32 %v7237_v31, %v6910_v44  ;;  %v8519_v2 = vld [vmem:[#allocation7_spill] sm:$0xff] }
 0x383   :  { %v7297_v11 = vmul.f32 %v7237_v31, %v6917_v43  ;;  %v7301_v26 = vmul.f32 %v7237_v31, %v6924_v4  ;;  %v7305_v19 = vmul.f32 %v7237_v31, %v6931_v6  ;;  %v7309_v44 = vmul.f32 %v7237_v31, %v6938_v51 }
 0x384   :  { %v3888_v61 = vadd.f32 %v7261_v22, %v3817_v35  ;;  %v7314_v13 = vmul.f32 %v7237_v31, %v6945_v18  ;;  %v7318_v43 = vmul.f32 %v7237_v31, %v6952_v36  ;;  %v7322_v4 = vmul.f32 %v7237_v31, %v6959_v60  ;;  %v8527_v22 = vld [vmem:[#allocation10_spill] sm:$0xff] }
 0x385   :  { %v7326_v6 = vmul.f32 %v7237_v31, %v6966_v52  ;;  %v7330_v51 = vmul.f32 %v7237_v31, %v6973_v53  ;;  %v7334_v18 = vmul.f32 %v7237_v31, %v6980_v33  ;;  %v7338_v36 = vmul.f32 %v7237_v31, %v6987_v49 }
 0x386   :  { %v4016_v15 = vadd.f32 %v3952_v27, %v3888_v61  ;;  %v7342_v60 = vmul.f32 %v7237_v31, %v6994_v3  ;;  %v7346_v52 = vmul.f32 %v7237_v31, %v7001_v56  ;;  %v7350_v53 = vmul.f32 %v7237_v31, %v7008_v24  ;;  %v8520_v27 = vld [vmem:[#allocation14_spill] sm:$0xff] }
 0x387   :  { %v7354_v33 = vmul.f32 %v7237_v31, %v7015_v9  ;;  %v7358_v49 = vmul.f32 %v7237_v31, %v7022_v25  ;;  %v7362_v3 = vmul.f32 %v7237_v31, %v7029_v37  ;;  %v7366_v56 = vmul.f32 %v7237_v31, %v7036_v23  ;;  %v8513_v25 = vld [vmem:[#allocation25_spill] sm:$0xff]  ;;  %v8514_v37 = vld [vmem:[#allocation28_spill] sm:$0xff] }
 0x388   :  { %4080 = vst.msk [vmem:[#allocation2 + $0x1e8] sm:$0xff] %vm3285_vm5, %v4016_v15  ;;  %v7371_v24 = vmul.f32 %v7237_v31, %v7043_v21  ;;  %v7375_v9 = vmul.f32 %v7237_v31, %v7050_v0  ;;  %v7379_v34 = vmul.f32 %v7237_v31, %v8513_v25  ;;  %v7383_v14 = vmul.f32 %v7237_v31, %v8514_v37  ;;  %v8515_v23 = vld [vmem:[#allocation12_spill] sm:$0xff]  ;;  %v8523_v37 = vld [vmem:[#allocation15_spill] sm:$0xff] }
 0x389   :  { %v7387_v50 = vmul.f32 %v7237_v31, %v8515_v23  ;;  %v7391_v21 = vmul.f32 %v7237_v31, %v8516_v63  ;;  %v7395_v0 = vmul.f32 %v7237_v31, %v8517_v10  ;;  %v7399_v59 = vmul.f32 %v7237_v31, %v8518_v12  ;;  %v8522_v15 = vld [vmem:[#allocation8_spill] sm:$0xff]  ;;  %v8525_v63 = vld [vmem:[#allocation9_spill] sm:$0xff] }
 0x38a   :  { %v7403_v35 = vmul.f32 %v7237_v31, %v8519_v2  ;;  %v7407_v61 = vmul.f32 %v7237_v31, %v8520_v27  ;;  %v7411_v25 = vmul.f32 %v7237_v31, %v8522_v15  ;;  %v7415_v23 = vmul.f32 %v7237_v31, %v8523_v37  ;;  %v8526_v12 = vld [vmem:[#allocation16_spill] sm:$0xff] }
 0x38b   :  { %v7419_v10 = vmul.f32 %v7237_v31, %v8525_v63  ;;  %v7423_v2 = vmul.f32 %v7237_v31, %v8526_v12  ;;  %v7427_v27 = vmul.f32 %v7237_v31, %v8527_v22  ;;  %v7435_v37 = vmul.f32 %v7237_v31, %v7155_v29 }
 0x38c   :  { %8521 = vst [vmem:[#allocation18_spill] sm:$0xff] %v7407_v61  ;;  %8524 = vst [vmem:[#allocation29_spill] sm:$0xff] %v7415_v23  ;;  %v8528_v61 = vld [vmem:[#allocation17_spill] sm:$0xff]  ;;  %v8529_v23 = vld [vmem:[#allocation11_spill] sm:$0xff]  ;;  %v7443_v12 = vmul.f32 %v7237_v31, %v7169_v48  ;;  %v7447_v22 = vmul.f32 %v7237_v31, %v7176_v62  ;;  %v7455_v29 = vmul.f32 %v7237_v31, %v6802_v54 }
 0x38d   :  { %v7431_v15 = vmul.f32 %v7237_v31, %v8528_v61  ;;  %v7439_v63 = vmul.f32 %v7237_v31, %v8529_v23  ;;  %v7451_v61 = vmul.f32 %v7237_v31, %v6798_v42  ;;  %v7459_v23 = vmul.f32 %v7237_v31, %v6806_v8 }
 0x38e   :  { %v7463_v48 = vmul.f32 %v7237_v31, %v6810_v17  ;;  %v7467_v62 = vmul.f32 %v7237_v31, %v6814_v7  ;;  %v7471_v42 = vmul.f32 %v7237_v31, %v6818_v57  ;;  %v7475_v54 = vmul.f32 %v7237_v31, %v6822_v46 }
 0x38f   :  { %v7479_v8 = vmul.f32 %v7237_v31, %v6826_v39  ;;  %v7483_v17 = vmul.f32 %v7237_v31, %v6830_v30  ;;  %v7487_v7 = vmul.f32 %v7237_v31, %v6833_v40  ;;  %v7507_v40 = vmul.f32 %v7237_v31, %v6851_v55 }
 0x390   :  { %8530 = vst [vmem:[#allocation30_spill] sm:$0xff] %v7467_v62  ;;  %8531 = vst [vmem:[#allocation31_spill] sm:$0xff] %v7471_v42  ;;  %v8534_v62 = vld [vmem:[#allocation21_spill] sm:$0xff]  ;;  %v8535_v42 = vld [vmem:[#allocation24_spill] sm:$0xff]  ;;  %v7527_v55 = vmul.f32 %v7242_v5, %v7269_v47  ;;  %v7551_v47 = vmul.f32 %v7242_v5, %v7297_v11  ;;  %v7575_v11 = vmul.f32 %v7242_v5, %v7322_v4 }
 0x391   :  { %8532 = vst [vmem:[#allocation32_spill] sm:$0xff] %v7475_v54  ;;  %8533 = vst [vmem:[#allocation33_spill] sm:$0xff] %v7479_v8  ;;  %v7491_v57 = vmul.f32 %v7237_v31, %v8534_v62  ;;  %v7495_v46 = vmul.f32 %v7237_v31, %v8535_v42  ;;  %v8536_v54 = vld [vmem:[#allocation26_spill] sm:$0xff]  ;;  %v8537_v8 = vld [vmem:[#allocation27_spill] sm:$0xff]  ;;  %v7511_v62 = vmul.f32 %v7242_v5, %v7248_v45 }
 0x392   :  { %v7499_v39 = vmul.f32 %v7237_v31, %v8536_v54  ;;  %v7503_v30 = vmul.f32 %v7237_v31, %v8537_v8  ;;  %v7515_v42 = vmul.f32 %v7242_v5, %v7252_v58  ;;  %v7519_v54 = vmul.f32 %v7242_v5, %v7256_v38 }
 0x393   :  { %v7523_v8 = vmul.f32 %v7242_v5, %v7265_v41  ;;  %v7531_v31 = vmul.f32 %v7242_v5, %v7273_v32  ;;  %v7535_v45 = vmul.f32 %v7242_v5, %v7277_v28  ;;  %v7539_v58 = vmul.f32 %v7242_v5, %v7282_v1 }
 0x394   :  { %v7543_v38 = vmul.f32 %v7242_v5, %v7286_v20  ;;  %v7547_v41 = vmul.f32 %v7242_v5, %v7290_v16  ;;  %v7555_v32 = vmul.f32 %v7242_v5, %v7301_v26  ;;  %v7559_v28 = vmul.f32 %v7242_v5, %v7305_v19 }
 0x395   :  { %v7563_v1 = vmul.f32 %v7242_v5, %v7309_v44  ;;  %v7567_v20 = vmul.f32 %v7242_v5, %v7314_v13  ;;  %v7571_v16 = vmul.f32 %v7242_v5, %v7318_v43  ;;  %v7579_v26 = vmul.f32 %v7242_v5, %v7326_v6 }
 0x396   :  { %v7583_v19 = vmul.f32 %v7242_v5, %v7330_v51  ;;  %v7587_v44 = vmul.f32 %v7242_v5, %v7334_v18  ;;  %v7591_v13 = vmul.f32 %v7242_v5, %v7338_v36  ;;  %v7595_v43 = vmul.f32 %v7242_v5, %v7342_v60 }
 0x397   :  { %v7599_v4 = vmul.f32 %v7242_v5, %v7346_v52  ;;  %v7603_v6 = vmul.f32 %v7242_v5, %v7350_v53  ;;  %v7607_v51 = vmul.f32 %v7242_v5, %v7354_v33  ;;  %v7611_v18 = vmul.f32 %v7242_v5, %v7358_v49 }
 0x398   :  { %v7615_v36 = vmul.f32 %v7242_v5, %v7362_v3  ;;  %v7619_v60 = vmul.f32 %v7242_v5, %v7366_v56  ;;  %v7623_v52 = vmul.f32 %v7242_v5, %v7371_v24  ;;  %v7627_v53 = vmul.f32 %v7242_v5, %v7375_v9 }
 0x399   :  { %v7631_v33 = vmul.f32 %v7242_v5, %v7379_v34  ;;  %v7635_v49 = vmul.f32 %v7242_v5, %v7383_v14  ;;  %v7639_v3 = vmul.f32 %v7242_v5, %v7387_v50  ;;  %v7643_v56 = vmul.f32 %v7242_v5, %v7391_v21  ;;  %v8539_v14 = vld [vmem:[#allocation18_spill] sm:$0xff] }
 0x39a   :  { %v7647_v24 = vmul.f32 %v7242_v5, %v7395_v0  ;;  %v7651_v9 = vmul.f32 %v7242_v5, %v7399_v59  ;;  %v7655_v34 = vmul.f32 %v7242_v5, %v7403_v35  ;;  %v7659_v50 = vmul.f32 %v7242_v5, %v8539_v14 }
 0x39b   :  { %8538 = vst [vmem:[#allocation34_spill] sm:$0xff] %v7643_v56  ;;  %v7663_v21 = vmul.f32 %v7242_v5, %v7411_v25  ;;  %v8540_v56 = vld [vmem:[#allocation29_spill] sm:$0xff]  ;;  %v7671_v59 = vmul.f32 %v7242_v5, %v7419_v10  ;;  %v7675_v35 = vmul.f32 %v7242_v5, %v7423_v2  ;;  %v7679_v14 = vmul.f32 %v7242_v5, %v7427_v27 }
 0x39c   :  { %v7667_v0 = vmul.f32 %v7242_v5, %v8540_v56  ;;  %v7683_v25 = vmul.f32 %v7242_v5, %v7431_v15  ;;  %v7687_v56 = vmul.f32 %v7242_v5, %v7435_v37  ;;  %v7691_v10 = vmul.f32 %v7242_v5, %v7439_v63 }
 0x39d   :  { %v7695_v2 = vmul.f32 %v7242_v5, %v7443_v12  ;;  %v7699_v27 = vmul.f32 %v7242_v5, %v7447_v22  ;;  %v7703_v15 = vmul.f32 %v7242_v5, %v7451_v61  ;;  %v7707_v37 = vmul.f32 %v7242_v5, %v7455_v29 }
 0x39e   :  { %v7711_v63 = vmul.f32 %v7242_v5, %v7459_v23  ;;  %v7715_v12 = vmul.f32 %v7242_v5, %v7463_v48  ;;  %v7735_v48 = vmul.f32 %v7242_v5, %v7483_v17  ;;  %v7755_v17 = vmul.f32 %v7242_v5, %v7503_v30 }
 0x39f   :  { %8541 = vst [vmem:[#allocation36_spill] sm:$0xff] %v7695_v2  ;;  %8542 = vst [vmem:[#allocation35_spill] sm:$0xff] %v7699_v27  ;;  %v8545_v2 = vld [vmem:[#allocation30_spill] sm:$0xff]  ;;  %v8546_v27 = vld [vmem:[#allocation31_spill] sm:$0xff] }
 0x3a0   :  { %8543 = vst [vmem:[#allocation37_spill] sm:$0xff] %v7703_v15  ;;  %8544 = vst [vmem:[#allocation38_spill] sm:$0xff] %v7707_v37  ;;  %v7719_v22 = vmul.f32 %v7242_v5, %v8545_v2  ;;  %v7723_v61 = vmul.f32 %v7242_v5, %v8546_v27  ;;  %v8547_v15 = vld [vmem:[#allocation32_spill] sm:$0xff]  ;;  %v8548_v37 = vld [vmem:[#allocation33_spill] sm:$0xff]  ;;  %v7739_v2 = vmul.f32 %v7242_v5, %v7487_v7 }
 0x3a1   :  { %v7727_v29 = vmul.f32 %v7242_v5, %v8547_v15  ;;  %v7731_v23 = vmul.f32 %v7242_v5, %v8548_v37  ;;  %v7743_v27 = vmul.f32 %v7242_v5, %v7491_v57  ;;  %v7747_v15 = vmul.f32 %v7242_v5, %v7495_v46 }
 0x3a2   :  { %8549 = vst [vmem:[#allocation22_spill] sm:$0xff] %v7739_v2  ;;  %v7751_v37 = vmul.f32 %v7242_v5, %v7499_v39  ;;  %v7759_v7 = vmul.f32 %v7242_v5, %v7507_v40  ;;  %v8550_v2 = vld [vmem:[#allocation19_spill] sm:$0xff] }
 0x3a3   :  { %v7763_v57 = vadd.f32 %v8550_v2, %v7511_v62  ;;  %v7767_v46 = vadd.f32 %v8550_v2, %v7515_v42  ;;  %v7771_v39 = vadd.f32 %v8550_v2, %v7519_v54  ;;  %v7775_v30 = vadd.f32 %v8550_v2, %v7523_v8 }
 0x3a4   :  { %v7779_v5 = vadd.f32 %v8550_v2, %v7527_v55  ;;  %v7783_v40 = vadd.f32 %v8550_v2, %v7531_v31  ;;  %v7787_v62 = vadd.f32 %v8550_v2, %v7535_v45  ;;  %v7791_v42 = vadd.f32 %v8550_v2, %v7539_v58 }
 0x3a5   :  { %v7795_v54 = vadd.f32 %v8550_v2, %v7543_v38  ;;  %v7799_v8 = vadd.f32 %v8550_v2, %v7547_v41  ;;  %v7803_v55 = vadd.f32 %v8550_v2, %v7551_v47  ;;  %v7807_v31 = vadd.f32 %v8550_v2, %v7555_v32 }
 0x3a6   :  { %v7811_v45 = vadd.f32 %v8550_v2, %v7559_v28  ;;  %v7815_v58 = vadd.f32 %v8550_v2, %v7563_v1  ;;  %v7819_v38 = vadd.f32 %v8550_v2, %v7567_v20  ;;  %v7823_v41 = vadd.f32 %v8550_v2, %v7571_v16 }
 0x3a7   :  { %v7827_v47 = vadd.f32 %v8550_v2, %v7575_v11  ;;  %v7831_v32 = vadd.f32 %v8550_v2, %v7579_v26  ;;  %v7835_v28 = vadd.f32 %v8550_v2, %v7583_v19  ;;  %v7839_v1 = vadd.f32 %v8550_v2, %v7587_v44 }
 0x3a8   :  { %v7843_v20 = vadd.f32 %v8550_v2, %v7591_v13  ;;  %v7847_v16 = vadd.f32 %v8550_v2, %v7595_v43  ;;  %v7851_v11 = vadd.f32 %v8550_v2, %v7599_v4  ;;  %v7855_v26 = vadd.f32 %v8550_v2, %v7603_v6 }
 0x3a9   :  { %v7859_v19 = vadd.f32 %v8550_v2, %v7607_v51  ;;  %v7863_v44 = vadd.f32 %v8550_v2, %v7611_v18  ;;  %v7867_v13 = vadd.f32 %v8550_v2, %v7615_v36  ;;  %v7871_v43 = vadd.f32 %v8550_v2, %v7619_v60  ;;  %v8551_v60 = vld [vmem:[#allocation34_spill] sm:$0xff] }
 0x3aa   :  { %v7875_v4 = vadd.f32 %v8550_v2, %v7623_v52  ;;  %v7879_v6 = vadd.f32 %v8550_v2, %v7627_v53  ;;  %v7883_v51 = vadd.f32 %v8550_v2, %v7631_v33  ;;  %v7887_v18 = vadd.f32 %v8550_v2, %v7635_v49 }
 0x3ab   :  { %v7891_v36 = vadd.f32 %v8550_v2, %v7639_v3  ;;  %v7895_v52 = vadd.f32 %v8550_v2, %v8551_v60  ;;  %v7899_v53 = vadd.f32 %v8550_v2, %v7647_v24  ;;  %v7903_v33 = vadd.f32 %v8550_v2, %v7651_v9 }
 0x3ac   :  { %v7907_v49 = vadd.f32 %v8550_v2, %v7655_v34  ;;  %v7911_v3 = vadd.f32 %v8550_v2, %v7659_v50  ;;  %v7915_v60 = vadd.f32 %v8550_v2, %v7663_v21  ;;  %v7919_v24 = vadd.f32 %v8550_v2, %v7667_v0  ;;  %v3893_v50 = vld [vmem:[%s8343_s5 + $0x10] sm:$0xff]  ;;  %v3891_v21 = vld [vmem:[%s8343_s5] sm:$0xff] }
 0x3ad   :  { %8552 = vst [vmem:[#allocation20_spill] sm:$0xff] %v7895_v52  ;;  %8553 = vst [vmem:[#allocation23_spill] sm:$0xff] %v7899_v53  ;;  %v7923_v9 = vadd.f32 %v8550_v2, %v7671_v59  ;;  %v7927_v34 = vadd.f32 %v8550_v2, %v7675_v35  ;;  %v7937_v0 = vadd.f32 %v8550_v2, %v7679_v14  ;;  %v3892_v14 = vld [vmem:[%s8343_s5 + $0x8] sm:$0xff]  ;;  %v3917_v52 = vld [vmem:[%s8343_s5 + $0xd0] sm:$0xff] }
 0x3ae   :  { %8554 = vst [vmem:[#allocation25_spill] sm:$0xff] %v7903_v33  ;;  %8555 = vst [vmem:[#allocation28_spill] sm:$0xff] %v7907_v49  ;;  %v7941_v59 = vadd.f32 %v8550_v2, %v7683_v25  ;;  %v7945_v35 = vadd.f32 %v8550_v2, %v7687_v56  ;;  %v3897_v25 = vld [vmem:[%s8343_s5 + $0x30] sm:$0xff]  ;;  %v3895_v56 = vld [vmem:[%s8343_s5 + $0x20] sm:$0xff] }
 0x3af   :  { %8556 = vst [vmem:[#allocation12_spill] sm:$0xff] %v7911_v3  ;;  %8557 = vst [vmem:[#allocation5_spill] sm:$0xff] %v7915_v60  ;;  %v8571_v60 = vld [vmem:[#allocation38_spill] sm:$0xff]  ;;  %v3898_v49 = vld [vmem:[%s8343_s5 + $0x38] sm:$0xff] }
 0x3b0   :  { %8558 = vst [vmem:[#allocation6_spill] sm:$0xff] %v7919_v24  ;;  %8559 = vst [vmem:[#allocation13_spill] sm:$0xff] %v7923_v9  ;;  %v3894_v9 = vld [vmem:[%s8343_s5 + $0x18] sm:$0xff]  ;;  %v7977_v3 = vadd.f32 %v8550_v2, %v8571_v60  ;;  %v7993_v60 = vadd.f32 %v8550_v2, %v7711_v63  ;;  %v3900_v63 = vld [vmem:[%s8343_s5 + $0x48] sm:$0xff] }
 0x3b1   :  { %8560 = vst [vmem:[#allocation7_spill] sm:$0xff] %v7927_v34  ;;  %8561 = vst [vmem:[#allocation14_spill] sm:$0xff] %v7937_v0  ;;  %v7949_v34 = vadd.f32 %v8550_v2, %v7691_v10  ;;  %v8569_v0 = vld [vmem:[#allocation37_spill] sm:$0xff]  ;;  %v3906_v33 = vld [vmem:[%s8343_s5 + $0x78] sm:$0xff] }
 0x3b2   :  { %8562 = vst [vmem:[#allocation8_spill] sm:$0xff] %v7941_v59  ;;  %8563 = vst [vmem:[#allocation15_spill] sm:$0xff] %v7945_v35  ;;  %v8565_v35 = vld [vmem:[#allocation36_spill] sm:$0xff]  ;;  %v7973_v24 = vadd.f32 %v8550_v2, %v8569_v0  ;;  %v3899_v0 = vld [vmem:[%s8343_s5 + $0x40] sm:$0xff] }
 0x3b3   :  { %8564 = vst [vmem:[#allocation9_spill] sm:$0xff] %v7949_v34  ;;  %v7965_v10 = vadd.f32 %v8550_v2, %v8565_v35  ;;  %v8567_v34 = vld [vmem:[#allocation35_spill] sm:$0xff]  ;;  %8572 = vst [vmem:[#allocation11_spill] sm:$0xff] %v7977_v3  ;;  %v3896_v35 = vld [vmem:[%s8343_s5 + $0x28] sm:$0xff]  ;;  %v7997_v3 = vadd.f32 %v8550_v2, %v7715_v12 }
 0x3b4   :  { %v7969_v59 = vadd.f32 %v8550_v2, %v8567_v34  ;;  %8570 = vst [vmem:[#allocation17_spill] sm:$0xff] %v7973_v24  ;;  %v3901_v34 = vld [vmem:[%s8343_s5 + $0x50] sm:$0xff]  ;;  %8573 = vst [vmem:[#allocation21_spill] sm:$0xff] %v7993_v60  ;;  %v8001_v24 = vadd.f32 %v8550_v2, %v7719_v22  ;;  %v3903_v22 = vld [vmem:[%s8343_s5 + $0x60] sm:$0xff] }
 0x3b5   :  { %8566 = vst [vmem:[#allocation16_spill] sm:$0xff] %v7965_v10  ;;  %8574 = vst [vmem:[#allocation24_spill] sm:$0xff] %v7997_v3  ;;  %v3902_v10 = vld [vmem:[%s8343_s5 + $0x58] sm:$0xff]  ;;  %v3905_v12 = vld [vmem:[%s8343_s5 + $0x70] sm:$0xff] }
 0x3b6   :  { %8568 = vst [vmem:[#allocation10_spill] sm:$0xff] %v7969_v59  ;;  %8575 = vst [vmem:[#allocation26_spill] sm:$0xff] %v8001_v24  ;;  %v8005_v59 = vadd.f32 %v8550_v2, %v7723_v61  ;;  %v8021_v61 = vadd.f32 %v8550_v2, %v7727_v29  ;;  %v8029_v24 = vadd.f32 %v8550_v2, %v7735_v48  ;;  %v8580_v3 = vld [vmem:[#allocation22_spill] sm:$0xff]  ;;  %v3907_v48 = vld [vmem:[%s8343_s5 + $0x80] sm:$0xff] }
 0x3b7   :  { %v8033_v60 = vadd.f32 %v8550_v2, %v8580_v3  ;;  %v3904_v29 = vld [vmem:[%s8343_s5 + $0x68] sm:$0xff]  ;;  %v8049_v3 = vadd.f32 %v8550_v2, %v7743_v27 }
 0x3b8   :  { %8576 = vst [vmem:[#allocation27_spill] sm:$0xff] %v8005_v59  ;;  %8577 = vst [vmem:[#allocation18_spill] sm:$0xff] %v8021_v61  ;;  %v8025_v59 = vadd.f32 %v8550_v2, %v7731_v23  ;;  %v3909_v23 = vld [vmem:[%s8343_s5 + $0x90] sm:$0xff]  ;;  %v3910_v61 = vld [vmem:[%s8343_s5 + $0x98] sm:$0xff] }
 0x3b9   :  { %8579 = vst [vmem:[#allocation30_spill] sm:$0xff] %v8029_v24  ;;  %8581 = vst [vmem:[#allocation31_spill] sm:$0xff] %v8033_v60  ;;  %v8053_v60 = vadd.f32 %v8550_v2, %v7747_v15  ;;  %v8057_v24 = vadd.f32 %v8550_v2, %v7751_v37  ;;  %v3908_v27 = vld [vmem:[%s8343_s5 + $0x88] sm:$0xff]  ;;  %v3913_v15 = vld [vmem:[%s8343_s5 + $0xb0] sm:$0xff] }
 0x3ba   :  { %8578 = vst [vmem:[#allocation29_spill] sm:$0xff] %v8025_v59  ;;  %8582 = vst [vmem:[#allocation32_spill] sm:$0xff] %v8049_v3  ;;  %v8061_v59 = vadd.f32 %v8550_v2, %v7755_v17  ;;  %v3911_v37 = vld [vmem:[%s8343_s5 + $0xa0] sm:$0xff]  ;;  %v8077_v17 = vadd.f32 %v8550_v2, %v7759_v7  ;;  %v3914_v3 = vld [vmem:[%s8343_s5 + $0xb8] sm:$0xff]  ;;  %v3958_v7 = vadd.f32 %v3894_v9, %v7775_v30 }
 0x3bb   :  { %8583 = vst [vmem:[#allocation33_spill] sm:$0xff] %v8053_v60  ;;  %8584 = vst [vmem:[#allocation19_spill] sm:$0xff] %v8057_v24  ;;  %v3956_v24 = vadd.f32 %v3892_v14, %v7767_v46  ;;  %v3957_v60 = vadd.f32 %v3893_v50, %v7771_v39  ;;  %v3912_v53 = vld [vmem:[%s8343_s5 + $0xa8] sm:$0xff]  ;;  %v3915_v2 = vld [vmem:[%s8343_s5 + $0xc0] sm:$0xff]  ;;  %v3960_v46 = vadd.f32 %v3896_v35, %v7783_v40 }
 0x3bc   :  { %8585 = vst [vmem:[#allocation34_spill] sm:$0xff] %v8061_v59  ;;  %v3955_v59 = vadd.f32 %v3891_v21, %v7763_v57  ;;  %v3959_v57 = vadd.f32 %v3895_v56, %v7779_v5  ;;  %v3961_v39 = vadd.f32 %v3897_v25, %v7787_v62  ;;  %v3918_v50 = vld [vmem:[%s8343_s5 + $0xd8] sm:$0xff]  ;;  %v3916_v21 = vld [vmem:[%s8343_s5 + $0xc8] sm:$0xff]  ;;  %v3921_v14 = vld [vmem:[%s8343_s5 + $0xf0] sm:$0xff]  ;;  %v3962_v5 = vadd.f32 %v3898_v49, %v7791_v42 }
 0x3bd   :  { %v3919_v30 = vld [vmem:[%s8343_s5 + $0xe0] sm:$0xff]  ;;  %v3963_v40 = vadd.f32 %v3899_v0, %v7795_v54  ;;  %v3964_v62 = vadd.f32 %v3900_v63, %v7799_v8  ;;  %v3965_v9 = vadd.f32 %v3901_v34, %v7803_v55  ;;  %4020 = vst.msk [vmem:[#allocation2 + $0x8] sm:$0xff] %vm3285_vm5, %v3956_v24  ;;  %4021 = vst.msk [vmem:[#allocation2 + $0x10] sm:$0xff] %vm3285_vm5, %v3957_v60  ;;  %v3922_v25 = vld [vmem:[%s8343_s5 + $0xf8] sm:$0xff] }
 0x3be   :  { %4019 = vst.msk [vmem:[#allocation2] sm:$0xff] %vm3285_vm5, %v3955_v59  ;;  %v3920_v42 = vld [vmem:[%s8343_s5 + $0xe8] sm:$0xff]  ;;  %v3925_v54 = vld [vmem:[%s8343_s5 + $0x110] sm:$0xff]  ;;  %v3923_v8 = vld [vmem:[%s8343_s5 + $0x100] sm:$0xff]  ;;  %v3966_v55 = vadd.f32 %v3902_v10, %v7807_v31  ;;  %v3967_v49 = vadd.f32 %v3903_v22, %v7811_v45  ;;  %v3968_v24 = vadd.f32 %v3904_v29, %v7815_v58  ;;  %v3969_v59 = vadd.f32 %v3905_v12, %v7819_v38 }
 0x3bf   :  { %4022 = vst.msk [vmem:[#allocation2 + $0x18] sm:$0xff] %vm3285_vm5, %v3958_v7  ;;  %4023 = vst.msk [vmem:[#allocation2 + $0x20] sm:$0xff] %vm3285_vm5, %v3959_v57  ;;  %v3926_v56 = vld [vmem:[%s8343_s5 + $0x118] sm:$0xff]  ;;  %v3924_v31 = vld [vmem:[%s8343_s5 + $0x108] sm:$0xff]  ;;  %v3970_v38 = vadd.f32 %v3906_v33, %v7823_v41  ;;  %v3971_v10 = vadd.f32 %v3907_v48, %v7827_v47  ;;  %v3972_v35 = vadd.f32 %v3908_v27, %v7831_v32 }
 0x3c0   :  { %4024 = vst.msk [vmem:[#allocation2 + $0x28] sm:$0xff] %vm3285_vm5, %v3960_v46  ;;  %4025 = vst.msk [vmem:[#allocation2 + $0x30] sm:$0xff] %vm3285_vm5, %v3961_v39  ;;  %v3929_v45 = vld [vmem:[%s8343_s5 + $0x130] sm:$0xff]  ;;  %v3927_v58 = vld [vmem:[%s8343_s5 + $0x120] sm:$0xff]  ;;  %v3973_v34 = vadd.f32 %v3909_v23, %v7835_v28  ;;  %v3974_v28 = vadd.f32 %v3910_v61, %v7839_v1  ;;  %v3975_v33 = vadd.f32 %v3911_v37, %v7843_v20 }
 0x3c1   :  { %4026 = vst.msk [vmem:[#allocation2 + $0x38] sm:$0xff] %vm3285_vm5, %v3962_v5  ;;  %4027 = vst.msk [vmem:[#allocation2 + $0x40] sm:$0xff] %vm3285_vm5, %v3963_v40  ;;  %v3930_v0 = vld [vmem:[%s8343_s5 + $0x138] sm:$0xff]  ;;  %v3928_v41 = vld [vmem:[%s8343_s5 + $0x128] sm:$0xff]  ;;  %v3976_v60 = vadd.f32 %v3912_v53, %v7847_v16  ;;  %v3977_v63 = vadd.f32 %v3913_v15, %v7851_v11  ;;  %v3978_v16 = vadd.f32 %v3914_v3, %v7855_v26 }
 0x3c2   :  { %4028 = vst.msk [vmem:[#allocation2 + $0x48] sm:$0xff] %vm3285_vm5, %v3964_v62  ;;  %4029 = vst.msk [vmem:[#allocation2 + $0x50] sm:$0xff] %vm3285_vm5, %v3965_v9  ;;  %v3933_v47 = vld [vmem:[%s8343_s5 + $0x150] sm:$0xff]  ;;  %v3931_v32 = vld [vmem:[%s8343_s5 + $0x140] sm:$0xff]  ;;  %v3979_v11 = vadd.f32 %v3915_v2, %v7859_v19  ;;  %v3980_v53 = vadd.f32 %v3916_v21, %v7863_v44  ;;  %v3981_v22 = vadd.f32 %v3917_v52, %v7867_v13 }
 0x3c3   :  { %4030 = vst.msk [vmem:[#allocation2 + $0x58] sm:$0xff] %vm3285_vm5, %v3966_v55  ;;  %4031 = vst.msk [vmem:[#allocation2 + $0x60] sm:$0xff] %vm3285_vm5, %v3967_v49  ;;  %v3934_v12 = vld [vmem:[%s8343_s5 + $0x158] sm:$0xff]  ;;  %v3932_v1 = vld [vmem:[%s8343_s5 + $0x148] sm:$0xff]  ;;  %v3982_v44 = vadd.f32 %v3918_v50, %v7871_v43  ;;  %v3983_v13 = vadd.f32 %v3919_v30, %v7875_v4  ;;  %v3984_v52 = vadd.f32 %v3920_v42, %v7879_v6 }
 0x3c4   :  { %4032 = vst.msk [vmem:[#allocation2 + $0x68] sm:$0xff] %vm3285_vm5, %v3968_v24  ;;  %4033 = vst.msk [vmem:[#allocation2 + $0x70] sm:$0xff] %vm3285_vm5, %v3969_v59  ;;  %v3937_v20 = vld [vmem:[%s8343_s5 + $0x170] sm:$0xff]  ;;  %v3935_v61 = vld [vmem:[%s8343_s5 + $0x160] sm:$0xff]  ;;  %v3985_v29 = vadd.f32 %v3921_v14, %v7883_v51  ;;  %v3986_v6 = vadd.f32 %v3922_v25, %v7887_v18  ;;  %v3987_v51 = vadd.f32 %v3923_v8, %v7891_v36 }
 0x3c5   :  { %4034 = vst.msk [vmem:[#allocation2 + $0x78] sm:$0xff] %vm3285_vm5, %v3970_v38  ;;  %4035 = vst.msk [vmem:[#allocation2 + $0x80] sm:$0xff] %vm3285_vm5, %v3971_v10  ;;  %v3938_v26 = vld [vmem:[%s8343_s5 + $0x178] sm:$0xff]  ;;  %v3936_v19 = vld [vmem:[%s8343_s5 + $0x168] sm:$0xff] }
 0x3c6   :  { %4036 = vst.msk [vmem:[#allocation2 + $0x88] sm:$0xff] %vm3285_vm5, %v3972_v35  ;;  %4037 = vst.msk [vmem:[#allocation2 + $0x90] sm:$0xff] %vm3285_vm5, %v3973_v34  ;;  %v3941_v23 = vld [vmem:[%s8343_s5 + $0x190] sm:$0xff]  ;;  %v3939_v43 = vld [vmem:[%s8343_s5 + $0x180] sm:$0xff] }
 0x3c7   :  { %4038 = vst.msk [vmem:[#allocation2 + $0x98] sm:$0xff] %vm3285_vm5, %v3974_v28  ;;  %4039 = vst.msk [vmem:[#allocation2 + $0xa0] sm:$0xff] %vm3285_vm5, %v3975_v33  ;;  %v3942_v4 = vld [vmem:[%s8343_s5 + $0x198] sm:$0xff]  ;;  %v8587_v27 = vld [vmem:[#allocation23_spill] sm:$0xff] }
 0x3c8   :  { %4040 = vst.msk [vmem:[#allocation2 + $0xa8] sm:$0xff] %vm3285_vm5, %v3976_v60  ;;  %4041 = vst.msk [vmem:[#allocation2 + $0xb0] sm:$0xff] %vm3285_vm5, %v3977_v63  ;;  %v8586_v48 = vld [vmem:[#allocation20_spill] sm:$0xff]  ;;  %v3989_v15 = vadd.f32 %v3925_v54, %v8587_v27  ;;  %v3940_v37 = vld [vmem:[%s8343_s5 + $0x188] sm:$0xff] }
 0x3c9   :  { %v3988_v3 = vadd.f32 %v3924_v31, %v8586_v48  ;;  %4042 = vst.msk [vmem:[#allocation2 + $0xb8] sm:$0xff] %vm3285_vm5, %v3978_v16  ;;  %4043 = vst.msk [vmem:[#allocation2 + $0xc0] sm:$0xff] %vm3285_vm5, %v3979_v11  ;;  %v3945_v18 = vld [vmem:[%s8343_s5 + $0x1b0] sm:$0xff]  ;;  %v3943_v36 = vld [vmem:[%s8343_s5 + $0x1a0] sm:$0xff] }
 0x3ca   :  { %4044 = vst.msk [vmem:[#allocation2 + $0xc8] sm:$0xff] %vm3285_vm5, %v3980_v53  ;;  %4045 = vst.msk [vmem:[#allocation2 + $0xd0] sm:$0xff] %vm3285_vm5, %v3981_v22  ;;  %v8588_v2 = vld [vmem:[#allocation25_spill] sm:$0xff]  ;;  %v8589_v57 = vld [vmem:[#allocation28_spill] sm:$0xff] }
 0x3cb   :  { %v3990_v7 = vadd.f32 %v3926_v56, %v8588_v2  ;;  %v3991_v46 = vadd.f32 %v3927_v58, %v8589_v57  ;;  %v8590_v39 = vld [vmem:[#allocation12_spill] sm:$0xff]  ;;  %v8591_v21 = vld [vmem:[#allocation5_spill] sm:$0xff]  ;;  %4046 = vst.msk [vmem:[#allocation2 + $0xd8] sm:$0xff] %vm3285_vm5, %v3982_v44  ;;  %4047 = vst.msk [vmem:[#allocation2 + $0xe0] sm:$0xff] %vm3285_vm5, %v3983_v13 }
 0x3cc   :  { %v3992_v50 = vadd.f32 %v3928_v41, %v8590_v39  ;;  %v3993_v14 = vadd.f32 %v3929_v45, %v8591_v21  ;;  %4048 = vst.msk [vmem:[#allocation2 + $0xe8] sm:$0xff] %vm3285_vm5, %v3984_v52  ;;  %4049 = vst.msk [vmem:[#allocation2 + $0xf0] sm:$0xff] %vm3285_vm5, %v3985_v29  ;;  %v3946_v30 = vld [vmem:[%s8343_s5 + $0x1b8] sm:$0xff]  ;;  %v3944_v5 = vld [vmem:[%s8343_s5 + $0x1a8] sm:$0xff] }
 0x3cd   :  { %v3949_v40 = vld [vmem:[%s8343_s5 + $0x1d0] sm:$0xff]  ;;  %v8592_v62 = vld [vmem:[#allocation6_spill] sm:$0xff]  ;;  %v8593_v25 = vld [vmem:[#allocation13_spill] sm:$0xff]  ;;  %4050 = vst.msk [vmem:[#allocation2 + $0xf8] sm:$0xff] %vm3285_vm5, %v3986_v6 }
 0x3ce   :  { %v3994_v9 = vadd.f32 %v3930_v0, %v8592_v62  ;;  %v3995_v42 = vadd.f32 %v3931_v32, %v8593_v25  ;;  %v8594_v54 = vld [vmem:[#allocation7_spill] sm:$0xff]  ;;  %v8595_v55 = vld [vmem:[#allocation14_spill] sm:$0xff]  ;;  %4051 = vst.msk [vmem:[#allocation2 + $0x100] sm:$0xff] %vm3285_vm5, %v3987_v51  ;;  %4052 = vst.msk [vmem:[#allocation2 + $0x108] sm:$0xff] %vm3285_vm5, %v3988_v3 }
 0x3cf   :  { %v3996_v8 = vadd.f32 %v3932_v1, %v8594_v54  ;;  %v3997_v49 = vadd.f32 %v3933_v47, %v8595_v55  ;;  %4053 = vst.msk [vmem:[#allocation2 + $0x110] sm:$0xff] %vm3285_vm5, %v3989_v15  ;;  %v3947_v24 = vld [vmem:[%s8343_s5 + $0x1c0] sm:$0xff]  ;;  %v3950_v59 = vld [vmem:[%s8343_s5 + $0x1d8] sm:$0xff]  ;;  %v3948_v56 = vld [vmem:[%s8343_s5 + $0x1c8] sm:$0xff] }
 0x3d0   :  { %v8596_v31 = vld [vmem:[#allocation8_spill] sm:$0xff]  ;;  %v8597_v58 = vld [vmem:[#allocation15_spill] sm:$0xff]  ;;  %v8598_v10 = vld [vmem:[#allocation9_spill] sm:$0xff]  ;;  %4054 = vst.msk [vmem:[#allocation2 + $0x118] sm:$0xff] %vm3285_vm5, %v3990_v7 }
 0x3d1   :  { %v3998_v45 = vadd.f32 %v3934_v12, %v8596_v31  ;;  %v3999_v38 = vadd.f32 %v3935_v61, %v8597_v58  ;;  %v4000_v35 = vadd.f32 %v3936_v19, %v8598_v10  ;;  %v8599_v34 = vld [vmem:[#allocation16_spill] sm:$0xff]  ;;  %4055 = vst.msk [vmem:[#allocation2 + $0x120] sm:$0xff] %vm3285_vm5, %v3991_v46  ;;  %4056 = vst.msk [vmem:[#allocation2 + $0x128] sm:$0xff] %vm3285_vm5, %v3992_v50  ;;  %v3953_v41 = vld [vmem:[%s8343_s5 + $0x1f0] sm:$0xff] }
 0x3d2   :  { %v4001_v0 = vadd.f32 %v3937_v20, %v8599_v34  ;;  %4057 = vst.msk [vmem:[#allocation2 + $0x130] sm:$0xff] %vm3285_vm5, %v3993_v14  ;;  %v3951_v47 = vld [vmem:[%s8343_s5 + $0x1e0] sm:$0xff]  ;;  %v3954_v32 = vld [vmem:[%s8343_s5 + $0x1f8] sm:$0xff]  ;;  %v8600_v28 = vld [vmem:[#allocation10_spill] sm:$0xff]  ;;  %s4939_s5 = scalar_lea.vmem %s8312_s24, 8192 }
 0x3d3   :  { %v4002_v33 = vadd.f32 %v3938_v26, %v8600_v28  ;;  %v8601_v60 = vld [vmem:[#allocation17_spill] sm:$0xff]  ;;  %v8602_v12 = vld [vmem:[#allocation11_spill] sm:$0xff]  ;;  %4058 = vst.msk [vmem:[#allocation2 + $0x138] sm:$0xff] %vm3285_vm5, %v3994_v9  ;;  %4059 = vst.msk [vmem:[#allocation2 + $0x140] sm:$0xff] %vm3285_vm5, %v3995_v42  ;;  %v4018_v2 = vadd.f32 %v3954_v32, %v8077_v17  ;;  %p4940_p0 = scmp.ne.s32.totalorder %s8312_s24, %s4939_s5  ;;  %p4945_p2 = scmp.lt.s32.totalorder %s4939_s5, %s4939_s5 }
 0x3d4   :  { %v4003_v63 = vadd.f32 %v3939_v43, %v8601_v60  ;;  %v4004_v1 = vadd.f32 %v3940_v37, %v8602_v12  ;;  %v8603_v20 = vld [vmem:[#allocation21_spill] sm:$0xff]  ;;  %4060 = vst.msk [vmem:[#allocation2 + $0x148] sm:$0xff] %vm3285_vm5, %v3996_v8  ;;  %4061 = vst.msk [vmem:[#allocation2 + $0x150] sm:$0xff] %vm3285_vm5, %v3997_v49  ;;  %v8604_v11 = vld [vmem:[#allocation24_spill] sm:$0xff] }
 0x3d5   :  { %v4005_v16 = vadd.f32 %v3941_v23, %v8603_v20  ;;  %v4006_v53 = vadd.f32 %v3942_v4, %v8604_v11  ;;  %v8605_v22 = vld [vmem:[#allocation26_spill] sm:$0xff]  ;;  %v8606_v19 = vld [vmem:[#allocation27_spill] sm:$0xff]  ;;  %4062 = vst.msk [vmem:[#allocation2 + $0x158] sm:$0xff] %vm3285_vm5, %v3998_v45  ;;  %4063 = vst.msk [vmem:[#allocation2 + $0x160] sm:$0xff] %vm3285_vm5, %v3999_v38  ;;  %p4946_p3 = por %p4945_p2, %p4944_p1 }
 0x3d6   :  { %v4007_v61 = vadd.f32 %v3943_v36, %v8605_v22  ;;  %v4008_v26 = vadd.f32 %v3944_v5, %v8606_v19  ;;  %v8607_v44 = vld [vmem:[#allocation18_spill] sm:$0xff]  ;;  %4064 = vst.msk [vmem:[#allocation2 + $0x168] sm:$0xff] %vm3285_vm5, %v4000_v35  ;;  %4065 = vst.msk [vmem:[#allocation2 + $0x170] sm:$0xff] %vm3285_vm5, %v4001_v0  ;;  %v8608_v52 = vld [vmem:[#allocation29_spill] sm:$0xff] }
 0x3d7   :  { %v4009_v13 = vadd.f32 %v3945_v18, %v8607_v44  ;;  %v4010_v29 = vadd.f32 %v3946_v30, %v8608_v52  ;;  %v8609_v23 = vld [vmem:[#allocation30_spill] sm:$0xff]  ;;  %v8610_v6 = vld [vmem:[#allocation31_spill] sm:$0xff]  ;;  %v8611_v51 = vld [vmem:[#allocation32_spill] sm:$0xff]  ;;  %4066 = vst.msk [vmem:[#allocation2 + $0x178] sm:$0xff] %vm3285_vm5, %v4002_v33  ;;  %p4947_p4 = pnand %p4946_p3, %p4940_p0 }
 0x3d8   :  { %v4011_v43 = vadd.f32 %v3947_v24, %v8609_v23  ;;  %v4012_v4 = vadd.f32 %v3948_v56, %v8610_v6  ;;  %v4013_v48 = vadd.f32 %v3949_v40, %v8611_v51  ;;  %4067 = vst.msk [vmem:[#allocation2 + $0x180] sm:$0xff] %vm3285_vm5, %v4003_v63  ;;  %4068 = vst.msk [vmem:[#allocation2 + $0x188] sm:$0xff] %vm3285_vm5, %v4004_v1  ;;  %v8612_v3 = vld [vmem:[#allocation33_spill] sm:$0xff]  ;;  %v8613_v15 = vld [vmem:[#allocation19_spill] sm:$0xff] }
 0x3d9   :  { %4069 = vst.msk [vmem:[#allocation2 + $0x190] sm:$0xff] %vm3285_vm5, %v4005_v16  ;;  %v4014_v27 = vadd.f32 %v3950_v59, %v8612_v3  ;;  %v4015_v37 = vadd.f32 %v3951_v47, %v8613_v15  ;;  %v8614_v18 = vld [vmem:[#allocation34_spill] sm:$0xff]  ;;  %4070 = vst.msk [vmem:[#allocation2 + $0x198] sm:$0xff] %vm3285_vm5, %v4006_v53 }
 0x3da   :  { %v4017_v36 = vadd.f32 %v3953_v41, %v8614_v18  ;;  %4071 = vst.msk [vmem:[#allocation2 + $0x1a0] sm:$0xff] %vm3285_vm5, %v4007_v61  ;;  %4072 = vst.msk [vmem:[#allocation2 + $0x1a8] sm:$0xff] %vm3285_vm5, %v4008_v26 }
 0x3db   :  { %4073 = vst.msk [vmem:[#allocation2 + $0x1b0] sm:$0xff] %vm3285_vm5, %v4009_v13  ;;  %4074 = vst.msk [vmem:[#allocation2 + $0x1b8] sm:$0xff] %vm3285_vm5, %v4010_v29 }
 0x3dc   :  { %4075 = vst.msk [vmem:[#allocation2 + $0x1c0] sm:$0xff] %vm3285_vm5, %v4011_v43  ;;  %4076 = vst.msk [vmem:[#allocation2 + $0x1c8] sm:$0xff] %vm3285_vm5, %v4012_v4 }
 0x3dd   :  { %4077 = vst.msk [vmem:[#allocation2 + $0x1d0] sm:$0xff] %vm3285_vm5, %v4013_v48  ;;  %4078 = vst.msk [vmem:[#allocation2 + $0x1d8] sm:$0xff] %vm3285_vm5, %v4014_v27 }
 0x3de   :  { %4079 = vst.msk [vmem:[#allocation2 + $0x1e0] sm:$0xff] %vm3285_vm5, %v4015_v37  ;;  %4081 = vst.msk [vmem:[#allocation2 + $0x1f0] sm:$0xff] %vm3285_vm5, %v4017_v36 }
 0x3df   :  { %4082 = vst.msk [vmem:[#allocation2 + $0x1f8] sm:$0xff] %vm3285_vm5, %v4018_v2 }
 0x3e0   :  { %4950 = shalt.err (!%p4947_p4)
}
 0x3e1   :  { %s4963_s7 = smov 128   ;;  %s4964_s8 = smov 8  }
 0x3e2   :  { %4094 = dma.vmem_to_hbm [thread:$0]  %s8312_s24, 8192, %s8344_s6, [#allocation3], %s4963_s7, %s4963_s7, %s4964_s8  }
 0x3e3   :  { %4959 = dma.done.wait [#allocation3], 8192  }
 0x3e4   :  { %4960 = vsyncadd [#allocation3], 4294959104 }
 0x3e5   :  { %4098 = vsyncpa [#allocation3], 1 }

</bundles_post_ra>
